<compile_context>
chip_gen: v7x
topology: tpu7x:2x2x1
jax: 0.10.0
libtpu: 0.0.40
codegen_flags: <defaults>
</compile_context>

<pallas_src>
import jax
import jax.numpy as jnp
from jax import lax
from jax.experimental import pallas as pl
from jax.experimental.pallas import tpu as pltpu

BN_EPS = 1e-5
_SUB = 8  # sublane unit: partial-sum rows / alignment for reshapes


def _pick_vmem_limit():
    """Per-generation VMEM budget: ~3/4 of physical capacity
    (~96 MiB on v5e/v6e's 128 MiB, ~48 MiB on v7x's 64 MiB), safe fallback."""
    try:
        cap = int(pltpu.get_tpu_info().vmem_capacity_bytes)
    except Exception:
        cap = 64 * 1024 * 1024
    return max(32 * 1024 * 1024, min((cap * 3) // 4, 100 * 1024 * 1024))


@jax.jit
def conv_block_forward(x_nchw, w_oihw, gamma, beta):
    N, Cin, H, W = x_nchw.shape
    Cout = w_oihw.shape[0]
    assert w_oihw.shape[1:] == (Cin, 3, 3), "expected 3x3 conv weights"
    assert H % 2 == 0 and W % 2 == 0, "MaxPool2d(2,2) expects even H and W"
    assert W % _SUB == 0, "W must be a multiple of 8 (sublane-aligned reshapes)"
    Ho, Wo = H // 2, W // 2
    HW = H * W
    Cp = ((Cout + 127) // 128) * 128      # lane-dense padded output channels
    K9 = 9 * Cin                          # fused im2col contraction width
    Hp, Wp = H + 2, W + 2
    vmem_limit = _pick_vmem_limit()

    # Batch halves for the stats pass: leading "parallel" grid axis so the
    # second TensorCore (v7x megacore) shares phase 1.
    NH = 2 if (N % 2 == 0 and N >= 2) else 1
    n_per = N // NH

    # --- glue: NCHW -> padded NHWC; weights -> (9*Cin, Cp) im2col order ---
    x = jnp.transpose(x_nchw, (0, 2, 3, 1)).astype(jnp.float32)
    xp = jnp.pad(x, ((0, 0), (1, 1), (1, 1), (0, 0)))             # (N, Hp, Wp, Cin)
    w = jnp.transpose(w_oihw.astype(jnp.float32), (2, 3, 1, 0))   # (3, 3, Cin, Cout)
    wf = jnp.pad(w.reshape(K9, Cout), ((0, 0), (0, Cp - Cout)))   # (9*Cin, Cp)
    gamma_p = jnp.pad(gamma.astype(jnp.float32), (0, Cp - Cout))
    beta_p = jnp.pad(beta.astype(jnp.float32), (0, Cp - Cout))

    def stage_im2col(x_ref, col_ref):
        # x_ref: (Hp, Wp, Cin) padded image; col_ref: (H*W, 9*Cin) scratch.
        # Tap t = kh*3+kw lands in lanes [t*Cin, (t+1)*Cin): 9 lane-offset
        # stores feeding ONE K=9*Cin matmul (instead of 9 K=Cin matmuls).
        for kh in range(3):
            for kw in range(3):
                t = kh * 3 + kw
                tap = x_ref[kh:kh + H, kw:kw + W, :].reshape(HW, Cin)
                col_ref[:, t * Cin:(t + 1) * Cin] = tap

    # ------------- phase 1: conv + per-channel sum / sum-of-squares -------------
    def stats_kernel(x_ref, w_ref, sum_ref, sq_ref, col_ref):
        @pl.when(pl.program_id(1) == 0)
        def _init():
            sum_ref[...] = jnp.zeros_like(sum_ref)
            sq_ref[...] = jnp.zeros_like(sq_ref)

        stage_im2col(x_ref, col_ref)
        y = jnp.dot(col_ref[...], w_ref[...],
                    preferred_element_type=jnp.float32)            # (H*W, Cp)
        y3 = y.reshape(HW // _SUB, _SUB, Cp)
        sum_ref[...] += jnp.sum(y3, axis=0)                        # (8, Cp) partials
        sq_ref[...] += jnp.sum(y3 * y3, axis=0)

    conv_flops = 2 * N * H * W * K9 * Cp
    sums_nh, sqs_nh = pl.pallas_call(
        stats_kernel,
        out_shape=(jax.ShapeDtypeStruct((NH, _SUB, Cp), jnp.float32),
                   jax.ShapeDtypeStruct((NH, _SUB, Cp), jnp.float32)),
        grid=(NH, n_per),
        in_specs=[
            pl.BlockSpec((None, Hp, Wp, Cin),
                         lambda h, m: (h * n_per + m, 0, 0, 0)),
            # Constant-index operand (weights); tiny here, default buffering.
            pl.BlockSpec((K9, Cp), lambda h, m: (0, 0)),
        ],
        out_specs=(pl.BlockSpec((None, _SUB, Cp), lambda h, m: (h, 0, 0)),
                   pl.BlockSpec((None, _SUB, Cp), lambda h, m: (h, 0, 0))),
        scratch_shapes=[pltpu.VMEM((HW, K9), jnp.float32)],
        compiler_params=pltpu.CompilerParams(
            dimension_semantics=("parallel", "arbitrary"),
            vmem_limit_bytes=vmem_limit),
        cost_estimate=pl.CostEstimate(
            flops=conv_flops, transcendentals=0,
            bytes_accessed=xp.size * 4 + wf.size * 4 + 2 * NH * _SUB * Cp * 4),
    )(xp, wf)

    # --- tiny per-channel BN fold (training-mode / biased variance):
    #     scale folded into the conv weights, shift passed to the kernel. ---
    cnt = jnp.float32(N * H * W)
    sums = jnp.sum(sums_nh, axis=(0, 1))
    sqs = jnp.sum(sqs_nh, axis=(0, 1))
    mean = sums / cnt
    var = jnp.maximum(sqs / cnt - mean * mean, 0.0)
    scale = gamma_p * lax.rsqrt(var + BN_EPS)
    shift = (beta_p - mean * scale).reshape(1, Cp)
    wf_scaled = wf * scale.reshape(1, Cp)

    # --------- phase 2: conv (pre-scaled) + shift + ReLU + 2x2 max-pool ---------
    # NOTE: recompute-the-conv is the right branch for Cin << Cout (4 vs 128
    # padded); for Cin ~ Cout a stored-y variant (phase 1 writes the raw conv,
    # phase 2 becomes affine+ReLU+pool) would halve phase-2 MXU work.
    def apply_kernel(x_ref, w_ref, shift_ref, o_ref, col_ref, rm_ref):
        stage_im2col(x_ref, col_ref)
        y = jnp.dot(col_ref[...], w_ref[...],
                    preferred_element_type=jnp.float32)            # (H*W, Cp)
        y = jnp.maximum(y + shift_ref[...], 0.0)                   # BN shift + ReLU
        # 2x2 stride-2 max-pool: row half on values via a leading-dim-only
        # reshape (row i = 2*io + r), width half via strided sublane reads
        # from a small (Ho, W, Cp) scratch.
        y4 = y.reshape(Ho, 2, W, Cp)
        rm_ref[...] = jnp.maximum(y4[:, 0, :, :], y4[:, 1, :, :])
        o_ref[...] = jnp.maximum(rm_ref[:, pl.ds(0, Wo, stride=2), :],
                                 rm_ref[:, pl.ds(1, Wo, stride=2), :])

    out_p = pl.pallas_call(
        apply_kernel,
        out_shape=jax.ShapeDtypeStruct((N, Ho, Wo, Cp), jnp.float32),
        grid=(N,),
        in_specs=[
            pl.BlockSpec((None, Hp, Wp, Cin), lambda n: (n, 0, 0, 0)),
            pl.BlockSpec((K9, Cp), lambda n: (0, 0)),
            pl.BlockSpec((1, Cp), lambda n: (0, 0)),
        ],
        out_specs=pl.BlockSpec((None, Ho, Wo, Cp), lambda n: (n, 0, 0, 0)),
        scratch_shapes=[pltpu.VMEM((HW, K9), jnp.float32),
                        pltpu.VMEM((Ho, W, Cp), jnp.float32)],
        compiler_params=pltpu.CompilerParams(
            dimension_semantics=("parallel",),
            vmem_limit_bytes=vmem_limit),
        cost_estimate=pl.CostEstimate(
            flops=conv_flops, transcendentals=0,
            bytes_accessed=xp.size * 4 + wf.size * 4 + N * Ho * Wo * Cp * 4),
    )(xp, wf_scaled, shift)

    # --- glue: drop channel padding, back to NCHW ---
    return jnp.transpose(out_p[..., :Cout], (0, 3, 1, 2))


def _reference(x, w, gamma, beta):
    # Independent pure-JAX reference (lax.conv + BN + ReLU + reduce_window).
    conv = lax.conv_general_dilated(
        x, w, window_strides=(1, 1), padding=((1, 1), (1, 1)),
        dimension_numbers=("NCHW", "OIHW", "NCHW"))
    mean = conv.mean(axis=(0, 2, 3), keepdims=True)
    var = conv.var(axis=(0, 2, 3), keepdims=True)  # biased, like PyTorch training BN
    bn = (conv - mean) / jnp.sqrt(var + BN_EPS)
    bn = bn * gamma.reshape(1, -1, 1, 1) + beta.reshape(1, -1, 1, 1)
    r = jnp.maximum(bn, 0.0)
    return lax.reduce_window(r, -jnp.inf, lax.max,
                             (1, 1, 2, 2), (1, 1, 2, 2), "VALID")


if __name__ == "__main__":
    N, Cin, Cout, H, W = 2, 4, 8, 16, 16
    key = jax.random.PRNGKey(0)
    kx, kw = jax.random.split(key)
    x = jax.random.normal(kx, (N, Cin, H, W), dtype=jnp.float32)
    # Conv2d weight shape (out_channels, in_channels, 3, 3), bias=False.
    w = jax.random.normal(kw, (Cout, Cin, 3, 3), dtype=jnp.float32) * 0.1
    # BatchNorm2d default init: gamma = 1, beta = 0.
    gamma = jnp.ones((Cout,), dtype=jnp.float32)
    beta = jnp.zeros((Cout,), dtype=jnp.float32)

    out = conv_block_forward(x, w, gamma, beta)
    out = jax.block_until_ready(out)

    ref = _reference(x, w, gamma, beta)
    assert out.shape == (N, Cout, H // 2, W // 2), out.shape
    assert jnp.allclose(out, ref, atol=1e-4, rtol=1e-4), "mismatch vs reference"

    print("KERNEL_OK")
</pallas_src>

<mosaic_0001>
module attributes {stable_mosaic.version = 11 : i64} {
  func.func @apply_kernel(%arg0: i32, %arg1: memref<1x18x18x4xf32, #tpu.memory_space<vmem>>, %arg2: memref<36x128xf32, #tpu.memory_space<vmem>>, %arg3: memref<1x128xf32, #tpu.memory_space<vmem>>, %arg4: memref<1x8x8x128xf32, #tpu.memory_space<vmem>>, %arg5: memref<256x36xf32, #tpu.memory_space<vmem>>, %arg6: memref<8x16x128xf32, #tpu.memory_space<vmem>>) attributes {dimension_semantics = [#tpu.dimension_semantics<parallel>], iteration_bounds = array<i64: 2>, scalar_prefetch = 0 : i64, scratch_operands = 2 : i64, tpu.core_type = #tpu.core_type<tc>, window_params = [{transform_indices = @transform_0, window_bounds = array<i64: 1, 18, 18, 4>}, {pipeline_mode = #tpu.pipeline_mode<synchronous>, transform_indices = @transform_1, window_bounds = array<i64: 36, 128>}, {pipeline_mode = #tpu.pipeline_mode<synchronous>, transform_indices = @transform_2, window_bounds = array<i64: 1, 128>}, {transform_indices = @transform_3, window_bounds = array<i64: 1, 8, 8, 128>}]} {
    %c0 = arith.constant 0 : index
    %c0_0 = arith.constant 0 : index
    %c0_1 = arith.constant 0 : index
    %c0_2 = arith.constant 0 : index
    %0 = vector.load %arg1[%c0, %c0_0, %c0_1, %c0_2] : memref<1x18x18x4xf32, #tpu.memory_space<vmem>>, vector<1x16x16x4xf32>
    %1 = vector.shape_cast %0 : vector<1x16x16x4xf32> to vector<16x16x4xf32>
    %2 = vector.shape_cast %1 : vector<16x16x4xf32> to vector<256x4xf32>
    %c0_3 = arith.constant 0 : index
    %c0_4 = arith.constant 0 : index
    %3 = vector.load %arg5[%c0_3, %c0_4] : memref<256x36xf32, #tpu.memory_space<vmem>>, vector<256x4xf32>
    tpu.vector_store %arg5[%c0_3, %c0_4], %2 {strides = array<i32>} : memref<256x36xf32, #tpu.memory_space<vmem>>, vector<256x4xf32>,
    %c0_5 = arith.constant 0 : index
    %c0_6 = arith.constant 0 : index
    %c1 = arith.constant 1 : index
    %c0_7 = arith.constant 0 : index
    %4 = vector.load %arg1[%c0_5, %c0_6, %c1, %c0_7] : memref<1x18x18x4xf32, #tpu.memory_space<vmem>>, vector<1x16x16x4xf32>
    %5 = vector.shape_cast %4 : vector<1x16x16x4xf32> to vector<16x16x4xf32>
    %6 = vector.shape_cast %5 : vector<16x16x4xf32> to vector<256x4xf32>
    %c0_8 = arith.constant 0 : index
    %c4 = arith.constant 4 : index
    %7 = vector.load %arg5[%c0_8, %c4] : memref<256x36xf32, #tpu.memory_space<vmem>>, vector<256x4xf32>
    tpu.vector_store %arg5[%c0_8, %c4], %6 {strides = array<i32>} : memref<256x36xf32, #tpu.memory_space<vmem>>, vector<256x4xf32>,
    %c0_9 = arith.constant 0 : index
    %c0_10 = arith.constant 0 : index
    %c2 = arith.constant 2 : index
    %c0_11 = arith.constant 0 : index
    %8 = vector.load %arg1[%c0_9, %c0_10, %c2, %c0_11] : memref<1x18x18x4xf32, #tpu.memory_space<vmem>>, vector<1x16x16x4xf32>
    %9 = vector.shape_cast %8 : vector<1x16x16x4xf32> to vector<16x16x4xf32>
    %10 = vector.shape_cast %9 : vector<16x16x4xf32> to vector<256x4xf32>
    %c0_12 = arith.constant 0 : index
    %c8 = arith.constant 8 : index
    %11 = vector.load %arg5[%c0_12, %c8] : memref<256x36xf32, #tpu.memory_space<vmem>>, vector<256x4xf32>
    tpu.vector_store %arg5[%c0_12, %c8], %10 {strides = array<i32>} : memref<256x36xf32, #tpu.memory_space<vmem>>, vector<256x4xf32>,
    %c0_13 = arith.constant 0 : index
    %c1_14 = arith.constant 1 : index
    %c0_15 = arith.constant 0 : index
    %c0_16 = arith.constant 0 : index
    %12 = vector.load %arg1[%c0_13, %c1_14, %c0_15, %c0_16] : memref<1x18x18x4xf32, #tpu.memory_space<vmem>>, vector<1x16x16x4xf32>
    %13 = vector.shape_cast %12 : vector<1x16x16x4xf32> to vector<16x16x4xf32>
    %14 = vector.shape_cast %13 : vector<16x16x4xf32> to vector<256x4xf32>
    %c0_17 = arith.constant 0 : index
    %c12 = arith.constant 12 : index
    %15 = vector.load %arg5[%c0_17, %c12] : memref<256x36xf32, #tpu.memory_space<vmem>>, vector<256x4xf32>
    tpu.vector_store %arg5[%c0_17, %c12], %14 {strides = array<i32>} : memref<256x36xf32, #tpu.memory_space<vmem>>, vector<256x4xf32>,
    %c0_18 = arith.constant 0 : index
    %c1_19 = arith.constant 1 : index
    %c1_20 = arith.constant 1 : index
    %c0_21 = arith.constant 0 : index
    %16 = vector.load %arg1[%c0_18, %c1_19, %c1_20, %c0_21] : memref<1x18x18x4xf32, #tpu.memory_space<vmem>>, vector<1x16x16x4xf32>
    %17 = vector.shape_cast %16 : vector<1x16x16x4xf32> to vector<16x16x4xf32>
    %18 = vector.shape_cast %17 : vector<16x16x4xf32> to vector<256x4xf32>
    %c0_22 = arith.constant 0 : index
    %c16 = arith.constant 16 : index
    %19 = vector.load %arg5[%c0_22, %c16] : memref<256x36xf32, #tpu.memory_space<vmem>>, vector<256x4xf32>
    tpu.vector_store %arg5[%c0_22, %c16], %18 {strides = array<i32>} : memref<256x36xf32, #tpu.memory_space<vmem>>, vector<256x4xf32>,
    %c0_23 = arith.constant 0 : index
    %c1_24 = arith.constant 1 : index
    %c2_25 = arith.constant 2 : index
    %c0_26 = arith.constant 0 : index
    %20 = vector.load %arg1[%c0_23, %c1_24, %c2_25, %c0_26] : memref<1x18x18x4xf32, #tpu.memory_space<vmem>>, vector<1x16x16x4xf32>
    %21 = vector.shape_cast %20 : vector<1x16x16x4xf32> to vector<16x16x4xf32>
    %22 = vector.shape_cast %21 : vector<16x16x4xf32> to vector<256x4xf32>
    %c0_27 = arith.constant 0 : index
    %c20 = arith.constant 20 : index
    %23 = vector.load %arg5[%c0_27, %c20] : memref<256x36xf32, #tpu.memory_space<vmem>>, vector<256x4xf32>
    tpu.vector_store %arg5[%c0_27, %c20], %22 {strides = array<i32>} : memref<256x36xf32, #tpu.memory_space<vmem>>, vector<256x4xf32>,
    %c0_28 = arith.constant 0 : index
    %c2_29 = arith.constant 2 : index
    %c0_30 = arith.constant 0 : index
    %c0_31 = arith.constant 0 : index
    %24 = vector.load %arg1[%c0_28, %c2_29, %c0_30, %c0_31] : memref<1x18x18x4xf32, #tpu.memory_space<vmem>>, vector<1x16x16x4xf32>
    %25 = vector.shape_cast %24 : vector<1x16x16x4xf32> to vector<16x16x4xf32>
    %26 = vector.shape_cast %25 : vector<16x16x4xf32> to vector<256x4xf32>
    %c0_32 = arith.constant 0 : index
    %c24 = arith.constant 24 : index
    %27 = vector.load %arg5[%c0_32, %c24] : memref<256x36xf32, #tpu.memory_space<vmem>>, vector<256x4xf32>
    tpu.vector_store %arg5[%c0_32, %c24], %26 {strides = array<i32>} : memref<256x36xf32, #tpu.memory_space<vmem>>, vector<256x4xf32>,
    %c0_33 = arith.constant 0 : index
    %c2_34 = arith.constant 2 : index
    %c1_35 = arith.constant 1 : index
    %c0_36 = arith.constant 0 : index
    %28 = vector.load %arg1[%c0_33, %c2_34, %c1_35, %c0_36] : memref<1x18x18x4xf32, #tpu.memory_space<vmem>>, vector<1x16x16x4xf32>
    %29 = vector.shape_cast %28 : vector<1x16x16x4xf32> to vector<16x16x4xf32>
    %30 = vector.shape_cast %29 : vector<16x16x4xf32> to vector<256x4xf32>
    %c0_37 = arith.constant 0 : index
    %c28 = arith.constant 28 : index
    %31 = vector.load %arg5[%c0_37, %c28] : memref<256x36xf32, #tpu.memory_space<vmem>>, vector<256x4xf32>
    tpu.vector_store %arg5[%c0_37, %c28], %30 {strides = array<i32>} : memref<256x36xf32, #tpu.memory_space<vmem>>, vector<256x4xf32>,
    %c0_38 = arith.constant 0 : index
    %c2_39 = arith.constant 2 : index
    %c2_40 = arith.constant 2 : index
    %c0_41 = arith.constant 0 : index
    %32 = vector.load %arg1[%c0_38, %c2_39, %c2_40, %c0_41] : memref<1x18x18x4xf32, #tpu.memory_space<vmem>>, vector<1x16x16x4xf32>
    %33 = vector.shape_cast %32 : vector<1x16x16x4xf32> to vector<16x16x4xf32>
    %34 = vector.shape_cast %33 : vector<16x16x4xf32> to vector<256x4xf32>
    %c0_42 = arith.constant 0 : index
    %c32 = arith.constant 32 : index
    %35 = vector.load %arg5[%c0_42, %c32] : memref<256x36xf32, #tpu.memory_space<vmem>>, vector<256x4xf32>
    tpu.vector_store %arg5[%c0_42, %c32], %34 {strides = array<i32>} : memref<256x36xf32, #tpu.memory_space<vmem>>, vector<256x4xf32>,
    %c0_43 = arith.constant 0 : index
    %c0_44 = arith.constant 0 : index
    %36 = vector.load %arg5[%c0_43, %c0_44] : memref<256x36xf32, #tpu.memory_space<vmem>>, vector<256x36xf32>
    %c0_45 = arith.constant 0 : index
    %c0_46 = arith.constant 0 : index
    %37 = vector.load %arg2[%c0_45, %c0_46] : memref<36x128xf32, #tpu.memory_space<vmem>>, vector<36x128xf32>
    %cst = arith.constant dense<0.000000e+00> : vector<256x128xf32>
    %38 = tpu.matmul %36, %37, %cst {dimension_numbers = #tpu.dot_dimension_numbers<[1], [0], [0], [1], [0, 0, 1, 1], [], []>} : vector<256x36xf32>, vector<36x128xf32>, vector<256x128xf32> -> vector<256x128xf32>
    %c0_47 = arith.constant 0 : index
    %c0_48 = arith.constant 0 : index
    %39 = vector.load %arg3[%c0_47, %c0_48] : memref<1x128xf32, #tpu.memory_space<vmem>>, vector<1x128xf32>
    %40 = vector.broadcast %39 : vector<1x128xf32> to vector<256x128xf32>
    %41 = arith.addf %38, %40 : vector<256x128xf32>
    %cst_49 = arith.constant 0.000000e+00 : f32
    %42 = vector.broadcast %cst_49 : f32 to vector<256x128xf32>
    %43 = arith.maximumf %41, %42 : vector<256x128xf32>
    %44 = vector.shape_cast %43 : vector<256x128xf32> to vector<8x2x16x128xf32>
    %45 = vector.extract_strided_slice %44 {offsets = [0, 0, 0, 0], sizes = [8, 1, 16, 128], strides = [1, 1, 1, 1]} : vector<8x2x16x128xf32> to vector<8x1x16x128xf32>
    %46 = vector.shape_cast %45 : vector<8x1x16x128xf32> to vector<8x16x128xf32>
    %47 = vector.extract_strided_slice %44 {offsets = [0, 1, 0, 0], sizes = [8, 1, 16, 128], strides = [1, 1, 1, 1]} : vector<8x2x16x128xf32> to vector<8x1x16x128xf32>
    %48 = vector.shape_cast %47 : vector<8x1x16x128xf32> to vector<8x16x128xf32>
    %49 = arith.maximumf %46, %48 : vector<8x16x128xf32>
    %c0_50 = arith.constant 0 : index
    %c0_51 = arith.constant 0 : index
    %c0_52 = arith.constant 0 : index
    %50 = vector.load %arg6[%c0_50, %c0_51, %c0_52] : memref<8x16x128xf32, #tpu.memory_space<vmem>>, vector<8x16x128xf32>
    tpu.vector_store %arg6[%c0_50, %c0_51, %c0_52], %49 {strides = array<i32>} : memref<8x16x128xf32, #tpu.memory_space<vmem>>, vector<8x16x128xf32>,
    %c0_53 = arith.constant 0 : index
    %c0_54 = arith.constant 0 : index
    %c0_55 = arith.constant 0 : index
    %51 = tpu.strided_load %arg6[%c0_53, %c0_54, %c0_55] {strides = array<i32: 1, 2, 1>} : memref<8x16x128xf32, #tpu.memory_space<vmem>>, vector<8x8x128xf32>
    %c0_56 = arith.constant 0 : index
    %c1_57 = arith.constant 1 : index
    %c0_58 = arith.constant 0 : index
    %52 = tpu.strided_load %arg6[%c0_56, %c1_57, %c0_58] {strides = array<i32: 1, 2, 1>} : memref<8x16x128xf32, #tpu.memory_space<vmem>>, vector<8x8x128xf32>
    %53 = arith.maximumf %51, %52 : vector<8x8x128xf32>
    %c0_59 = arith.constant 0 : index
    %c0_60 = arith.constant 0 : index
    %c0_61 = arith.constant 0 : index
    %c0_62 = arith.constant 0 : index
    %54 = vector.load %arg4[%c0_59, %c0_60, %c0_61, %c0_62] : memref<1x8x8x128xf32, #tpu.memory_space<vmem>>, vector<1x8x8x128xf32>
    %55 = vector.shape_cast %54 : vector<1x8x8x128xf32> to vector<8x8x128xf32>
    %56 = vector.shape_cast %53 : vector<8x8x128xf32> to vector<1x8x8x128xf32>
    tpu.vector_store %arg4[%c0_59, %c0_60, %c0_61, %c0_62], %56 {strides = array<i32>} : memref<1x8x8x128xf32, #tpu.memory_space<vmem>>, vector<1x8x8x128xf32>,
    return
  }
  func.func @transform_0(%arg0: i32) -> (i32, i32, i32, i32) {
    %c0_i32 = arith.constant 0 : i32
    %c0_i32_0 = arith.constant 0 : i32
    %c0_i32_1 = arith.constant 0 : i32
    %c0_i32_2 = arith.constant 0 : i32
    return %arg0, %c0_i32, %c0_i32_0, %c0_i32_1 : i32, i32, i32, i32
  }
  func.func @transform_1(%arg0: i32) -> (i32, i32) {
    %c0_i32 = arith.constant 0 : i32
    %c0_i32_0 = arith.constant 0 : i32
    %c0_i32_1 = arith.constant 0 : i32
    return %c0_i32, %c0_i32_0 : i32, i32
  }
  func.func @transform_2(%arg0: i32) -> (i32, i32) {
    %c0_i32 = arith.constant 0 : i32
    %c0_i32_0 = arith.constant 0 : i32
    %c0_i32_1 = arith.constant 0 : i32
    return %c0_i32, %c0_i32_0 : i32, i32
  }
  func.func @transform_3(%arg0: i32) -> (i32, i32, i32, i32) {
    %c0_i32 = arith.constant 0 : i32
    %c0_i32_0 = arith.constant 0 : i32
    %c0_i32_1 = arith.constant 0 : i32
    %c0_i32_2 = arith.constant 0 : i32
    return %arg0, %c0_i32, %c0_i32_0, %c0_i32_1 : i32, i32, i32, i32
  }
}

module attributes {stable_mosaic.version = 11 : i64} {
  func.func @stats_kernel(%arg0: i32, %arg1: i32, %arg2: memref<1x18x18x4xf32, #tpu.memory_space<vmem>>, %arg3: memref<36x128xf32, #tpu.memory_space<vmem>>, %arg4: memref<1x8x128xf32, #tpu.memory_space<vmem>>, %arg5: memref<1x8x128xf32, #tpu.memory_space<vmem>>, %arg6: memref<256x36xf32, #tpu.memory_space<vmem>>) attributes {dimension_semantics = [#tpu.dimension_semantics<parallel>, #tpu.dimension_semantics<arbitrary>], iteration_bounds = array<i64: 2, 1>, scalar_prefetch = 0 : i64, scratch_operands = 1 : i64, tpu.core_type = #tpu.core_type<tc>, window_params = [{transform_indices = @transform_0, window_bounds = array<i64: 1, 18, 18, 4>}, {pipeline_mode = #tpu.pipeline_mode<synchronous>, transform_indices = @transform_1, window_bounds = array<i64: 36, 128>}, {transform_indices = @transform_2, window_bounds = array<i64: 1, 8, 128>}, {transform_indices = @transform_3, window_bounds = array<i64: 1, 8, 128>}]} {
    %c0_i32 = arith.constant 0 : i32
    %0 = arith.cmpi eq, %arg1, %c0_i32 : i32
    %1 = arith.extui %0 : i1 to i32
    %c0_i32_0 = arith.constant 0 : i32
    %2 = arith.cmpi ne, %1, %c0_i32_0 : i32
    scf.if %2 {
      %cst_62 = arith.constant 0.000000e+00 : f32
      %58 = vector.broadcast %cst_62 : f32 to vector<8x128xf32>
      %c0_63 = arith.constant 0 : index
      %c0_64 = arith.constant 0 : index
      %c0_65 = arith.constant 0 : index
      %59 = vector.load %arg4[%c0_63, %c0_64, %c0_65] : memref<1x8x128xf32, #tpu.memory_space<vmem>>, vector<1x8x128xf32>
      %60 = vector.shape_cast %59 : vector<1x8x128xf32> to vector<8x128xf32>
      %61 = vector.shape_cast %58 : vector<8x128xf32> to vector<1x8x128xf32>
      tpu.vector_store %arg4[%c0_63, %c0_64, %c0_65], %61 {strides = array<i32>} : memref<1x8x128xf32, #tpu.memory_space<vmem>>, vector<1x8x128xf32>,
      %cst_66 = arith.constant 0.000000e+00 : f32
      %62 = vector.broadcast %cst_66 : f32 to vector<8x128xf32>
      %c0_67 = arith.constant 0 : index
      %c0_68 = arith.constant 0 : index
      %c0_69 = arith.constant 0 : index
      %63 = vector.load %arg5[%c0_67, %c0_68, %c0_69] : memref<1x8x128xf32, #tpu.memory_space<vmem>>, vector<1x8x128xf32>
      %64 = vector.shape_cast %63 : vector<1x8x128xf32> to vector<8x128xf32>
      %65 = vector.shape_cast %62 : vector<8x128xf32> to vector<1x8x128xf32>
      tpu.vector_store %arg5[%c0_67, %c0_68, %c0_69], %65 {strides = array<i32>} : memref<1x8x128xf32, #tpu.memory_space<vmem>>, vector<1x8x128xf32>,
    } else {
    }
    %c0 = arith.constant 0 : index
    %c0_1 = arith.constant 0 : index
    %c0_2 = arith.constant 0 : index
    %c0_3 = arith.constant 0 : index
    %3 = vector.load %arg2[%c0, %c0_1, %c0_2, %c0_3] : memref<1x18x18x4xf32, #tpu.memory_space<vmem>>, vector<1x16x16x4xf32>
    %4 = vector.shape_cast %3 : vector<1x16x16x4xf32> to vector<16x16x4xf32>
    %5 = vector.shape_cast %4 : vector<16x16x4xf32> to vector<256x4xf32>
    %c0_4 = arith.constant 0 : index
    %c0_5 = arith.constant 0 : index
    %6 = vector.load %arg6[%c0_4, %c0_5] : memref<256x36xf32, #tpu.memory_space<vmem>>, vector<256x4xf32>
    tpu.vector_store %arg6[%c0_4, %c0_5], %5 {strides = array<i32>} : memref<256x36xf32, #tpu.memory_space<vmem>>, vector<256x4xf32>,
    %c0_6 = arith.constant 0 : index
    %c0_7 = arith.constant 0 : index
    %c1 = arith.constant 1 : index
    %c0_8 = arith.constant 0 : index
    %7 = vector.load %arg2[%c0_6, %c0_7, %c1, %c0_8] : memref<1x18x18x4xf32, #tpu.memory_space<vmem>>, vector<1x16x16x4xf32>
    %8 = vector.shape_cast %7 : vector<1x16x16x4xf32> to vector<16x16x4xf32>
    %9 = vector.shape_cast %8 : vector<16x16x4xf32> to vector<256x4xf32>
    %c0_9 = arith.constant 0 : index
    %c4 = arith.constant 4 : index
    %10 = vector.load %arg6[%c0_9, %c4] : memref<256x36xf32, #tpu.memory_space<vmem>>, vector<256x4xf32>
    tpu.vector_store %arg6[%c0_9, %c4], %9 {strides = array<i32>} : memref<256x36xf32, #tpu.memory_space<vmem>>, vector<256x4xf32>,
    %c0_10 = arith.constant 0 : index
    %c0_11 = arith.constant 0 : index
    %c2 = arith.constant 2 : index
    %c0_12 = arith.constant 0 : index
    %11 = vector.load %arg2[%c0_10, %c0_11, %c2, %c0_12] : memref<1x18x18x4xf32, #tpu.memory_space<vmem>>, vector<1x16x16x4xf32>
    %12 = vector.shape_cast %11 : vector<1x16x16x4xf32> to vector<16x16x4xf32>
    %13 = vector.shape_cast %12 : vector<16x16x4xf32> to vector<256x4xf32>
    %c0_13 = arith.constant 0 : index
    %c8 = arith.constant 8 : index
    %14 = vector.load %arg6[%c0_13, %c8] : memref<256x36xf32, #tpu.memory_space<vmem>>, vector<256x4xf32>
    tpu.vector_store %arg6[%c0_13, %c8], %13 {strides = array<i32>} : memref<256x36xf32, #tpu.memory_space<vmem>>, vector<256x4xf32>,
    %c0_14 = arith.constant 0 : index
    %c1_15 = arith.constant 1 : index
    %c0_16 = arith.constant 0 : index
    %c0_17 = arith.constant 0 : index
    %15 = vector.load %arg2[%c0_14, %c1_15, %c0_16, %c0_17] : memref<1x18x18x4xf32, #tpu.memory_space<vmem>>, vector<1x16x16x4xf32>
    %16 = vector.shape_cast %15 : vector<1x16x16x4xf32> to vector<16x16x4xf32>
    %17 = vector.shape_cast %16 : vector<16x16x4xf32> to vector<256x4xf32>
    %c0_18 = arith.constant 0 : index
    %c12 = arith.constant 12 : index
    %18 = vector.load %arg6[%c0_18, %c12] : memref<256x36xf32, #tpu.memory_space<vmem>>, vector<256x4xf32>
    tpu.vector_store %arg6[%c0_18, %c12], %17 {strides = array<i32>} : memref<256x36xf32, #tpu.memory_space<vmem>>, vector<256x4xf32>,
    %c0_19 = arith.constant 0 : index
    %c1_20 = arith.constant 1 : index
    %c1_21 = arith.constant 1 : index
    %c0_22 = arith.constant 0 : index
    %19 = vector.load %arg2[%c0_19, %c1_20, %c1_21, %c0_22] : memref<1x18x18x4xf32, #tpu.memory_space<vmem>>, vector<1x16x16x4xf32>
    %20 = vector.shape_cast %19 : vector<1x16x16x4xf32> to vector<16x16x4xf32>
    %21 = vector.shape_cast %20 : vector<16x16x4xf32> to vector<256x4xf32>
    %c0_23 = arith.constant 0 : index
    %c16 = arith.constant 16 : index
    %22 = vector.load %arg6[%c0_23, %c16] : memref<256x36xf32, #tpu.memory_space<vmem>>, vector<256x4xf32>
    tpu.vector_store %arg6[%c0_23, %c16], %21 {strides = array<i32>} : memref<256x36xf32, #tpu.memory_space<vmem>>, vector<256x4xf32>,
    %c0_24 = arith.constant 0 : index
    %c1_25 = arith.constant 1 : index
    %c2_26 = arith.constant 2 : index
    %c0_27 = arith.constant 0 : index
    %23 = vector.load %arg2[%c0_24, %c1_25, %c2_26, %c0_27] : memref<1x18x18x4xf32, #tpu.memory_space<vmem>>, vector<1x16x16x4xf32>
    %24 = vector.shape_cast %23 : vector<1x16x16x4xf32> to vector<16x16x4xf32>
    %25 = vector.shape_cast %24 : vector<16x16x4xf32> to vector<256x4xf32>
    %c0_28 = arith.constant 0 : index
    %c20 = arith.constant 20 : index
    %26 = vector.load %arg6[%c0_28, %c20] : memref<256x36xf32, #tpu.memory_space<vmem>>, vector<256x4xf32>
    tpu.vector_store %arg6[%c0_28, %c20], %25 {strides = array<i32>} : memref<256x36xf32, #tpu.memory_space<vmem>>, vector<256x4xf32>,
    %c0_29 = arith.constant 0 : index
    %c2_30 = arith.constant 2 : index
    %c0_31 = arith.constant 0 : index
    %c0_32 = arith.constant 0 : index
    %27 = vector.load %arg2[%c0_29, %c2_30, %c0_31, %c0_32] : memref<1x18x18x4xf32, #tpu.memory_space<vmem>>, vector<1x16x16x4xf32>
    %28 = vector.shape_cast %27 : vector<1x16x16x4xf32> to vector<16x16x4xf32>
    %29 = vector.shape_cast %28 : vector<16x16x4xf32> to vector<256x4xf32>
    %c0_33 = arith.constant 0 : index
    %c24 = arith.constant 24 : index
    %30 = vector.load %arg6[%c0_33, %c24] : memref<256x36xf32, #tpu.memory_space<vmem>>, vector<256x4xf32>
    tpu.vector_store %arg6[%c0_33, %c24], %29 {strides = array<i32>} : memref<256x36xf32, #tpu.memory_space<vmem>>, vector<256x4xf32>,
    %c0_34 = arith.constant 0 : index
    %c2_35 = arith.constant 2 : index
    %c1_36 = arith.constant 1 : index
    %c0_37 = arith.constant 0 : index
    %31 = vector.load %arg2[%c0_34, %c2_35, %c1_36, %c0_37] : memref<1x18x18x4xf32, #tpu.memory_space<vmem>>, vector<1x16x16x4xf32>
    %32 = vector.shape_cast %31 : vector<1x16x16x4xf32> to vector<16x16x4xf32>
    %33 = vector.shape_cast %32 : vector<16x16x4xf32> to vector<256x4xf32>
    %c0_38 = arith.constant 0 : index
    %c28 = arith.constant 28 : index
    %34 = vector.load %arg6[%c0_38, %c28] : memref<256x36xf32, #tpu.memory_space<vmem>>, vector<256x4xf32>
    tpu.vector_store %arg6[%c0_38, %c28], %33 {strides = array<i32>} : memref<256x36xf32, #tpu.memory_space<vmem>>, vector<256x4xf32>,
    %c0_39 = arith.constant 0 : index
    %c2_40 = arith.constant 2 : index
    %c2_41 = arith.constant 2 : index
    %c0_42 = arith.constant 0 : index
    %35 = vector.load %arg2[%c0_39, %c2_40, %c2_41, %c0_42] : memref<1x18x18x4xf32, #tpu.memory_space<vmem>>, vector<1x16x16x4xf32>
    %36 = vector.shape_cast %35 : vector<1x16x16x4xf32> to vector<16x16x4xf32>
    %37 = vector.shape_cast %36 : vector<16x16x4xf32> to vector<256x4xf32>
    %c0_43 = arith.constant 0 : index
    %c32 = arith.constant 32 : index
    %38 = vector.load %arg6[%c0_43, %c32] : memref<256x36xf32, #tpu.memory_space<vmem>>, vector<256x4xf32>
    tpu.vector_store %arg6[%c0_43, %c32], %37 {strides = array<i32>} : memref<256x36xf32, #tpu.memory_space<vmem>>, vector<256x4xf32>,
    %c0_44 = arith.constant 0 : index
    %c0_45 = arith.constant 0 : index
    %39 = vector.load %arg6[%c0_44, %c0_45] : memref<256x36xf32, #tpu.memory_space<vmem>>, vector<256x36xf32>
    %c0_46 = arith.constant 0 : index
    %c0_47 = arith.constant 0 : index
    %40 = vector.load %arg3[%c0_46, %c0_47] : memref<36x128xf32, #tpu.memory_space<vmem>>, vector<36x128xf32>
    %cst = arith.constant dense<0.000000e+00> : vector<256x128xf32>
    %41 = tpu.matmul %39, %40, %cst {dimension_numbers = #tpu.dot_dimension_numbers<[1], [0], [0], [1], [0, 0, 1, 1], [], []>} : vector<256x36xf32>, vector<36x128xf32>, vector<256x128xf32> -> vector<256x128xf32>
    %42 = vector.shape_cast %41 : vector<256x128xf32> to vector<32x8x128xf32>
    %c0_48 = arith.constant 0 : index
    %c0_49 = arith.constant 0 : index
    %c0_50 = arith.constant 0 : index
    %43 = vector.load %arg4[%c0_48, %c0_49, %c0_50] : memref<1x8x128xf32, #tpu.memory_space<vmem>>, vector<1x8x128xf32>
    %44 = vector.shape_cast %43 : vector<1x8x128xf32> to vector<8x128xf32>
    %cst_51 = arith.constant dense<0.000000e+00> : vector<8x128xf32>
    %45 = vector.multi_reduction <add>, %42, %cst_51 [0] : vector<32x8x128xf32> to vector<8x128xf32>
    %46 = arith.addf %44, %45 : vector<8x128xf32>
    %c0_52 = arith.constant 0 : index
    %c0_53 = arith.constant 0 : index
    %c0_54 = arith.constant 0 : index
    %47 = vector.load %arg4[%c0_52, %c0_53, %c0_54] : memref<1x8x128xf32, #tpu.memory_space<vmem>>, vector<1x8x128xf32>
    %48 = vector.shape_cast %47 : vector<1x8x128xf32> to vector<8x128xf32>
    %49 = vector.shape_cast %46 : vector<8x128xf32> to vector<1x8x128xf32>
    tpu.vector_store %arg4[%c0_52, %c0_53, %c0_54], %49 {strides = array<i32>} : memref<1x8x128xf32, #tpu.memory_space<vmem>>, vector<1x8x128xf32>,
    %c0_55 = arith.constant 0 : index
    %c0_56 = arith.constant 0 : index
    %c0_57 = arith.constant 0 : index
    %50 = vector.load %arg5[%c0_55, %c0_56, %c0_57] : memref<1x8x128xf32, #tpu.memory_space<vmem>>, vector<1x8x128xf32>
    %51 = vector.shape_cast %50 : vector<1x8x128xf32> to vector<8x128xf32>
    %52 = arith.mulf %42, %42 : vector<32x8x128xf32>
    %cst_58 = arith.constant dense<0.000000e+00> : vector<8x128xf32>
    %53 = vector.multi_reduction <add>, %52, %cst_58 [0] : vector<32x8x128xf32> to vector<8x128xf32>
    %54 = arith.addf %51, %53 : vector<8x128xf32>
    %c0_59 = arith.constant 0 : index
    %c0_60 = arith.constant 0 : index
    %c0_61 = arith.constant 0 : index
    %55 = vector.load %arg5[%c0_59, %c0_60, %c0_61] : memref<1x8x128xf32, #tpu.memory_space<vmem>>, vector<1x8x128xf32>
    %56 = vector.shape_cast %55 : vector<1x8x128xf32> to vector<8x128xf32>
    %57 = vector.shape_cast %54 : vector<8x128xf32> to vector<1x8x128xf32>
    tpu.vector_store %arg5[%c0_59, %c0_60, %c0_61], %57 {strides = array<i32>} : memref<1x8x128xf32, #tpu.memory_space<vmem>>, vector<1x8x128xf32>,
    return
  }
  func.func @transform_0(%arg0: i32, %arg1: i32) -> (i32, i32, i32, i32) {
    %c1_i32 = arith.constant 1 : i32
    %0 = arith.muli %arg0, %c1_i32 : i32
    %1 = arith.addi %0, %arg1 : i32
    %c0_i32 = arith.constant 0 : i32
    %c0_i32_0 = arith.constant 0 : i32
    %c0_i32_1 = arith.constant 0 : i32
    %c0_i32_2 = arith.constant 0 : i32
    return %1, %c0_i32, %c0_i32_0, %c0_i32_1 : i32, i32, i32, i32
  }
  func.func @transform_1(%arg0: i32, %arg1: i32) -> (i32, i32) {
    %c0_i32 = arith.constant 0 : i32
    %c0_i32_0 = arith.constant 0 : i32
    %c0_i32_1 = arith.constant 0 : i32
    return %c0_i32, %c0_i32_0 : i32, i32
  }
  func.func @transform_2(%arg0: i32, %arg1: i32) -> (i32, i32, i32) {
    %c0_i32 = arith.constant 0 : i32
    %c0_i32_0 = arith.constant 0 : i32
    %c0_i32_1 = arith.constant 0 : i32
    return %arg0, %c0_i32, %c0_i32_0 : i32, i32, i32
  }
  func.func @transform_3(%arg0: i32, %arg1: i32) -> (i32, i32, i32) {
    %c0_i32 = arith.constant 0 : i32
    %c0_i32_0 = arith.constant 0 : i32
    %c0_i32_1 = arith.constant 0 : i32
    return %arg0, %c0_i32, %c0_i32_0 : i32, i32, i32
  }
}

</mosaic_0001>

<bundles_post_ra>
// kernel: conv_block_forward.3
= control target key start
LH: loop header
LB: loop body
LE: loop exit
PB: predicated region body
PF: predicated region fallthrough
CT: control target
= control target key end

     0   :  { %s2717_s12 = smov 0   ;;  %s3806_s0 = inlined_call_operand.vmem [shape: f32[2,18,18,4], index: 0, kind: input, shape index: {}]   ;;  %s3807_s1 = inlined_call_operand.vmem [shape: f32[36,128], index: 1, kind: input, shape index: {}]   ;;  %s3808_s2 = inlined_call_operand.vmem [shape: f32[1,128], index: 2, kind: input, shape index: {}]   ;;  %s3809_s3 = inlined_call_operand.vmem [shape: f32[2,8,8,128], index: 3, kind: output, shape index: {}]  }
   0x1 LB: > { %s2318_s13 = sadd.s32 4294967295, %s2687_s12   ;;  %p2322_p0 = scmp.ge.s32.totalorder %s2687_s12, 1  ;;  %s2687_s12 = sphi %s2717_s12, %s13_s12  }
   0x2   : > { %p137_p1 = scmp.lt.s32.totalorder %s2687_s12, 3 }
   0x4   : > { %p138_p2 = pnand %p2322_p0, %p137_p1 }
   0x6   : > { %141 = sbr.rel (%p138_p2) target bundleno = 882 (0x372), region = 32 }
   0xd   : > { %p161_p3 = scmp.lt.s32.totalorder %s2318_s13, 1  ;;  %s2689_s18 = smov 4   ;;  %vm203_vm0 = vcmask 31744   ;;  %vm396_vm1 = vcmask 64544   ;;  %vm589_vm2 = vcmask 97344   ;;  %vm1923_vm3 = vcmask 1043456  }
   0xe   : > { %s2690_s19 = smov 8   ;;  %s2691_s20 = smov 12   ;;  %vm783_vm4 = vcmask 130144   ;;  %vm976_vm5 = vcmask 162944   ;;  %vm1169_vm6 = vcmask 195744   ;;  %vm1363_vm7 = vcmask 228544  }
   0xf   : > { %s3830_s13 = smov (!%p161_p3, %s2318_s13), 1  ;;  %s2692_s21 = smov 16   ;;  %vm1556_vm8 = vcmask 261344   ;;  %vm1749_vm9 = vcmask 294144   ;;  %vm1826_vm10 = vcmask 293888  }
  0x10   : > { %s2664_s14 = smul.u32 432, %s3830_s13  ;;  %s2693_s22 = smov 20  }
  0x11   : > { %s2694_s23 = smov 24   ;;  %s2695_s24 = smov 28  }
  0x12   : > { %s2731_s17 = scalar_lea.vmem %s3806_s0, %s2664_s14  ;;  %s2696_s6 = smov 32  }
  0x13   : > { %v2734_v0 = vld [vmem:[%s2731_s17 + $0x19] sm:$0xff]  ;;  %v236_v1 = vld [vmem:[%s2731_s17 + $0x1] sm:$0xff]  ;;  %v237_v3 = vld [vmem:[%s2731_s17 + $0x9] sm:$0xff]  ;;  %s2554_s11 = sshll.u32 %s3830_s13, 6 }
  0x14   : > { %304 = vrot.lane.b32.xlu1 %v2734_v0, %s2689_s18  ;;  %300 = vrot.lane.b32.xlu0 %v236_v1, %s2689_s18  ;;  %v2741_v2 = vld [vmem:[%s2731_s17 + $0x21] sm:$0xff]  ;;  %v2748_v4 = vld [vmem:[%s2731_s17 + $0x39] sm:$0xff]  ;;  %s3763_s16 = scalar_lea.vmem %s3809_s3, %s2554_s11 }
  0x15   : > { %v2751_v5 = vld [vmem:[%s2731_s17 + $0x31] sm:$0xff]  ;;  %v2761_v7 = vld [vmem:[%s2731_s17 + $0x49] sm:$0xff]  ;;  %v244_v9 = vld [vmem:[%s2731_s17 + $0x61] sm:$0xff] }
  0x16   : > { %v2758_v6 = vld [vmem:[%s2731_s17 + $0x51] sm:$0xff]  ;;  %v245_v8 = vld [vmem:[%s2731_s17 + $0x69] sm:$0xff]  ;;  %v247_v10 = vld [vmem:[%s2731_s17 + $0x81] sm:$0xff] }
  0x17   : > { %v246_v11 = vld [vmem:[%s2731_s17 + $0x79] sm:$0xff]  ;;  %v248_v15 = vld [vmem:[%s2731_s17 + $0x91] sm:$0xff]  ;;  %v172_v17 = vld [vmem:[%s2731_s17 + $0x8] sm:$0xff] }
  0x18   : > { %306 = vrot.lane.b32.xlu1 %v2741_v2, %s2689_s18  ;;  %302 = vrot.lane.b32.xlu0 %v237_v3, %s2689_s18  ;;  %v2776_v12 = vld [vmem:[%s2731_s17 + $0x18] sm:$0xff]  ;;  %v171_v13 = vld [vmem:[%s2731_s17] sm:$0xff]  ;;  %205 = vst.msk [vmem:[#allocation2 + $0x8] sm:$0xff] %vm203_vm0, %v172_v17 }
  0x19   : > { %v249_v14 = vld [vmem:[%s2731_s17 + $0x99] sm:$0xff]  ;;  %206 = vst.msk [vmem:[#allocation2 + $0x10] sm:$0xff] %vm203_vm0, %v2776_v12  ;;  %204 = vst.msk [vmem:[#allocation2] sm:$0xff] %vm203_vm0, %v171_v13  ;;  %v251_v18 = vld [vmem:[%s2731_s17 + $0xb1] sm:$0xff] }
  0x1a   : > { %v2785_v16 = vld [vmem:[%s2731_s17 + $0x20] sm:$0xff]  ;;  %v2793_v19 = vld [vmem:[%s2731_s17 + $0x38] sm:$0xff]  ;;  %v2796_v20 = vld [vmem:[%s2731_s17 + $0x30] sm:$0xff] }
  0x1b   : > { %207 = vst.msk [vmem:[#allocation2 + $0x18] sm:$0xff] %vm203_vm0, %v2785_v16  ;;  %v250_v21 = vld [vmem:[%s2731_s17 + $0xa9] sm:$0xff]  ;;  %209 = vst.msk [vmem:[#allocation2 + $0x28] sm:$0xff] %vm203_vm0, %v2793_v19  ;;  %v2817_v25 = vld [vmem:[%s2731_s17 + $0x60] sm:$0xff] }
  0x1c   : > { %310 = vrot.lane.b32.xlu1 %v2748_v4, %s2689_s18  ;;  %308 = vrot.lane.b32.xlu0 %v2751_v5, %s2689_s18  ;;  %208 = vst.msk [vmem:[#allocation2 + $0x20] sm:$0xff] %vm203_vm0, %v2796_v20  ;;  %v2806_v22 = vld [vmem:[%s2731_s17 + $0x50] sm:$0xff]  ;;  %v2811_v23 = vld [vmem:[%s2731_s17 + $0x48] sm:$0xff]  ;;  %212 = vst.msk [vmem:[#allocation2 + $0x40] sm:$0xff] %vm203_vm0, %v2817_v25 }
  0x1d   : > { %211 = vst.msk [vmem:[#allocation2 + $0x38] sm:$0xff] %vm203_vm0, %v2806_v22  ;;  %v2814_v24 = vld [vmem:[%s2731_s17 + $0x68] sm:$0xff]  ;;  %210 = vst.msk [vmem:[#allocation2 + $0x30] sm:$0xff] %vm203_vm0, %v2811_v23  ;;  %v2826_v26 = vld [vmem:[%s2731_s17 + $0x80] sm:$0xff] }
  0x1e   : > { %213 = vst.msk [vmem:[#allocation2 + $0x48] sm:$0xff] %vm203_vm0, %v2814_v24  ;;  %v2829_v27 = vld [vmem:[%s2731_s17 + $0x78] sm:$0xff]  ;;  %v253_v29 = vld [vmem:[%s2731_s17 + $0xc9] sm:$0xff]  ;;  %v252_v30 = vld [vmem:[%s2731_s17 + $0xc1] sm:$0xff] }
  0x1f   : > { %v2832_v28 = vld [vmem:[%s2731_s17 + $0x98] sm:$0xff]  ;;  %215 = vst.msk [vmem:[#allocation2 + $0x58] sm:$0xff] %vm203_vm0, %v2826_v26  ;;  %214 = vst.msk [vmem:[#allocation2 + $0x50] sm:$0xff] %vm203_vm0, %v2829_v27  ;;  %v2843_v31 = vld [vmem:[%s2731_s17 + $0x90] sm:$0xff] }
  0x20   : > { %314 = vrot.lane.b32.xlu1 %v2758_v6, %s2689_s18  ;;  %312 = vrot.lane.b32.xlu0 %v2761_v7, %s2689_s18  ;;  %217 = vst.msk [vmem:[#allocation2 + $0x68] sm:$0xff] %vm203_vm0, %v2832_v28  ;;  %v2846_v32 = vld [vmem:[%s2731_s17 + $0xb0] sm:$0xff]  ;;  %v2849_v33 = vld [vmem:[%s2731_s17 + $0xa8] sm:$0xff]  ;;  %216 = vst.msk [vmem:[#allocation2 + $0x60] sm:$0xff] %vm203_vm0, %v2843_v31 }
  0x21   : > { %219 = vst.msk [vmem:[#allocation2 + $0x78] sm:$0xff] %vm203_vm0, %v2846_v32  ;;  %218 = vst.msk [vmem:[#allocation2 + $0x70] sm:$0xff] %vm203_vm0, %v2849_v33  ;;  %v2860_v34 = vld [vmem:[%s2731_s17 + $0xc8] sm:$0xff]  ;;  %v2863_v35 = vld [vmem:[%s2731_s17 + $0xc0] sm:$0xff] }
  0x22   : > { %221 = vst.msk [vmem:[#allocation2 + $0x88] sm:$0xff] %vm203_vm0, %v2860_v34  ;;  %220 = vst.msk [vmem:[#allocation2 + $0x80] sm:$0xff] %vm203_vm0, %v2863_v35  ;;  %v2870_v36 = vld [vmem:[%s2731_s17 + $0xe0] sm:$0xff]  ;;  %v2873_v37 = vld [vmem:[%s2731_s17 + $0xd8] sm:$0xff] }
  0x23   : > { %v2876_v38 = vld [vmem:[%s2731_s17 + $0xf8] sm:$0xff]  ;;  %223 = vst.msk [vmem:[#allocation2 + $0x98] sm:$0xff] %vm203_vm0, %v2870_v36  ;;  %222 = vst.msk [vmem:[#allocation2 + $0x90] sm:$0xff] %vm203_vm0, %v2873_v37  ;;  %v2885_v39 = vld [vmem:[%s2731_s17 + $0xf0] sm:$0xff] }
  0x24   : > { %318 = vrot.lane.b32.xlu1 %v245_v8, %s2689_s18  ;;  %316 = vrot.lane.b32.xlu0 %v244_v9, %s2689_s18  ;;  %225 = vst.msk [vmem:[#allocation2 + $0xa8] sm:$0xff] %vm203_vm0, %v2876_v38  ;;  %v2888_v40 = vld [vmem:[%s2731_s17 + $0x110] sm:$0xff]  ;;  %v2891_v41 = vld [vmem:[%s2731_s17 + $0x108] sm:$0xff]  ;;  %224 = vst.msk [vmem:[#allocation2 + $0xa0] sm:$0xff] %vm203_vm0, %v2885_v39 }
  0x25   : > { %227 = vst.msk [vmem:[#allocation2 + $0xb8] sm:$0xff] %vm203_vm0, %v2888_v40  ;;  %226 = vst.msk [vmem:[#allocation2 + $0xb0] sm:$0xff] %vm203_vm0, %v2891_v41  ;;  %v2902_v42 = vld [vmem:[%s2731_s17 + $0xe1] sm:$0xff]  ;;  %v2905_v43 = vld [vmem:[%s2731_s17 + $0xd9] sm:$0xff] }
  0x26   : > { %v2908_v44 = vld [vmem:[%s2731_s17 + $0x128] sm:$0xff]  ;;  %v2911_v45 = vld [vmem:[%s2731_s17 + $0x120] sm:$0xff]  ;;  %v2925_v47 = vld [vmem:[%s2731_s17 + $0xf1] sm:$0xff] }
  0x27   : > { %229 = vst.msk [vmem:[#allocation2 + $0xc8] sm:$0xff] %vm203_vm0, %v2908_v44  ;;  %228 = vst.msk [vmem:[#allocation2 + $0xc0] sm:$0xff] %vm203_vm0, %v2911_v45  ;;  %v2922_v46 = vld [vmem:[%s2731_s17 + $0xf9] sm:$0xff]  ;;  %v2942_v50 = vld [vmem:[%s2731_s17 + $0x111] sm:$0xff] }
  0x28   : > { %322 = vrot.lane.b32.xlu1 %v247_v10, %s2689_s18  ;;  %320 = vrot.lane.b32.xlu0 %v246_v11, %s2689_s18  ;;  %v2928_v48 = vld [vmem:[%s2731_s17 + $0x140] sm:$0xff]  ;;  %v2931_v49 = vld [vmem:[%s2731_s17 + $0x138] sm:$0xff] }
  0x29   : > { %231 = vst.msk [vmem:[#allocation2 + $0xd8] sm:$0xff] %vm203_vm0, %v2928_v48  ;;  %230 = vst.msk [vmem:[#allocation2 + $0xd0] sm:$0xff] %vm203_vm0, %v2931_v49  ;;  %v2945_v51 = vld [vmem:[%s2731_s17 + $0x109] sm:$0xff]  ;;  %v2948_v52 = vld [vmem:[%s2731_s17 + $0x158] sm:$0xff] }
  0x2a   : > { %v2951_v53 = vld [vmem:[%s2731_s17 + $0x150] sm:$0xff]  ;;  %233 = vst.msk [vmem:[#allocation2 + $0xe8] sm:$0xff] %vm203_vm0, %v2948_v52  ;;  %v2965_v55 = vld [vmem:[%s2731_s17 + $0x121] sm:$0xff]  ;;  %v262_v59 = vld [vmem:[%s2731_s17 + $0x139] sm:$0xff] }
  0x2b   : > { %232 = vst.msk [vmem:[#allocation2 + $0xe0] sm:$0xff] %vm203_vm0, %v2951_v53  ;;  %v2962_v54 = vld [vmem:[%s2731_s17 + $0x129] sm:$0xff]  ;;  %v263_v58 = vld [vmem:[%s2731_s17 + $0x141] sm:$0xff]  ;;  %v265_v60 = vld [vmem:[%s2731_s17 + $0x159] sm:$0xff] }
  0x2c   : > { %326 = vrot.lane.b32.xlu1 %v249_v14, %s2689_s18  ;;  %324 = vrot.lane.b32.xlu0 %v248_v15, %s2689_s18  ;;  %v202_v56 = vld [vmem:[%s2731_s17 + $0x170] sm:$0xff]  ;;  %v2969_v57 = vld [vmem:[%s2731_s17 + $0x168] sm:$0xff] }
  0x2d   : > { %3819 = vst [vmem:[#allocation4_spill] sm:$0xff] %v2969_v57  ;;  %235 = vst.msk [vmem:[#allocation2 + $0xf8] sm:$0xff] %vm203_vm0, %v202_v56  ;;  %v264_v61 = vld [vmem:[%s2731_s17 + $0x151] sm:$0xff]  ;;  %v266_v63 = vld [vmem:[%s2731_s17 + $0x169] sm:$0xff] }
  0x2e   : > { %234 = vst.msk [vmem:[#allocation2 + $0xf0] sm:$0xff] %vm203_vm0, %v2969_v57  ;;  %v267_v62 = vld [vmem:[%s2731_s17 + $0x171] sm:$0xff]  ;;  %v429_v3 = vld [vmem:[%s2731_s17 + $0x2] sm:$0xff]  ;;  %v2998_v9 = vld [vmem:[%s2731_s17 + $0x1a] sm:$0xff] }
  0x2f   : > { %v430_v1 = vld [vmem:[%s2731_s17 + $0xa] sm:$0xff]  ;;  %v2995_v8 = vld [vmem:[%s2731_s17 + $0x22] sm:$0xff]  ;;  %v3005_v10 = vld [vmem:[%s2731_s17 + $0x3a] sm:$0xff] }
  0x30   : > { %330 = vrot.lane.b32.xlu1 %v251_v18, %s2689_s18  ;;  %328 = vrot.lane.b32.xlu0 %v250_v21, %s2689_s18  ;;  %v3008_v11 = vld [vmem:[%s2731_s17 + $0x32] sm:$0xff]  ;;  %v3018_v14 = vld [vmem:[%s2731_s17 + $0x4a] sm:$0xff] }
  0x31   : > { %v3015_v13 = vld [vmem:[%s2731_s17 + $0x52] sm:$0xff]  ;;  %v3025_v15 = vld [vmem:[%s2731_s17 + $0x6a] sm:$0xff]  ;;  %v3028_v17 = vld [vmem:[%s2731_s17 + $0x62] sm:$0xff] }
  0x32   : > { %3820 = vst [vmem:[#allocation5_spill] sm:$0xff] %v3025_v15  ;;  %3821 = vst [vmem:[#allocation6_spill] sm:$0xff] %v3028_v17  ;;  %v440_v18 = vld [vmem:[%s2731_s17 + $0x82] sm:$0xff]  ;;  %v439_v21 = vld [vmem:[%s2731_s17 + $0x7a] sm:$0xff] }
  0x33   : > { %v444_v56 = vld [vmem:[%s2731_s17 + $0xb2] sm:$0xff] }
  0x34   : > { %334 = vrot.lane.b32.xlu1 %v253_v29, %s2689_s18  ;;  %332 = vrot.lane.b32.xlu0 %v252_v30, %s2689_s18  ;;  %v442_v29 = vld [vmem:[%s2731_s17 + $0x9a] sm:$0xff]  ;;  %v441_v30 = vld [vmem:[%s2731_s17 + $0x92] sm:$0xff] }
  0x35   : > { %v457_v57 = vld [vmem:[%s2731_s17 + $0x152] sm:$0xff] }
  0x38   : > { %338 = vrot.lane.b32.xlu1 %v2902_v42, %s2689_s18  ;;  %336 = vrot.lane.b32.xlu0 %v2905_v43, %s2689_s18 }
  0x3c   : > { %342 = vrot.lane.b32.xlu1 %v2922_v46, %s2689_s18  ;;  %340 = vrot.lane.b32.xlu0 %v2925_v47, %s2689_s18 }
  0x40   : > { %346 = vrot.lane.b32.xlu1 %v2942_v50, %s2689_s18  ;;  %344 = vrot.lane.b32.xlu0 %v2945_v51, %s2689_s18 }
  0x44   : > { %350 = vrot.lane.b32.xlu1 %v2962_v54, %s2689_s18  ;;  %348 = vrot.lane.b32.xlu0 %v2965_v55, %s2689_s18 }
  0x48   : > { %354 = vrot.lane.b32.xlu1 %v263_v58, %s2689_s18  ;;  %352 = vrot.lane.b32.xlu0 %v262_v59, %s2689_s18  ;;  %v443_v58 = vld [vmem:[%s2731_s17 + $0xaa] sm:$0xff] }
  0x49   : > { %v446_v59 = vld [vmem:[%s2731_s17 + $0xca] sm:$0xff] }
  0x4c   : > { %358 = vrot.lane.b32.xlu1 %v265_v60, %s2689_s18  ;;  %356 = vrot.lane.b32.xlu0 %v264_v61, %s2689_s18  ;;  %v445_v60 = vld [vmem:[%s2731_s17 + $0xc2] sm:$0xff] }
  0x4d   : > { %v3051_v61 = vld [vmem:[%s2731_s17 + $0xe2] sm:$0xff] }
  0x50   : > { %362 = vrot.lane.b32.xlu1 %v267_v62, %s2689_s18  ;;  %360 = vrot.lane.b32.xlu0 %v266_v63, %s2689_s18  ;;  %v3054_v62 = vld [vmem:[%s2731_s17 + $0xda] sm:$0xff] }
  0x51   : > { %v3061_v63 = vld [vmem:[%s2731_s17 + $0xfa] sm:$0xff] }
  0x54   : > { %495 = vrot.lane.b32.xlu1 %v430_v1, %s2690_s19  ;;  %493 = vrot.lane.b32.xlu0 %v429_v3, %s2690_s19  ;;  %v3064_v1 = vld [vmem:[%s2731_s17 + $0xf2] sm:$0xff] }
  0x55   : > { %v3071_v3 = vld [vmem:[%s2731_s17 + $0x112] sm:$0xff] }
  0x58   : > { %499 = vrot.lane.b32.xlu1 %v2995_v8, %s2690_s19  ;;  %497 = vrot.lane.b32.xlu0 %v2998_v9, %s2690_s19 }
  0x5c   : > { %503 = vrot.lane.b32.xlu1 %v3005_v10, %s2690_s19  ;;  %501 = vrot.lane.b32.xlu0 %v3008_v11, %s2690_s19 }
  0x60   : > { %507 = vrot.lane.b32.xlu1 %v3015_v13, %s2690_s19  ;;  %505 = vrot.lane.b32.xlu0 %v3018_v14, %s2690_s19 }
  0x64   : > { %511 = vrot.lane.b32.xlu1 %v3025_v15, %s2690_s19  ;;  %509 = vrot.lane.b32.xlu0 %v3028_v17, %s2690_s19  ;;  %v460_v17 = vld [vmem:[%s2731_s17 + $0x172] sm:$0xff] }
  0x68   : > { %515 = vrot.lane.b32.xlu1 %v440_v18, %s2690_s19  ;;  %513 = vrot.lane.b32.xlu0 %v439_v21, %s2690_s19  ;;  %v3074_v18 = vld [vmem:[%s2731_s17 + $0x10a] sm:$0xff] }
  0x69   : > { %v3081_v21 = vld [vmem:[%s2731_s17 + $0x12a] sm:$0xff] }
  0x6a   : > { %3822 = vst [vmem:[#allocation7_spill] sm:$0xff] %v3081_v21 }
  0x6c   : > { %519 = vrot.lane.b32.xlu1 %v442_v29, %s2690_s19  ;;  %517 = vrot.lane.b32.xlu0 %v441_v30, %s2690_s19  ;;  %v3084_v29 = vld [vmem:[%s2731_s17 + $0x122] sm:$0xff] }
  0x6d   : > { %3823 = vst [vmem:[#allocation8_spill] sm:$0xff] %v3084_v29  ;;  %v456_v30 = vld [vmem:[%s2731_s17 + $0x142] sm:$0xff] }
  0x70   : > { %523 = vrot.lane.b32.xlu1 %v444_v56, %s2690_s19  ;;  %521 = vrot.lane.b32.xlu0 %v443_v58, %s2690_s19  ;;  %v455_v56 = vld [vmem:[%s2731_s17 + $0x13a] sm:$0xff] }
  0x74   : > { %527 = vrot.lane.b32.xlu1 %v446_v59, %s2690_s19  ;;  %525 = vrot.lane.b32.xlu0 %v445_v60, %s2690_s19  ;;  %v458_v60 = vld [vmem:[%s2731_s17 + $0x15a] sm:$0xff] }
  0x78   : > { %531 = vrot.lane.b32.xlu1 %v3051_v61, %s2690_s19  ;;  %529 = vrot.lane.b32.xlu0 %v3054_v62, %s2690_s19 }
  0x7c   : > { %535 = vrot.lane.b32.xlu1 %v3061_v63, %s2690_s19  ;;  %533 = vrot.lane.b32.xlu0 %v3064_v1, %s2690_s19 }
  0x80   : > { %539 = vrot.lane.b32.xlu1 %v3071_v3, %s2690_s19  ;;  %537 = vrot.lane.b32.xlu0 %v3074_v18, %s2690_s19 }
  0x84   : > { %543 = vrot.lane.b32.xlu1 %v3081_v21, %s2690_s19  ;;  %541 = vrot.lane.b32.xlu0 %v3084_v29, %s2690_s19 }
  0x86   : > { %v305_v58 = vpop.permute.xlu1 %304  ;;  %v301_v59 = vpop.permute.xlu0 %300 }
  0x87   : > { %399 = vst.msk [vmem:[#allocation2 + $0x10] sm:$0xff] %vm396_vm1, %v305_v58  ;;  %397 = vst.msk [vmem:[#allocation2] sm:$0xff] %vm396_vm1, %v301_v59  ;;  %v459_v58 = vld [vmem:[%s2731_s17 + $0x16a] sm:$0xff] }
  0x88   : > { %547 = vrot.lane.b32.xlu1 %v456_v30, %s2690_s19  ;;  %545 = vrot.lane.b32.xlu0 %v455_v56, %s2690_s19 }
  0x8a   : > { %v307_v15 = vpop.permute.xlu1 %306  ;;  %v303_v21 = vpop.permute.xlu0 %302 }
  0x8b   : > { %400 = vst.msk [vmem:[#allocation2 + $0x18] sm:$0xff] %vm396_vm1, %v307_v15  ;;  %398 = vst.msk [vmem:[#allocation2 + $0x8] sm:$0xff] %vm396_vm1, %v303_v21 }
  0x8c   : > { %551 = vrot.lane.b32.xlu1 %v458_v60, %s2690_s19  ;;  %549 = vrot.lane.b32.xlu0 %v457_v57, %s2690_s19 }
  0x8e   : > { %v311_v29 = vpop.permute.xlu1 %310  ;;  %v309_v59 = vpop.permute.xlu0 %308 }
  0x8f   : > { %402 = vst.msk [vmem:[#allocation2 + $0x28] sm:$0xff] %vm396_vm1, %v311_v29  ;;  %401 = vst.msk [vmem:[#allocation2 + $0x20] sm:$0xff] %vm396_vm1, %v309_v59 }
  0x90   : > { %555 = vrot.lane.b32.xlu1 %v460_v17, %s2690_s19  ;;  %553 = vrot.lane.b32.xlu0 %v459_v58, %s2690_s19 }
  0x92   : > { %v315_v30 = vpop.permute.xlu1 %314  ;;  %v313_v15 = vpop.permute.xlu0 %312 }
  0x93   : > { %404 = vst.msk [vmem:[#allocation2 + $0x38] sm:$0xff] %vm396_vm1, %v315_v30  ;;  %403 = vst.msk [vmem:[#allocation2 + $0x30] sm:$0xff] %vm396_vm1, %v313_v15 }
  0x94   : > { %689 = vrot.lane.b32.xlu1 %v2785_v16, %s2691_s20  ;;  %687 = vrot.lane.b32.xlu0 %v2776_v12, %s2691_s20 }
  0x96   : > { %v319_v57 = vpop.permute.xlu1 %318  ;;  %v317_v21 = vpop.permute.xlu0 %316 }
  0x97   : > { %406 = vst.msk [vmem:[#allocation2 + $0x48] sm:$0xff] %vm396_vm1, %v319_v57  ;;  %405 = vst.msk [vmem:[#allocation2 + $0x40] sm:$0xff] %vm396_vm1, %v317_v21 }
  0x98   : > { %693 = vrot.lane.b32.xlu1 %v2793_v19, %s2691_s20  ;;  %691 = vrot.lane.b32.xlu0 %v2796_v20, %s2691_s20 }
  0x9a   : > { %v323_v17 = vpop.permute.xlu1 %322  ;;  %v321_v29 = vpop.permute.xlu0 %320 }
  0x9b   : > { %408 = vst.msk [vmem:[#allocation2 + $0x58] sm:$0xff] %vm396_vm1, %v323_v17  ;;  %407 = vst.msk [vmem:[#allocation2 + $0x50] sm:$0xff] %vm396_vm1, %v321_v29 }
  0x9c   : > { %697 = vrot.lane.b32.xlu1 %v2806_v22, %s2691_s20  ;;  %695 = vrot.lane.b32.xlu0 %v2811_v23, %s2691_s20 }
  0x9e   : > { %v327_v12 = vpop.permute.xlu1 %326  ;;  %v325_v16 = vpop.permute.xlu0 %324 }
  0x9f   : > { %410 = vst.msk [vmem:[#allocation2 + $0x68] sm:$0xff] %vm396_vm1, %v327_v12  ;;  %409 = vst.msk [vmem:[#allocation2 + $0x60] sm:$0xff] %vm396_vm1, %v325_v16 }
  0xa0   : > { %701 = vrot.lane.b32.xlu1 %v2814_v24, %s2691_s20  ;;  %699 = vrot.lane.b32.xlu0 %v2817_v25, %s2691_s20 }
  0xa2   : > { %v331_v56 = vpop.permute.xlu1 %330  ;;  %v329_v60 = vpop.permute.xlu0 %328 }
  0xa3   : > { %412 = vst.msk [vmem:[#allocation2 + $0x78] sm:$0xff] %vm396_vm1, %v331_v56  ;;  %411 = vst.msk [vmem:[#allocation2 + $0x70] sm:$0xff] %vm396_vm1, %v329_v60 }
  0xa4   : > { %705 = vrot.lane.b32.xlu1 %v2826_v26, %s2691_s20  ;;  %703 = vrot.lane.b32.xlu0 %v2829_v27, %s2691_s20 }
  0xa6   : > { %v335_v58 = vpop.permute.xlu1 %334  ;;  %v333_v59 = vpop.permute.xlu0 %332 }
  0xa7   : > { %414 = vst.msk [vmem:[#allocation2 + $0x88] sm:$0xff] %vm396_vm1, %v335_v58  ;;  %413 = vst.msk [vmem:[#allocation2 + $0x80] sm:$0xff] %vm396_vm1, %v333_v59 }
  0xa8   : > { %709 = vrot.lane.b32.xlu1 %v2832_v28, %s2691_s20  ;;  %707 = vrot.lane.b32.xlu0 %v2843_v31, %s2691_s20 }
  0xaa   : > { %v339_v30 = vpop.permute.xlu1 %338  ;;  %v337_v15 = vpop.permute.xlu0 %336 }
  0xab   : > { %416 = vst.msk [vmem:[#allocation2 + $0x98] sm:$0xff] %vm396_vm1, %v339_v30  ;;  %415 = vst.msk [vmem:[#allocation2 + $0x90] sm:$0xff] %vm396_vm1, %v337_v15 }
  0xac   : > { %713 = vrot.lane.b32.xlu1 %v2846_v32, %s2691_s20  ;;  %711 = vrot.lane.b32.xlu0 %v2849_v33, %s2691_s20 }
  0xae   : > { %v343_v57 = vpop.permute.xlu1 %342  ;;  %v341_v21 = vpop.permute.xlu0 %340 }
  0xaf   : > { %418 = vst.msk [vmem:[#allocation2 + $0xa8] sm:$0xff] %vm396_vm1, %v343_v57  ;;  %417 = vst.msk [vmem:[#allocation2 + $0xa0] sm:$0xff] %vm396_vm1, %v341_v21  ;;  %v1814_v57 = vld [vmem:[%s3807_s1] sm:$0xff]  ;;  %v1815_v21 = vld [vmem:[%s3807_s1 + $0x8] sm:$0xff] }
  0xb0   : > { %717 = vrot.lane.b32.xlu1 %v2860_v34, %s2691_s20  ;;  %715 = vrot.lane.b32.xlu0 %v2863_v35, %s2691_s20 }
  0xb2   : > { %v347_v28 = vpop.permute.xlu1 %346  ;;  %v345_v31 = vpop.permute.xlu0 %344 }
  0xb3   : > { %420 = vst.msk [vmem:[#allocation2 + $0xb8] sm:$0xff] %vm396_vm1, %v347_v28  ;;  %419 = vst.msk [vmem:[#allocation2 + $0xb0] sm:$0xff] %vm396_vm1, %v345_v31  ;;  %v2650_v28 = vpack.c.bf16 %v1815_v21, %v1814_v57  ;;  %v1816_v31 = vld [vmem:[%s3807_s1 + $0x10] sm:$0xff] }
  0xb4   : > { %721 = vrot.lane.b32.xlu1 %v2870_v36, %s2691_s20  ;;  %719 = vrot.lane.b32.xlu0 %v2873_v37, %s2691_s20 }
  0xb5   : > { %2651 = vmatprep.subr.bf16.mxu0 %v2650_v28  ;;  %2658 = vmatprep.subr.bf16.mxu1 %v2650_v28 }
  0xb6   : > { %v351_v32 = vpop.permute.xlu1 %350  ;;  %v349_v33 = vpop.permute.xlu0 %348  ;;  %2653 = vmatpush3.bf16.msra.mxu0 %v2650_v28  ;;  %2661 = vmatpush3.bf16.msra.mxu1 %v2650_v28  ;;  %v3826_v28 = vld [vmem:[#allocation7_spill] sm:$0xff] }
  0xb7   : > { %422 = vst.msk [vmem:[#allocation2 + $0xc8] sm:$0xff] %vm396_vm1, %v351_v32  ;;  %421 = vst.msk [vmem:[#allocation2 + $0xc0] sm:$0xff] %vm396_vm1, %v349_v33  ;;  %v1817_v32 = vld [vmem:[%s3807_s1 + $0x18] sm:$0xff] }
  0xb8   : > { %725 = vrot.lane.b32.xlu1 %v2876_v38, %s2691_s20  ;;  %723 = vrot.lane.b32.xlu0 %v2885_v39, %s2691_s20  ;;  %v2654_v33 = vpack.c.bf16 %v1817_v32, %v1816_v31 }
  0xba   : > { %v355_v34 = vpop.permute.xlu1 %354  ;;  %v353_v35 = vpop.permute.xlu0 %352  ;;  %2655 = vmatprep.subr.bf16.mxu0 %v2654_v33  ;;  %2659 = vmatprep.subr.bf16.mxu1 %v2654_v33 }
  0xbb   : > { %424 = vst.msk [vmem:[#allocation2 + $0xd8] sm:$0xff] %vm396_vm1, %v355_v34  ;;  %423 = vst.msk [vmem:[#allocation2 + $0xd0] sm:$0xff] %vm396_vm1, %v353_v35  ;;  %2657 = vmatpush3.bf16.msra.mxu0 %v2654_v33  ;;  %2662 = vmatpush3.bf16.msra.mxu1 %v2654_v33 }
  0xbc   : > { %729 = vrot.lane.b32.xlu1 %v2888_v40, %s2691_s20  ;;  %727 = vrot.lane.b32.xlu0 %v2891_v41, %s2691_s20 }
  0xbe   : > { %v359_v36 = vpop.permute.xlu1 %358  ;;  %v357_v37 = vpop.permute.xlu0 %356 }
  0xbf   : > { %426 = vst.msk [vmem:[#allocation2 + $0xe8] sm:$0xff] %vm396_vm1, %v359_v36  ;;  %425 = vst.msk [vmem:[#allocation2 + $0xe0] sm:$0xff] %vm396_vm1, %v357_v37  ;;  %v1818_v36 = vld [vmem:[%s3807_s1 + $0x20] sm:$0xf] }
  0xc0   : > { %733 = vrot.lane.b32.xlu1 %v2908_v44, %s2691_s20  ;;  %731 = vrot.lane.b32.xlu0 %v2911_v45, %s2691_s20 }
  0xc1   : > { %2600 = vmatprep.subr.msk.mxu0 %vm1923_vm3, %v1818_v36  ;;  %2660 = vmatprep.subr.msk.mxu1 %vm1923_vm3, %v1818_v36 }
  0xc2   : > { %v363_v17 = vpop.permute.xlu1 %362  ;;  %v361_v29 = vpop.permute.xlu0 %360  ;;  %2601 = vmatpush3.msk.msra.mxu0 %vm1923_vm3, %v1818_v36  ;;  %2663 = vmatpush3.msk.msra.mxu1 %vm1923_vm3, %v1818_v36 }
  0xc3   : > { %428 = vst.msk [vmem:[#allocation2 + $0xf8] sm:$0xff] %vm396_vm1, %v363_v17  ;;  %427 = vst.msk [vmem:[#allocation2 + $0xf0] sm:$0xff] %vm396_vm1, %v361_v29 }
  0xc4   : > { %737 = vrot.lane.b32.xlu1 %v2928_v48, %s2691_s20  ;;  %735 = vrot.lane.b32.xlu0 %v2931_v49, %s2691_s20 }
  0xc6   : > { %v496_v12 = vpop.permute.xlu1 %495  ;;  %v494_v16 = vpop.permute.xlu0 %493 }
  0xc7   : > { %591 = vst.msk [vmem:[#allocation2 + $0x8] sm:$0xff] %vm589_vm2, %v496_v12  ;;  %590 = vst.msk [vmem:[#allocation2] sm:$0xff] %vm589_vm2, %v494_v16 }
  0xc8   : > { %741 = vrot.lane.b32.xlu1 %v2948_v52, %s2691_s20  ;;  %739 = vrot.lane.b32.xlu0 %v2951_v53, %s2691_s20 }
  0xca   : > { %v500_v56 = vpop.permute.xlu1 %499  ;;  %v498_v60 = vpop.permute.xlu0 %497 }
  0xcb   : > { %593 = vst.msk [vmem:[#allocation2 + $0x18] sm:$0xff] %vm589_vm2, %v500_v56  ;;  %592 = vst.msk [vmem:[#allocation2 + $0x10] sm:$0xff] %vm589_vm2, %v498_v60 }
  0xcc   : > { %912 = vrot.lane.b32.xlu1 %v2905_v43, %s2692_s21  ;;  %880 = vrot.lane.b32.xlu0 %v2734_v0, %s2692_s21 }
  0xce   : > { %v504_v58 = vpop.permute.xlu1 %503  ;;  %v502_v59 = vpop.permute.xlu0 %501 }
  0xcf   : > { %595 = vst.msk [vmem:[#allocation2 + $0x28] sm:$0xff] %vm589_vm2, %v504_v58  ;;  %594 = vst.msk [vmem:[#allocation2 + $0x20] sm:$0xff] %vm589_vm2, %v502_v59 }
  0xd0   : > { %914 = vrot.lane.b32.xlu1 %v2902_v42, %s2692_s21  ;;  %882 = vrot.lane.b32.xlu0 %v2741_v2, %s2692_s21 }
  0xd2   : > { %v508_v30 = vpop.permute.xlu1 %507  ;;  %v506_v15 = vpop.permute.xlu0 %505 }
  0xd3   : > { %597 = vst.msk [vmem:[#allocation2 + $0x38] sm:$0xff] %vm589_vm2, %v508_v30  ;;  %596 = vst.msk [vmem:[#allocation2 + $0x30] sm:$0xff] %vm589_vm2, %v506_v15 }
  0xd4   : > { %1105 = vrot.lane.b32.xlu1 %v3054_v62, %s2693_s22  ;;  %1073 = vrot.lane.b32.xlu0 %v2998_v9, %s2693_s22 }
  0xd6   : > { %v512_v0 = vpop.permute.xlu1 %511  ;;  %v510_v43 = vpop.permute.xlu0 %509 }
  0xd7   : > { %599 = vst.msk [vmem:[#allocation2 + $0x48] sm:$0xff] %vm589_vm2, %v512_v0  ;;  %598 = vst.msk [vmem:[#allocation2 + $0x40] sm:$0xff] %vm589_vm2, %v510_v43 }
  0xd8   : > { %1107 = vrot.lane.b32.xlu1 %v3051_v61, %s2693_s22  ;;  %1075 = vrot.lane.b32.xlu0 %v2995_v8, %s2693_s22 }
  0xda   : > { %v516_v2 = vpop.permute.xlu1 %515  ;;  %v514_v42 = vpop.permute.xlu0 %513 }
  0xdb   : > { %601 = vst.msk [vmem:[#allocation2 + $0x58] sm:$0xff] %vm589_vm2, %v516_v2  ;;  %600 = vst.msk [vmem:[#allocation2 + $0x50] sm:$0xff] %vm589_vm2, %v514_v42 }
  0xdc   : > { %1299 = vrot.lane.b32.xlu1 %v2885_v39, %s2694_s23  ;;  %1267 = vrot.lane.b32.xlu0 %v2796_v20, %s2694_s23 }
  0xde   : > { %v520_v9 = vpop.permute.xlu1 %519  ;;  %v518_v62 = vpop.permute.xlu0 %517 }
  0xdf   : > { %603 = vst.msk [vmem:[#allocation2 + $0x68] sm:$0xff] %vm589_vm2, %v520_v9  ;;  %602 = vst.msk [vmem:[#allocation2 + $0x60] sm:$0xff] %vm589_vm2, %v518_v62 }
  0xe0   : > { %1301 = vrot.lane.b32.xlu1 %v2876_v38, %s2694_s23  ;;  %1269 = vrot.lane.b32.xlu0 %v2793_v19, %s2694_s23 }
  0xe2   : > { %v524_v8 = vpop.permute.xlu1 %523  ;;  %v522_v61 = vpop.permute.xlu0 %521 }
  0xe3   : > { %605 = vst.msk [vmem:[#allocation2 + $0x78] sm:$0xff] %vm589_vm2, %v524_v8  ;;  %604 = vst.msk [vmem:[#allocation2 + $0x70] sm:$0xff] %vm589_vm2, %v522_v61  ;;  %v3825_v61 = vld [vmem:[#allocation6_spill] sm:$0xff] }
  0xe4   : > { %1492 = vrot.lane.b32.xlu1 %v2925_v47, %s2695_s24  ;;  %1460 = vrot.lane.b32.xlu0 %v2751_v5, %s2695_s24 }
  0xe6   : > { %v528_v20 = vpop.permute.xlu1 %527  ;;  %v526_v39 = vpop.permute.xlu0 %525 }
  0xe7   : > { %607 = vst.msk [vmem:[#allocation2 + $0x88] sm:$0xff] %vm589_vm2, %v528_v20  ;;  %606 = vst.msk [vmem:[#allocation2 + $0x80] sm:$0xff] %vm589_vm2, %v526_v39  ;;  %v2381_v20 = vld [vmem:[%s2731_s17 + $0x129] sm:$0xff] }
  0xe8   : > { %916 = vrot.lane.b32.xlu1 %v2925_v47, %s2692_s21  ;;  %884 = vrot.lane.b32.xlu0 %v2751_v5, %s2692_s21 }
  0xea   : > { %v532_v19 = vpop.permute.xlu1 %531  ;;  %v530_v38 = vpop.permute.xlu0 %529 }
  0xeb   : > { %609 = vst.msk [vmem:[#allocation2 + $0x98] sm:$0xff] %vm589_vm2, %v532_v19  ;;  %608 = vst.msk [vmem:[#allocation2 + $0x90] sm:$0xff] %vm589_vm2, %v530_v38 }
  0xec   : > { %1494 = vrot.lane.b32.xlu1 %v2922_v46, %s2695_s24  ;;  %1462 = vrot.lane.b32.xlu0 %v2748_v4, %s2695_s24 }
  0xee   : > { %v536_v5 = vpop.permute.xlu1 %535  ;;  %v534_v47 = vpop.permute.xlu0 %533 }
  0xef   : > { %611 = vst.msk [vmem:[#allocation2 + $0xa8] sm:$0xff] %vm589_vm2, %v536_v5  ;;  %610 = vst.msk [vmem:[#allocation2 + $0xa0] sm:$0xff] %vm589_vm2, %v534_v47  ;;  %v3827_v5 = vld [vmem:[#allocation5_spill] sm:$0xff] }
  0xf0   : > { %1685 = vrot.lane.b32.xlu1 %v3064_v1, %s2696_s6  ;;  %1653 = vrot.lane.b32.xlu0 %v3008_v11, %s2696_s6  ;;  %v2397_v47 = vld [vmem:[%s2731_s17 + $0x6a] sm:$0xff] }
  0xf2   : > { %v540_v34 = vpop.permute.xlu1 %539  ;;  %v538_v35 = vpop.permute.xlu0 %537 }
  0xf3   : > { %613 = vst.msk [vmem:[#allocation2 + $0xb8] sm:$0xff] %vm589_vm2, %v540_v34  ;;  %612 = vst.msk [vmem:[#allocation2 + $0xb0] sm:$0xff] %vm589_vm2, %v538_v35 }
  0xf4   : > { %918 = vrot.lane.b32.xlu1 %v2922_v46, %s2692_s21  ;;  %886 = vrot.lane.b32.xlu0 %v2748_v4, %s2692_s21 }
  0xf6   : > { %v544_v37 = vpop.permute.xlu1 %543  ;;  %v542_v17 = vpop.permute.xlu0 %541 }
  0xf7   : > { %615 = vst.msk [vmem:[#allocation2 + $0xc8] sm:$0xff] %vm589_vm2, %v544_v37  ;;  %614 = vst.msk [vmem:[#allocation2 + $0xc0] sm:$0xff] %vm589_vm2, %v542_v17  ;;  %v2476_v37 = vld [vmem:[%s2731_s17 + $0x139] sm:$0xff] }
  0xf8   : > { %1109 = vrot.lane.b32.xlu1 %v3064_v1, %s2693_s22  ;;  %1077 = vrot.lane.b32.xlu0 %v3008_v11, %s2693_s22 }
  0xfa   : > { %v548_v4 = vpop.permute.xlu1 %547  ;;  %v546_v46 = vpop.permute.xlu0 %545 }
  0xfb   : > { %617 = vst.msk [vmem:[#allocation2 + $0xd8] sm:$0xff] %vm589_vm2, %v548_v4  ;;  %616 = vst.msk [vmem:[#allocation2 + $0xd0] sm:$0xff] %vm589_vm2, %v546_v46  ;;  %v2461_v46 = vld [vmem:[%s2731_s17 + $0x81] sm:$0xff] }
  0xfc   : > { %1687 = vrot.lane.b32.xlu1 %v3061_v63, %s2696_s6  ;;  %1655 = vrot.lane.b32.xlu0 %v3005_v10, %s2696_s6 }
  0xfe   : > { %v552_v29 = vpop.permute.xlu1 %551  ;;  %v550_v12 = vpop.permute.xlu0 %549 }
  0xff   : > { %619 = vst.msk [vmem:[#allocation2 + $0xe8] sm:$0xff] %vm589_vm2, %v552_v29  ;;  %618 = vst.msk [vmem:[#allocation2 + $0xe0] sm:$0xff] %vm589_vm2, %v550_v12 }
 0x100   : > { %1111 = vrot.lane.b32.xlu1 %v3061_v63, %s2693_s22  ;;  %1079 = vrot.lane.b32.xlu0 %v3005_v10, %s2693_s22 }
 0x102   : > { %v556_v11 = vpop.permute.xlu1 %555  ;;  %v554_v1 = vpop.permute.xlu0 %553 }
 0x103   : > { %621 = vst.msk [vmem:[#allocation2 + $0xf8] sm:$0xff] %vm589_vm2, %v556_v11  ;;  %620 = vst.msk [vmem:[#allocation2 + $0xf0] sm:$0xff] %vm589_vm2, %v554_v1  ;;  %v2508_v11 = vld [vmem:[%s2731_s17 + $0x13a] sm:$0xff] }
 0x104   : > { %1303 = vrot.lane.b32.xlu1 %v2891_v41, %s2694_s23  ;;  %1271 = vrot.lane.b32.xlu0 %v2811_v23, %s2694_s23  ;;  %v2492_v1 = vld [vmem:[%s2731_s17 + $0x7a] sm:$0xff] }
 0x106   : > { %v690_v16 = vpop.permute.xlu1 %689  ;;  %v688_v56 = vpop.permute.xlu0 %687 }
 0x107   : > { %785 = vst.msk [vmem:[#allocation2 + $0x8] sm:$0xff] %vm783_vm4, %v690_v16  ;;  %784 = vst.msk [vmem:[#allocation2] sm:$0xff] %vm783_vm4, %v688_v56 }
 0x108   : > { %1305 = vrot.lane.b32.xlu1 %v2888_v40, %s2694_s23  ;;  %1273 = vrot.lane.b32.xlu0 %v2806_v22, %s2694_s23 }
 0x10a   : > { %v694_v10 = vpop.permute.xlu1 %693  ;;  %v692_v63 = vpop.permute.xlu0 %691 }
 0x10b   : > { %787 = vst.msk [vmem:[#allocation2 + $0x18] sm:$0xff] %vm783_vm4, %v694_v10  ;;  %786 = vst.msk [vmem:[#allocation2 + $0x10] sm:$0xff] %vm783_vm4, %v692_v63 }
 0x10c   : > { %1496 = vrot.lane.b32.xlu1 %v2945_v51, %s2695_s24  ;;  %1464 = vrot.lane.b32.xlu0 %v2761_v7, %s2695_s24 }
 0x10e   : > { %v698_v23 = vpop.permute.xlu1 %697  ;;  %v696_v41 = vpop.permute.xlu0 %695 }
 0x10f   : > { %789 = vst.msk [vmem:[#allocation2 + $0x28] sm:$0xff] %vm783_vm4, %v698_v23  ;;  %788 = vst.msk [vmem:[#allocation2 + $0x20] sm:$0xff] %vm783_vm4, %v696_v41 }
 0x110   : > { %920 = vrot.lane.b32.xlu1 %v2945_v51, %s2692_s21  ;;  %888 = vrot.lane.b32.xlu0 %v2761_v7, %s2692_s21 }
 0x112   : > { %v702_v22 = vpop.permute.xlu1 %701  ;;  %v700_v40 = vpop.permute.xlu0 %699 }
 0x113   : > { %791 = vst.msk [vmem:[#allocation2 + $0x38] sm:$0xff] %vm783_vm4, %v702_v22  ;;  %790 = vst.msk [vmem:[#allocation2 + $0x30] sm:$0xff] %vm783_vm4, %v700_v40 }
 0x114   : > { %1498 = vrot.lane.b32.xlu1 %v2942_v50, %s2695_s24  ;;  %1466 = vrot.lane.b32.xlu0 %v2758_v6, %s2695_s24 }
 0x116   : > { %v706_v60 = vpop.permute.xlu1 %705  ;;  %v704_v58 = vpop.permute.xlu0 %703 }
 0x117   : > { %793 = vst.msk [vmem:[#allocation2 + $0x48] sm:$0xff] %vm783_vm4, %v706_v60  ;;  %792 = vst.msk [vmem:[#allocation2 + $0x40] sm:$0xff] %vm783_vm4, %v704_v58  ;;  %v2509_v60 = vld [vmem:[%s2731_s17 + $0x142] sm:$0xff] }
 0x118   : > { %1689 = vrot.lane.b32.xlu1 %v3074_v18, %s2696_s6  ;;  %1657 = vrot.lane.b32.xlu0 %v3018_v14, %s2696_s6  ;;  %v2493_v58 = vld [vmem:[%s2731_s17 + $0x82] sm:$0xff] }
 0x11a   : > { %v710_v7 = vpop.permute.xlu1 %709  ;;  %v708_v51 = vpop.permute.xlu0 %707 }
 0x11b   : > { %795 = vst.msk [vmem:[#allocation2 + $0x58] sm:$0xff] %vm783_vm4, %v710_v7  ;;  %794 = vst.msk [vmem:[#allocation2 + $0x50] sm:$0xff] %vm783_vm4, %v708_v51 }
 0x11c   : > { %922 = vrot.lane.b32.xlu1 %v2942_v50, %s2692_s21  ;;  %890 = vrot.lane.b32.xlu0 %v2758_v6, %s2692_s21 }
 0x11e   : > { %v714_v59 = vpop.permute.xlu1 %713  ;;  %v712_v30 = vpop.permute.xlu0 %711 }
 0x11f   : > { %797 = vst.msk [vmem:[#allocation2 + $0x68] sm:$0xff] %vm783_vm4, %v714_v59  ;;  %796 = vst.msk [vmem:[#allocation2 + $0x60] sm:$0xff] %vm783_vm4, %v712_v30 }
 0x120   : > { %1113 = vrot.lane.b32.xlu1 %v3074_v18, %s2693_s22  ;;  %1081 = vrot.lane.b32.xlu0 %v3018_v14, %s2693_s22 }
 0x122   : > { %v718_v15 = vpop.permute.xlu1 %717  ;;  %v716_v0 = vpop.permute.xlu0 %715 }
 0x123   : > { %799 = vst.msk [vmem:[#allocation2 + $0x78] sm:$0xff] %vm783_vm4, %v718_v15  ;;  %798 = vst.msk [vmem:[#allocation2 + $0x70] sm:$0xff] %vm783_vm4, %v716_v0 }
 0x124   : > { %1691 = vrot.lane.b32.xlu1 %v3071_v3, %s2696_s6  ;;  %1659 = vrot.lane.b32.xlu0 %v3015_v13, %s2696_s6 }
 0x126   : > { %v722_v6 = vpop.permute.xlu1 %721  ;;  %v720_v50 = vpop.permute.xlu0 %719 }
 0x127   : > { %801 = vst.msk [vmem:[#allocation2 + $0x88] sm:$0xff] %vm783_vm4, %v722_v6  ;;  %800 = vst.msk [vmem:[#allocation2 + $0x80] sm:$0xff] %vm783_vm4, %v720_v50  ;;  %v2430_v6 = vld [vmem:[%s2731_s17 + $0x90] sm:$0xff] }
 0x128   : > { %1115 = vrot.lane.b32.xlu1 %v3071_v3, %s2693_s22  ;;  %1083 = vrot.lane.b32.xlu0 %v3015_v13, %s2693_s22  ;;  %v2458_v13 = vld [vmem:[%s2731_s17 + $0x61] sm:$0xff] }
 0x12a   : > { %v726_v14 = vpop.permute.xlu1 %725  ;;  %v724_v18 = vpop.permute.xlu0 %723 }
 0x12b   : > { %803 = vst.msk [vmem:[#allocation2 + $0x98] sm:$0xff] %vm783_vm4, %v726_v14  ;;  %802 = vst.msk [vmem:[#allocation2 + $0x90] sm:$0xff] %vm783_vm4, %v724_v18  ;;  %v2431_v18 = vld [vmem:[%s2731_s17 + $0x98] sm:$0xff] }
 0x12c   : > { %1307 = vrot.lane.b32.xlu1 %v2911_v45, %s2694_s23  ;;  %1275 = vrot.lane.b32.xlu0 %v2817_v25, %s2694_s23 }
 0x12e   : > { %v730_v43 = vpop.permute.xlu1 %729  ;;  %v728_v2 = vpop.permute.xlu0 %727 }
 0x12f   : > { %805 = vst.msk [vmem:[#allocation2 + $0xa8] sm:$0xff] %vm783_vm4, %v730_v43  ;;  %804 = vst.msk [vmem:[#allocation2 + $0xa0] sm:$0xff] %vm783_vm4, %v728_v2 }
 0x130   : > { %1309 = vrot.lane.b32.xlu1 %v2908_v44, %s2694_s23  ;;  %1277 = vrot.lane.b32.xlu0 %v2814_v24, %s2694_s23  ;;  %v2459_v24 = vld [vmem:[%s2731_s17 + $0x69] sm:$0xff] }
 0x132   : > { %v734_v3 = vpop.permute.xlu1 %733  ;;  %v732_v42 = vpop.permute.xlu0 %731 }
 0x133   : > { %807 = vst.msk [vmem:[#allocation2 + $0xb8] sm:$0xff] %vm783_vm4, %v734_v3  ;;  %806 = vst.msk [vmem:[#allocation2 + $0xb0] sm:$0xff] %vm783_vm4, %v732_v42  ;;  %v2462_v3 = vld [vmem:[%s2731_s17 + $0x91] sm:$0xff] }
 0x134   : > { %1500 = vrot.lane.b32.xlu1 %v2965_v55, %s2695_s24  ;;  %1468 = vrot.lane.b32.xlu0 %v2458_v13, %s2695_s24 }
 0x136   : > { %v738_v25 = vpop.permute.xlu1 %737  ;;  %v736_v45 = vpop.permute.xlu0 %735 }
 0x137   : > { %809 = vst.msk [vmem:[#allocation2 + $0xc8] sm:$0xff] %vm783_vm4, %v738_v25  ;;  %808 = vst.msk [vmem:[#allocation2 + $0xc0] sm:$0xff] %vm783_vm4, %v736_v45  ;;  %v2479_v45 = vld [vmem:[%s2731_s17 + $0x159] sm:$0xff] }
 0x138   : > { %924 = vrot.lane.b32.xlu1 %v2965_v55, %s2692_s21  ;;  %892 = vrot.lane.b32.xlu0 %v2458_v13, %s2692_s21  ;;  %v3824_v55 = vld [vmem:[#allocation8_spill] sm:$0xff]  ;;  %v2478_v13 = vld [vmem:[%s2731_s17 + $0x151] sm:$0xff] }
 0x13a   : > { %v742_v44 = vpop.permute.xlu1 %741  ;;  %v740_v9 = vpop.permute.xlu0 %739 }
 0x13b   : > { %811 = vst.msk [vmem:[#allocation2 + $0xd8] sm:$0xff] %vm783_vm4, %v742_v44  ;;  %810 = vst.msk [vmem:[#allocation2 + $0xd0] sm:$0xff] %vm783_vm4, %v740_v9 }
 0x13c   : > { %1502 = vrot.lane.b32.xlu1 %v2962_v54, %s2695_s24  ;;  %1470 = vrot.lane.b32.xlu0 %v2459_v24, %s2695_s24 }
 0x13e   : > { %v913_v62 = vpop.permute.xlu1 %912  ;;  %v881_v8 = vpop.permute.xlu0 %880 }
 0x13f   : > { %993 = vst.msk [vmem:[#allocation2 + $0x80] sm:$0xff] %vm976_vm5, %v913_v62  ;;  %977 = vst.msk [vmem:[#allocation2] sm:$0xff] %vm976_vm5, %v881_v8  ;;  %v2510_v62 = vld [vmem:[%s2731_s17 + $0x152] sm:$0xff] }
 0x140   : > { %1693 = vrot.lane.b32.xlu1 %v3824_v55, %s2696_s6  ;;  %1661 = vrot.lane.b32.xlu0 %v3825_v61, %s2696_s6  ;;  %v2494_v8 = vld [vmem:[%s2731_s17 + $0x92] sm:$0xff] }
 0x142   : > { %v915_v39 = vpop.permute.xlu1 %914  ;;  %v883_v19 = vpop.permute.xlu0 %882 }
 0x143   : > { %994 = vst.msk [vmem:[#allocation2 + $0x88] sm:$0xff] %vm976_vm5, %v915_v39  ;;  %978 = vst.msk [vmem:[#allocation2 + $0x8] sm:$0xff] %vm976_vm5, %v883_v19 }
 0x144   : > { %926 = vrot.lane.b32.xlu1 %v2381_v20, %s2692_s21  ;;  %894 = vrot.lane.b32.xlu0 %v2459_v24, %s2692_s21  ;;  %v2463_v24 = vld [vmem:[%s2731_s17 + $0x99] sm:$0xff] }
 0x146   : > { %v1106_v54 = vpop.permute.xlu1 %1105  ;;  %v1074_v38 = vpop.permute.xlu0 %1073 }
 0x147   : > { %1186 = vst.msk [vmem:[#allocation2 + $0x80] sm:$0xff] %vm1169_vm6, %v1106_v54  ;;  %1170 = vst.msk [vmem:[#allocation2] sm:$0xff] %vm1169_vm6, %v1074_v38 }
 0x148   : > { %1117 = vrot.lane.b32.xlu1 %v3824_v55, %s2693_s22  ;;  %1085 = vrot.lane.b32.xlu0 %v3825_v61, %s2693_s22 }
 0x14a   : > { %v1108_v57 = vpop.permute.xlu1 %1107  ;;  %v1076_v21 = vpop.permute.xlu0 %1075 }
 0x14b   : > { %1187 = vst.msk [vmem:[#allocation2 + $0x88] sm:$0xff] %vm1169_vm6, %v1108_v57  ;;  %1171 = vst.msk [vmem:[#allocation2 + $0x8] sm:$0xff] %vm1169_vm6, %v1076_v21  ;;  %v2511_v21 = vld [vmem:[%s2731_s17 + $0x15a] sm:$0xff] }
 0x14c   : > { %1695 = vrot.lane.b32.xlu1 %v3826_v28, %s2696_s6  ;;  %1663 = vrot.lane.b32.xlu0 %v3827_v5, %s2696_s6 }
 0x14e   : > { %v1300_v31 = vpop.permute.xlu1 %1299  ;;  %v1268_v32 = vpop.permute.xlu0 %1267 }
 0x14f   : > { %1380 = vst.msk [vmem:[#allocation2 + $0x80] sm:$0xff] %vm1363_vm7, %v1300_v31  ;;  %1364 = vst.msk [vmem:[#allocation2] sm:$0xff] %vm1363_vm7, %v1268_v32 }
 0x150   : > { %1119 = vrot.lane.b32.xlu1 %v3826_v28, %s2693_s22  ;;  %1087 = vrot.lane.b32.xlu0 %v2397_v47, %s2693_s22  ;;  %v2495_v28 = vld [vmem:[%s2731_s17 + $0x9a] sm:$0xff] }
 0x152   : > { %v1302_v33 = vpop.permute.xlu1 %1301  ;;  %v1270_v34 = vpop.permute.xlu0 %1269 }
 0x153   : > { %1381 = vst.msk [vmem:[#allocation2 + $0x88] sm:$0xff] %vm1363_vm7, %v1302_v33  ;;  %1365 = vst.msk [vmem:[#allocation2 + $0x8] sm:$0xff] %vm1363_vm7, %v1270_v34 }
 0x154   : > { %1311 = vrot.lane.b32.xlu1 %v2931_v49, %s2694_s23  ;;  %1279 = vrot.lane.b32.xlu0 %v2829_v27, %s2694_s23  ;;  %v2460_v49 = vld [vmem:[%s2731_s17 + $0x79] sm:$0xff] }
 0x156   : > { %v1493_v35 = vpop.permute.xlu1 %1492  ;;  %v1461_v36 = vpop.permute.xlu0 %1460 }
 0x157   : > { %1573 = vst.msk [vmem:[#allocation2 + $0x80] sm:$0xff] %vm1556_vm8, %v1493_v35  ;;  %1557 = vst.msk [vmem:[#allocation2] sm:$0xff] %vm1556_vm8, %v1461_v36  ;;  %v2432_v35 = vld [vmem:[%s2731_s17 + $0xa8] sm:$0xff] }
 0x158   : > { %1313 = vrot.lane.b32.xlu1 %v2928_v48, %s2694_s23  ;;  %1281 = vrot.lane.b32.xlu0 %v2826_v26, %s2694_s23  ;;  %v2477_v26 = vld [vmem:[%s2731_s17 + $0x141] sm:$0xff] }
 0x15a   : > { %v917_v17 = vpop.permute.xlu1 %916  ;;  %v885_v4 = vpop.permute.xlu0 %884 }
 0x15b   : > { %995 = vst.msk [vmem:[#allocation2 + $0x90] sm:$0xff] %vm976_vm5, %v917_v17  ;;  %979 = vst.msk [vmem:[#allocation2 + $0x10] sm:$0xff] %vm976_vm5, %v885_v4  ;;  %v2433_v17 = vld [vmem:[%s2731_s17 + $0xb0] sm:$0xff] }
 0x15c   : > { %1504 = vrot.lane.b32.xlu1 %v2476_v37, %s2695_s24  ;;  %1472 = vrot.lane.b32.xlu0 %v2460_v49, %s2695_s24 }
 0x15e   : > { %v1495_v27 = vpop.permute.xlu1 %1494  ;;  %v1463_v48 = vpop.permute.xlu0 %1462 }
 0x15f   : > { %1574 = vst.msk [vmem:[#allocation2 + $0x88] sm:$0xff] %vm1556_vm8, %v1495_v27  ;;  %1558 = vst.msk [vmem:[#allocation2 + $0x8] sm:$0xff] %vm1556_vm8, %v1463_v48  ;;  %v2464_v48 = vld [vmem:[%s2731_s17 + $0xa9] sm:$0xff] }
 0x160   : > { %928 = vrot.lane.b32.xlu1 %v2476_v37, %s2692_s21  ;;  %896 = vrot.lane.b32.xlu0 %v2460_v49, %s2692_s21  ;;  %v3828_v49 = vld [vmem:[#allocation4_spill] sm:$0xff] }
 0x162   : > { %v1686_v29 = vpop.permute.xlu1 %1685  ;;  %v1654_v12 = vpop.permute.xlu0 %1653 }
 0x163   : > { %1766 = vst.msk [vmem:[#allocation2 + $0x80] sm:$0xff] %vm1749_vm9, %v1686_v29  ;;  %1750 = vst.msk [vmem:[#allocation2] sm:$0xff] %vm1749_vm9, %v1654_v12  ;;  %v2480_v12 = vld [vmem:[%s2731_s17 + $0x169] sm:$0xff] }
 0x164   : > { %1506 = vrot.lane.b32.xlu1 %v2477_v26, %s2695_s24  ;;  %1474 = vrot.lane.b32.xlu0 %v2461_v46, %s2695_s24 }
 0x166   : > { %v919_v16 = vpop.permute.xlu1 %918  ;;  %v887_v56 = vpop.permute.xlu0 %886 }
 0x167   : > { %996 = vst.msk [vmem:[#allocation2 + $0x98] sm:$0xff] %vm976_vm5, %v919_v16  ;;  %980 = vst.msk [vmem:[#allocation2 + $0x18] sm:$0xff] %vm976_vm5, %v887_v56 }
 0x168   : > { %1697 = vrot.lane.b32.xlu1 %v2508_v11, %s2696_s6  ;;  %1665 = vrot.lane.b32.xlu0 %v2492_v1, %s2696_s6 }
 0x16a   : > { %v1110_v10 = vpop.permute.xlu1 %1109  ;;  %v1078_v63 = vpop.permute.xlu0 %1077  ;;  %v1782_v23 = vld [vmem:[#allocation2] sm:$0xff] }
 0x16b   : > { %v1798_v41 = vld [vmem:[#allocation2 + $0x80] sm:$0xff]  ;;  %1188 = vst.msk [vmem:[#allocation2 + $0x90] sm:$0xff] %vm1169_vm6, %v1110_v10  ;;  %1172 = vst.msk [vmem:[#allocation2 + $0x10] sm:$0xff] %vm1169_vm6, %v1078_v63  ;;  %2602 = vmatprep.mubr.msk.f32.mxu0 %vm1826_vm10, %v1782_v23  ;;  %v2481_v10 = vld [vmem:[%s2731_s17 + $0x171] sm:$0xff] }
 0x16c   : > { %2626 = vmatprep.mubr.msk.f32.mxu1 %vm1826_vm10, %v1798_v41  ;;  %930 = vrot.lane.b32.xlu1 %v2477_v26, %s2692_s21  ;;  %v2449_v26 = vld [vmem:[%s2731_s17 + $0x170] sm:$0xff] }
 0x16d   : > { %898 = vrot.lane.b32.xlu0 %v2461_v46, %s2692_s21  ;;  %v2465_v63 = vld [vmem:[%s2731_s17 + $0xb1] sm:$0xff] }
 0x16e   : > { %v1688_v22 = vpop.permute.xlu1 %1687  ;;  %v1656_v40 = vpop.permute.xlu0 %1655 }
 0x16f   : > { %1767 = vst.msk [vmem:[#allocation2 + $0x88] sm:$0xff] %vm1749_vm9, %v1688_v22  ;;  %1751 = vst.msk [vmem:[#allocation2 + $0x8] sm:$0xff] %vm1749_vm9, %v1656_v40  ;;  %v2512_v22 = vld [vmem:[%s2731_s17 + $0x16a] sm:$0xff] }
 0x170   : > { %1121 = vrot.lane.b32.xlu1 %v2508_v11, %s2693_s22  ;;  %v2496_v40 = vld [vmem:[%s2731_s17 + $0xaa] sm:$0xff] }
 0x171   : > { %1089 = vrot.lane.b32.xlu0 %v2492_v1, %s2693_s22 }
 0x172   : > { %v1112_v7 = vpop.permute.xlu1 %1111  ;;  %v1080_v51 = vpop.permute.xlu0 %1079 }
 0x173   : > { %1189 = vst.msk [vmem:[#allocation2 + $0x98] sm:$0xff] %vm1169_vm6, %v1112_v7  ;;  %1173 = vst.msk [vmem:[#allocation2 + $0x18] sm:$0xff] %vm1169_vm6, %v1080_v51 }
 0x174   : > { %1699 = vrot.lane.b32.xlu1 %v2509_v60, %s2696_s6 }
 0x175   : > { %1667 = vrot.lane.b32.xlu0 %v2493_v58, %s2696_s6 }
 0x176   : > { %v1304_v59 = vpop.permute.xlu1 %1303  ;;  %v1272_v30 = vpop.permute.xlu0 %1271  ;;  %v1783_v15 = vld [vmem:[#allocation2 + $0x8] sm:$0xff] }
 0x177   : > { %v1799_v0 = vld [vmem:[#allocation2 + $0x88] sm:$0xff]  ;;  %1382 = vst.msk [vmem:[#allocation2 + $0x90] sm:$0xff] %vm1363_vm7, %v1304_v59  ;;  %1366 = vst.msk [vmem:[#allocation2 + $0x10] sm:$0xff] %vm1363_vm7, %v1272_v30  ;;  %2603 = vmatmul.mubr.msk.f32.vlgmr.msra.gmra.mrb[0].mxu0 %vm1826_vm10, %v1783_v15 }
 0x178   : > { %2627 = vmatmul.mubr.msk.f32.vlgmr.msra.gmra.mrb[0].mxu1 %vm1826_vm10, %v1799_v0  ;;  %1123 = vrot.lane.b32.xlu1 %v2509_v60, %s2693_s22 }
 0x179   : > { %1091 = vrot.lane.b32.xlu0 %v2493_v58, %s2693_s22 }
 0x17a   : > { %v1306_v50 = vpop.permute.xlu1 %1305  ;;  %v1274_v14 = vpop.permute.xlu0 %1273 }
 0x17b   : > { %1383 = vst.msk [vmem:[#allocation2 + $0x98] sm:$0xff] %vm1363_vm7, %v1306_v50  ;;  %1367 = vst.msk [vmem:[#allocation2 + $0x18] sm:$0xff] %vm1363_vm7, %v1274_v14  ;;  %v2497_v50 = vld [vmem:[%s2731_s17 + $0xb2] sm:$0xff] }
 0x17c   : > { %1315 = vrot.lane.b32.xlu1 %v2951_v53, %s2694_s23 }
 0x17d   : > { %1283 = vrot.lane.b32.xlu0 %v2430_v6, %s2694_s23  ;;  %v2513_v6 = vld [vmem:[%s2731_s17 + $0x172] sm:$0xff] }
 0x17e   : > { %v1497_v43 = vpop.permute.xlu1 %1496  ;;  %v1465_v2 = vpop.permute.xlu0 %1464 }
 0x17f   : > { %1575 = vst.msk [vmem:[#allocation2 + $0x90] sm:$0xff] %vm1556_vm8, %v1497_v43  ;;  %1559 = vst.msk [vmem:[#allocation2 + $0x10] sm:$0xff] %vm1556_vm8, %v1465_v2 }
 0x180   : > { %1317 = vrot.lane.b32.xlu1 %v2948_v52, %s2694_s23 }
 0x181   : > { %1285 = vrot.lane.b32.xlu0 %v2431_v18, %s2694_s23 }
 0x182   : > { %v921_v42 = vpop.permute.xlu1 %920  ;;  %v889_v53 = vpop.permute.xlu0 %888 }
 0x183   : > { %997 = vst.msk [vmem:[#allocation2 + $0xa0] sm:$0xff] %vm976_vm5, %v921_v42  ;;  %981 = vst.msk [vmem:[#allocation2 + $0x20] sm:$0xff] %vm976_vm5, %v889_v53  ;;  %v2450_v42 = vld [vmem:[%s2731_s17 + $0x180] sm:$0xff] }
 0x184   : > { %1508 = vrot.lane.b32.xlu1 %v2478_v13, %s2695_s24  ;;  %v2434_v53 = vld [vmem:[%s2731_s17 + $0xc0] sm:$0xff] }
 0x185   : > { %1476 = vrot.lane.b32.xlu0 %v2462_v3, %s2695_s24 }
 0x186   : > { %v1499_v25 = vpop.permute.xlu1 %1498  ;;  %v1467_v52 = vpop.permute.xlu0 %1466 }
 0x187   : > { %1576 = vst.msk [vmem:[#allocation2 + $0x98] sm:$0xff] %vm1556_vm8, %v1499_v25  ;;  %1560 = vst.msk [vmem:[#allocation2 + $0x18] sm:$0xff] %vm1556_vm8, %v1467_v52 }
 0x188   : > { %932 = vrot.lane.b32.xlu1 %v2478_v13, %s2692_s21 }
 0x189   : > { %900 = vrot.lane.b32.xlu0 %v2462_v3, %s2692_s21 }
 0x18a   : > { %v1690_v44 = vpop.permute.xlu1 %1689  ;;  %v1658_v9 = vpop.permute.xlu0 %1657 }
 0x18b   : > { %1768 = vst.msk [vmem:[#allocation2 + $0x90] sm:$0xff] %vm1749_vm9, %v1690_v44  ;;  %1752 = vst.msk [vmem:[#allocation2 + $0x10] sm:$0xff] %vm1749_vm9, %v1658_v9  ;;  %v2466_v9 = vld [vmem:[%s2731_s17 + $0xc1] sm:$0xff] }
 0x18c   : > { %1510 = vrot.lane.b32.xlu1 %v2479_v45, %s2695_s24 }
 0x18d   : > { %1478 = vrot.lane.b32.xlu0 %v2463_v24, %s2695_s24 }
 0x18e   : > { %v923_v55 = vpop.permute.xlu1 %922  ;;  %v891_v61 = vpop.permute.xlu0 %890 }
 0x18f   : > { %998 = vst.msk [vmem:[#allocation2 + $0xa8] sm:$0xff] %vm976_vm5, %v923_v55  ;;  %982 = vst.msk [vmem:[#allocation2 + $0x28] sm:$0xff] %vm976_vm5, %v891_v61  ;;  %v2482_v61 = vld [vmem:[%s2731_s17 + $0x181] sm:$0xff] }
 0x190   : > { %1701 = vrot.lane.b32.xlu1 %v2510_v62, %s2696_s6 }
 0x191   : > { %1669 = vrot.lane.b32.xlu0 %v2494_v8, %s2696_s6 }
 0x192   : > { %v1114_v20 = vpop.permute.xlu1 %1113  ;;  %v1082_v39 = vpop.permute.xlu0 %1081  ;;  %v1784_v19 = vld [vmem:[#allocation2 + $0x10] sm:$0xff] }
 0x193   : > { %v1800_v54 = vld [vmem:[#allocation2 + $0x90] sm:$0xff]  ;;  %1190 = vst.msk [vmem:[#allocation2 + $0xa0] sm:$0xff] %vm1169_vm6, %v1114_v20  ;;  %1174 = vst.msk [vmem:[#allocation2 + $0x20] sm:$0xff] %vm1169_vm6, %v1082_v39  ;;  %2605 = vmatprep.mubr.msk.f32.mxu0 %vm1826_vm10, %v1784_v19 }
 0x194   : > { %2629 = vmatprep.mubr.msk.f32.mxu1 %vm1826_vm10, %v1800_v54  ;;  %934 = vrot.lane.b32.xlu1 %v2479_v45, %s2692_s21  ;;  %v2435_v45 = vld [vmem:[%s2731_s17 + $0xc8] sm:$0xff] }
 0x195   : > { %902 = vrot.lane.b32.xlu0 %v2463_v24, %s2692_s21 }
 0x196   : > { %v1692_v38 = vpop.permute.xlu1 %1691  ;;  %v1660_v57 = vpop.permute.xlu0 %1659 }
 0x197   : > { %1769 = vst.msk [vmem:[#allocation2 + $0x98] sm:$0xff] %vm1749_vm9, %v1692_v38  ;;  %1753 = vst.msk [vmem:[#allocation2 + $0x18] sm:$0xff] %vm1749_vm9, %v1660_v57  ;;  %v2483_v38 = vld [vmem:[%s2731_s17 + $0x189] sm:$0xff] }
 0x198   : > { %1125 = vrot.lane.b32.xlu1 %v2510_v62, %s2693_s22  ;;  %v2451_v62 = vld [vmem:[%s2731_s17 + $0x188] sm:$0xff] }
 0x199   : > { %1093 = vrot.lane.b32.xlu0 %v2494_v8, %s2693_s22  ;;  %v2467_v57 = vld [vmem:[%s2731_s17 + $0xc9] sm:$0xff] }
 0x19a   : > { %v1116_v5 = vpop.permute.xlu1 %1115  ;;  %v1084_v47 = vpop.permute.xlu0 %1083 }
 0x19b   : > { %1191 = vst.msk [vmem:[#allocation2 + $0xa8] sm:$0xff] %vm1169_vm6, %v1116_v5  ;;  %1175 = vst.msk [vmem:[#allocation2 + $0x28] sm:$0xff] %vm1169_vm6, %v1084_v47 }
 0x19c   : > { %1703 = vrot.lane.b32.xlu1 %v2511_v21, %s2696_s6 }
 0x19d   : > { %1671 = vrot.lane.b32.xlu0 %v2495_v28, %s2696_s6 }
 0x19e   : > { %v1308_v31 = vpop.permute.xlu1 %1307  ;;  %v1276_v32 = vpop.permute.xlu0 %1275  ;;  %v1785_v33 = vld [vmem:[#allocation2 + $0x18] sm:$0xff] }
 0x19f   : > { %v1801_v34 = vld [vmem:[#allocation2 + $0x98] sm:$0xff]  ;;  %1384 = vst.msk [vmem:[#allocation2 + $0xa0] sm:$0xff] %vm1363_vm7, %v1308_v31  ;;  %1368 = vst.msk [vmem:[#allocation2 + $0x20] sm:$0xff] %vm1363_vm7, %v1276_v32  ;;  %2606 = vmatmul.mubr.msk.f32.gmra.mrb[2].mxu0 %vm1826_vm10, %v1785_v33  ;;  %v2514_v31 = vld [vmem:[%s2731_s17 + $0x182] sm:$0xff] }
 0x1a0   : > { %2630 = vmatmul.mubr.msk.f32.gmra.mrb[2].mxu1 %vm1826_vm10, %v1801_v34  ;;  %1127 = vrot.lane.b32.xlu1 %v2511_v21, %s2693_s22  ;;  %v2498_v32 = vld [vmem:[%s2731_s17 + $0xc2] sm:$0xff] }
 0x1a1   : > { %1095 = vrot.lane.b32.xlu0 %v2495_v28, %s2693_s22 }
 0x1a2   : > { %v1310_v36 = vpop.permute.xlu1 %1309  ;;  %v1278_v37 = vpop.permute.xlu0 %1277 }
 0x1a3   : > { %1385 = vst.msk [vmem:[#allocation2 + $0xa8] sm:$0xff] %vm1363_vm7, %v1310_v36  ;;  %1369 = vst.msk [vmem:[#allocation2 + $0x28] sm:$0xff] %vm1363_vm7, %v1278_v37 }
 0x1a4   : > { %1319 = vrot.lane.b32.xlu1 %v3828_v49, %s2694_s23 }
 0x1a5   : > { %1287 = vrot.lane.b32.xlu0 %v2432_v35, %s2694_s23 }
 0x1a6   : > { %v1501_v4 = vpop.permute.xlu1 %1500  ;;  %v1469_v27 = vpop.permute.xlu0 %1468 }
 0x1a7   : > { %1577 = vst.msk [vmem:[#allocation2 + $0xa0] sm:$0xff] %vm1556_vm8, %v1501_v4  ;;  %1561 = vst.msk [vmem:[#allocation2 + $0x20] sm:$0xff] %vm1556_vm8, %v1469_v27  ;;  %v2515_v27 = vld [vmem:[%s2731_s17 + $0x18a] sm:$0xff] }
 0x1a8   : > { %1289 = vrot.lane.b32.xlu1 %v2433_v17, %s2694_s23 }
 0x1a9   : > { %743 = vrot.lane.b32.xlu0 %v3828_v49, %s2691_s20 }
 0x1aa   : > { %v925_v46 = vpop.permute.xlu1 %924  ;;  %v893_v29 = vpop.permute.xlu0 %892 }
 0x1ab   : > { %999 = vst.msk [vmem:[#allocation2 + $0xb0] sm:$0xff] %vm976_vm5, %v925_v46  ;;  %983 = vst.msk [vmem:[#allocation2 + $0x30] sm:$0xff] %vm976_vm5, %v893_v29 }
 0x1ac   : > { %1480 = vrot.lane.b32.xlu1 %v2464_v48, %s2695_s24 }
 0x1ad   : > { %1321 = vrot.lane.b32.xlu0 %v2449_v26, %s2694_s23 }
 0x1ae   : > { %v1503_v11 = vpop.permute.xlu1 %1502  ;;  %v1471_v1 = vpop.permute.xlu0 %1470 }
 0x1af   : > { %1578 = vst.msk [vmem:[#allocation2 + $0xa8] sm:$0xff] %vm1556_vm8, %v1503_v11  ;;  %1562 = vst.msk [vmem:[#allocation2 + $0x28] sm:$0xff] %vm1556_vm8, %v1471_v1  ;;  %v2452_v11 = vld [vmem:[%s2731_s17 + $0x198] sm:$0xff] }
 0x1b0   : > { %745 = vrot.lane.b32.xlu1 %v2449_v26, %s2691_s20  ;;  %v2436_v1 = vld [vmem:[%s2731_s17 + $0xd8] sm:$0xff] }
 0x1b1   : > { %1512 = vrot.lane.b32.xlu0 %v2480_v12, %s2695_s24 }
 0x1b2   : > { %v1694_v16 = vpop.permute.xlu1 %1693  ;;  %v1662_v56 = vpop.permute.xlu0 %1661 }
 0x1b3   : > { %1770 = vst.msk [vmem:[#allocation2 + $0xa0] sm:$0xff] %vm1749_vm9, %v1694_v16  ;;  %1754 = vst.msk [vmem:[#allocation2 + $0x20] sm:$0xff] %vm1749_vm9, %v1662_v56 }
 0x1b4   : > { %936 = vrot.lane.b32.xlu1 %v2480_v12, %s2692_s21 }
 0x1b5   : > { %904 = vrot.lane.b32.xlu0 %v2464_v48, %s2692_s21  ;;  %v2499_v48 = vld [vmem:[%s2731_s17 + $0xca] sm:$0xff] }
 0x1b6   : > { %v927_v23 = vpop.permute.xlu1 %926  ;;  %v895_v41 = vpop.permute.xlu0 %894 }
 0x1b7   : > { %1000 = vst.msk [vmem:[#allocation2 + $0xb8] sm:$0xff] %vm976_vm5, %v927_v23  ;;  %984 = vst.msk [vmem:[#allocation2 + $0x38] sm:$0xff] %vm976_vm5, %v895_v41 }
 0x1b8   : > { %1514 = vrot.lane.b32.xlu1 %v2481_v10, %s2695_s24 }
 0x1b9   : > { %1482 = vrot.lane.b32.xlu0 %v2465_v63, %s2695_s24 }
 0x1ba   : > { %v1118_v60 = vpop.permute.xlu1 %1117  ;;  %v1086_v58 = vpop.permute.xlu0 %1085  ;;  %v1786_v7 = vld [vmem:[#allocation2 + $0x20] sm:$0xff] }
 0x1bb   : > { %v1802_v51 = vld [vmem:[#allocation2 + $0xa0] sm:$0xff]  ;;  %1192 = vst.msk [vmem:[#allocation2 + $0xb0] sm:$0xff] %vm1169_vm6, %v1118_v60  ;;  %1176 = vst.msk [vmem:[#allocation2 + $0x30] sm:$0xff] %vm1169_vm6, %v1086_v58  ;;  %2608 = vmatprep.mubr.msk.f32.mxu0 %vm1826_vm10, %v1786_v7 }
 0x1bc   : > { %2632 = vmatprep.mubr.msk.f32.mxu1 %vm1826_vm10, %v1802_v51  ;;  %1705 = vrot.lane.b32.xlu1 %v2512_v22, %s2696_s6  ;;  %v2485_v7 = vld [vmem:[%s2731_s17 + $0x1a1] sm:$0xff] }
 0x1bd   : > { %1673 = vrot.lane.b32.xlu0 %v2496_v40, %s2696_s6  ;;  %v2469_v51 = vld [vmem:[%s2731_s17 + $0xe1] sm:$0xff] }
 0x1be   : > { %v1696_v59 = vpop.permute.xlu1 %1695  ;;  %v1664_v30 = vpop.permute.xlu0 %1663 }
 0x1bf   : > { %1771 = vst.msk [vmem:[#allocation2 + $0xa8] sm:$0xff] %vm1749_vm9, %v1696_v59  ;;  %1755 = vst.msk [vmem:[#allocation2 + $0x28] sm:$0xff] %vm1749_vm9, %v1664_v30 }
 0x1c0   : > { %938 = vrot.lane.b32.xlu1 %v2481_v10, %s2692_s21  ;;  %v2453_v10 = vld [vmem:[%s2731_s17 + $0x1a0] sm:$0xff] }
 0x1c1   : > { %906 = vrot.lane.b32.xlu0 %v2465_v63, %s2692_s21  ;;  %v2437_v63 = vld [vmem:[%s2731_s17 + $0xe0] sm:$0xff] }
 0x1c2   : > { %v1120_v15 = vpop.permute.xlu1 %1119  ;;  %v1088_v0 = vpop.permute.xlu0 %1087 }
 0x1c3   : > { %1193 = vst.msk [vmem:[#allocation2 + $0xb8] sm:$0xff] %vm1169_vm6, %v1120_v15  ;;  %1177 = vst.msk [vmem:[#allocation2 + $0x38] sm:$0xff] %vm1169_vm6, %v1088_v0  ;;  %v2516_v15 = vld [vmem:[%s2731_s17 + $0x19a] sm:$0xff] }
 0x1c4   : > { %1129 = vrot.lane.b32.xlu1 %v2512_v22, %s2693_s22  ;;  %v2484_v22 = vld [vmem:[%s2731_s17 + $0x199] sm:$0xff] }
 0x1c5   : > { %1097 = vrot.lane.b32.xlu0 %v2496_v40, %s2693_s22  ;;  %v2468_v40 = vld [vmem:[%s2731_s17 + $0xd9] sm:$0xff] }
 0x1c6   : > { %v1312_v14 = vpop.permute.xlu1 %1311  ;;  %v1280_v18 = vpop.permute.xlu0 %1279  ;;  %v1787_v43 = vld [vmem:[#allocation2 + $0x28] sm:$0xff]  ;;  %v2500_v0 = vld [vmem:[%s2731_s17 + $0xda] sm:$0xff] }
 0x1c7   : > { %v1803_v2 = vld [vmem:[#allocation2 + $0xa8] sm:$0xff]  ;;  %1386 = vst.msk [vmem:[#allocation2 + $0xb0] sm:$0xff] %vm1363_vm7, %v1312_v14  ;;  %1370 = vst.msk [vmem:[#allocation2 + $0x30] sm:$0xff] %vm1363_vm7, %v1280_v18  ;;  %2609 = vmatmul.mubr.msk.f32.gmra.mrb[4].mxu0 %vm1826_vm10, %v1787_v43 }
 0x1c8   : > { %2633 = vmatmul.mubr.msk.f32.gmra.mrb[4].mxu1 %vm1826_vm10, %v1803_v2  ;;  %1707 = vrot.lane.b32.xlu1 %v2513_v6, %s2696_s6  ;;  %v2517_v43 = vld [vmem:[%s2731_s17 + $0x1a2] sm:$0xff] }
 0x1c9   : > { %1675 = vrot.lane.b32.xlu0 %v2497_v50, %s2696_s6  ;;  %v2501_v2 = vld [vmem:[%s2731_s17 + $0xe2] sm:$0xff] }
 0x1ca   : > { %v1314_v13 = vpop.permute.xlu1 %1313  ;;  %v1282_v3 = vpop.permute.xlu0 %1281 }
 0x1cb   : > { %1387 = vst.msk [vmem:[#allocation2 + $0xb8] sm:$0xff] %vm1363_vm7, %v1314_v13  ;;  %1371 = vst.msk [vmem:[#allocation2 + $0x38] sm:$0xff] %vm1363_vm7, %v1282_v3 }
 0x1cc   : > { %1131 = vrot.lane.b32.xlu1 %v2513_v6, %s2693_s22 }
 0x1cd   : > { %1099 = vrot.lane.b32.xlu0 %v2497_v50, %s2693_s22 }
 0x1ce   : > { %v1505_v25 = vpop.permute.xlu1 %1504  ;;  %v1473_v52 = vpop.permute.xlu0 %1472 }
 0x1cf   : > { %1579 = vst.msk [vmem:[#allocation2 + $0xb0] sm:$0xff] %vm1556_vm8, %v1505_v25  ;;  %1563 = vst.msk [vmem:[#allocation2 + $0x30] sm:$0xff] %vm1556_vm8, %v1473_v52 }
 0x1d0   : > { %1323 = vrot.lane.b32.xlu1 %v2450_v42, %s2694_s23 }
 0x1d1   : > { %1291 = vrot.lane.b32.xlu0 %v2434_v53, %s2694_s23 }
 0x1d2   : > { %v929_v24 = vpop.permute.xlu1 %928  ;;  %v897_v44 = vpop.permute.xlu0 %896 }
 0x1d3   : > { %1001 = vst.msk [vmem:[#allocation2 + $0xc0] sm:$0xff] %vm976_vm5, %v929_v24  ;;  %985 = vst.msk [vmem:[#allocation2 + $0x40] sm:$0xff] %vm976_vm5, %v897_v44 }
 0x1d4   : > { %1293 = vrot.lane.b32.xlu1 %v2435_v45, %s2694_s23 }
 0x1d5   : > { %747 = vrot.lane.b32.xlu0 %v2450_v42, %s2691_s20 }
 0x1d6   : > { %v1507_v8 = vpop.permute.xlu1 %1506  ;;  %v1475_v55 = vpop.permute.xlu0 %1474 }
 0x1d7   : > { %1580 = vst.msk [vmem:[#allocation2 + $0xb8] sm:$0xff] %vm1556_vm8, %v1507_v8  ;;  %1564 = vst.msk [vmem:[#allocation2 + $0x38] sm:$0xff] %vm1556_vm8, %v1475_v55 }
 0x1d8   : > { %1484 = vrot.lane.b32.xlu1 %v2466_v9, %s2695_s24 }
 0x1d9   : > { %1325 = vrot.lane.b32.xlu0 %v2451_v62, %s2694_s23 }
 0x1da   : > { %v1698_v20 = vpop.permute.xlu1 %1697  ;;  %v1666_v39 = vpop.permute.xlu0 %1665 }
 0x1db   : > { %1772 = vst.msk [vmem:[#allocation2 + $0xb0] sm:$0xff] %vm1749_vm9, %v1698_v20  ;;  %1756 = vst.msk [vmem:[#allocation2 + $0x30] sm:$0xff] %vm1749_vm9, %v1666_v39 }
 0x1dc   : > { %749 = vrot.lane.b32.xlu1 %v2451_v62, %s2691_s20 }
 0x1dd   : > { %1516 = vrot.lane.b32.xlu0 %v2482_v61, %s2695_s24 }
 0x1de   : > { %v931_v19 = vpop.permute.xlu1 %930 }
 0x1df   : > { %v899_v54 = vpop.permute.xlu0 %898  ;;  %1002 = vst.msk [vmem:[#allocation2 + $0xc8] sm:$0xff] %vm976_vm5, %v931_v19 }
 0x1e0   : > { %986 = vst.msk [vmem:[#allocation2 + $0x48] sm:$0xff] %vm976_vm5, %v899_v54  ;;  %940 = vrot.lane.b32.xlu1 %v2482_v61, %s2692_s21 }
 0x1e1   : > { %908 = vrot.lane.b32.xlu0 %v2466_v9, %s2692_s21 }
 0x1e2   : > { %v1122_v21 = vpop.permute.xlu1 %1121  ;;  %v1788_v5 = vld [vmem:[#allocation2 + $0x30] sm:$0xff] }
 0x1e3   : > { %v1090_v28 = vpop.permute.xlu0 %1089  ;;  %v1804_v47 = vld [vmem:[#allocation2 + $0xb0] sm:$0xff]  ;;  %1194 = vst.msk [vmem:[#allocation2 + $0xc0] sm:$0xff] %vm1169_vm6, %v1122_v21  ;;  %2611 = vmatprep.mubr.msk.f32.mxu0 %vm1826_vm10, %v1788_v5 }
 0x1e4   : > { %1178 = vst.msk [vmem:[#allocation2 + $0x40] sm:$0xff] %vm1169_vm6, %v1090_v28  ;;  %2635 = vmatprep.mubr.msk.f32.mxu1 %vm1826_vm10, %v1804_v47  ;;  %1518 = vrot.lane.b32.xlu1 %v2483_v38, %s2695_s24 }
 0x1e5   : > { %1486 = vrot.lane.b32.xlu0 %v2467_v57, %s2695_s24 }
 0x1e6   : > { %v1700_v33 = vpop.permute.xlu1 %1699 }
 0x1e7   : > { %v1668_v34 = vpop.permute.xlu0 %1667  ;;  %1773 = vst.msk [vmem:[#allocation2 + $0xb8] sm:$0xff] %vm1749_vm9, %v1700_v33 }
 0x1e8   : > { %1757 = vst.msk [vmem:[#allocation2 + $0x38] sm:$0xff] %vm1749_vm9, %v1668_v34  ;;  %1709 = vrot.lane.b32.xlu1 %v2514_v31, %s2696_s6 }
 0x1e9   : > { %1677 = vrot.lane.b32.xlu0 %v2498_v32, %s2696_s6 }
 0x1ea   : > { %v1124_v35 = vpop.permute.xlu1 %1123 }
 0x1eb   : > { %v1092_v36 = vpop.permute.xlu0 %1091  ;;  %1195 = vst.msk [vmem:[#allocation2 + $0xc8] sm:$0xff] %vm1169_vm6, %v1124_v35 }
 0x1ec   : > { %1179 = vst.msk [vmem:[#allocation2 + $0x48] sm:$0xff] %vm1169_vm6, %v1092_v36  ;;  %942 = vrot.lane.b32.xlu1 %v2483_v38, %s2692_s21 }
 0x1ed   : > { %910 = vrot.lane.b32.xlu0 %v2467_v57, %s2692_s21 }
 0x1ee   : > { %v1316_v37 = vpop.permute.xlu1 %1315  ;;  %v1805_v4 = vld [vmem:[#allocation2 + $0xb8] sm:$0xff] }
 0x1ef   : > { %v1284_v49 = vpop.permute.xlu0 %1283  ;;  %v1789_v17 = vld [vmem:[#allocation2 + $0x38] sm:$0xff]  ;;  %1388 = vst.msk [vmem:[#allocation2 + $0xc0] sm:$0xff] %vm1363_vm7, %v1316_v37  ;;  %2636 = vmatmul.mubr.msk.f32.gmra.mrb[6].mxu1 %vm1826_vm10, %v1805_v4 }
 0x1f0   : > { %1372 = vst.msk [vmem:[#allocation2 + $0x40] sm:$0xff] %vm1363_vm7, %v1284_v49  ;;  %2612 = vmatmul.mubr.msk.f32.gmra.mrb[6].mxu0 %vm1826_vm10, %v1789_v17  ;;  %1133 = vrot.lane.b32.xlu1 %v2514_v31, %s2693_s22 }
 0x1f1   : > { %1101 = vrot.lane.b32.xlu0 %v2498_v32, %s2693_s22 }
 0x1f2   : > { %v1318_v26 = vpop.permute.xlu1 %1317 }
 0x1f3   : > { %v1286_v46 = vpop.permute.xlu0 %1285  ;;  %1389 = vst.msk [vmem:[#allocation2 + $0xc8] sm:$0xff] %vm1363_vm7, %v1318_v26 }
 0x1f4   : > { %1373 = vst.msk [vmem:[#allocation2 + $0x48] sm:$0xff] %vm1363_vm7, %v1286_v46  ;;  %1711 = vrot.lane.b32.xlu1 %v2515_v27, %s2696_s6 }
 0x1f5   : > { %1679 = vrot.lane.b32.xlu0 %v2499_v48, %s2696_s6 }
 0x1f6   : > { %v1509_v29 = vpop.permute.xlu1 %1508 }
 0x1f7   : > { %v1477_v12 = vpop.permute.xlu0 %1476  ;;  %1581 = vst.msk [vmem:[#allocation2 + $0xc0] sm:$0xff] %vm1556_vm8, %v1509_v29 }
 0x1f8   : > { %1565 = vst.msk [vmem:[#allocation2 + $0x40] sm:$0xff] %vm1556_vm8, %v1477_v12  ;;  %1135 = vrot.lane.b32.xlu1 %v2515_v27, %s2693_s22 }
 0x1f9   : > { %1103 = vrot.lane.b32.xlu0 %v2499_v48, %s2693_s22 }
 0x1fa   : > { %v933_v16 = vpop.permute.xlu1 %932 }
 0x1fb   : > { %v901_v56 = vpop.permute.xlu0 %900  ;;  %1003 = vst.msk [vmem:[#allocation2 + $0xd0] sm:$0xff] %vm976_vm5, %v933_v16 }
 0x1fc   : > { %987 = vst.msk [vmem:[#allocation2 + $0x50] sm:$0xff] %vm976_vm5, %v901_v56  ;;  %1327 = vrot.lane.b32.xlu1 %v2452_v11, %s2694_s23 }
 0x1fd   : > { %1295 = vrot.lane.b32.xlu0 %v2436_v1, %s2694_s23 }
 0x1fe   : > { %v1511_v23 = vpop.permute.xlu1 %1510 }
 0x1ff   : > { %v1479_v41 = vpop.permute.xlu0 %1478  ;;  %1582 = vst.msk [vmem:[#allocation2 + $0xc8] sm:$0xff] %vm1556_vm8, %v1511_v23 }
 0x200   : > { %1566 = vst.msk [vmem:[#allocation2 + $0x48] sm:$0xff] %vm1556_vm8, %v1479_v41  ;;  %1329 = vrot.lane.b32.xlu1 %v2453_v10, %s2694_s23 }
 0x201   : > { %1297 = vrot.lane.b32.xlu0 %v2437_v63, %s2694_s23 }
 0x202   : > { %v1702_v60 = vpop.permute.xlu1 %1701 }
 0x203   : > { %v1670_v58 = vpop.permute.xlu0 %1669  ;;  %1774 = vst.msk [vmem:[#allocation2 + $0xc0] sm:$0xff] %vm1749_vm9, %v1702_v60 }
 0x204   : > { %1758 = vst.msk [vmem:[#allocation2 + $0x40] sm:$0xff] %vm1749_vm9, %v1670_v58  ;;  %1520 = vrot.lane.b32.xlu1 %v2484_v22, %s2695_s24 }
 0x205   : > { %1488 = vrot.lane.b32.xlu0 %v2468_v40, %s2695_s24 }
 0x206   : > { %v935_v59 = vpop.permute.xlu1 %934 }
 0x207   : > { %v903_v30 = vpop.permute.xlu0 %902  ;;  %1004 = vst.msk [vmem:[#allocation2 + $0xd8] sm:$0xff] %vm976_vm5, %v935_v59 }
 0x208   : > { %988 = vst.msk [vmem:[#allocation2 + $0x58] sm:$0xff] %vm976_vm5, %v903_v30  ;;  %1522 = vrot.lane.b32.xlu1 %v2485_v7, %s2695_s24 }
 0x209   : > { %1490 = vrot.lane.b32.xlu0 %v2469_v51, %s2695_s24 }
 0x20a   : > { %v1126_v6 = vpop.permute.xlu1 %1125  ;;  %v1806_v18 = vld [vmem:[#allocation2 + $0xc0] sm:$0xff] }
 0x20b   : > { %v1094_v50 = vpop.permute.xlu0 %1093  ;;  %v1790_v14 = vld [vmem:[#allocation2 + $0x40] sm:$0xff]  ;;  %1196 = vst.msk [vmem:[#allocation2 + $0xd0] sm:$0xff] %vm1169_vm6, %v1126_v6  ;;  %2638 = vmatprep.mubr.msk.f32.mxu1 %vm1826_vm10, %v1806_v18 }
 0x20c   : > { %1180 = vst.msk [vmem:[#allocation2 + $0x50] sm:$0xff] %vm1169_vm6, %v1094_v50  ;;  %2614 = vmatprep.mubr.msk.f32.mxu0 %vm1826_vm10, %v1790_v14  ;;  %1713 = vrot.lane.b32.xlu1 %v2516_v15, %s2696_s6 }
 0x20d   : > { %1681 = vrot.lane.b32.xlu0 %v2500_v0, %s2696_s6 }
 0x20e   : > { %v1704_v13 = vpop.permute.xlu1 %1703 }
 0x20f   : > { %v1672_v3 = vpop.permute.xlu0 %1671  ;;  %1775 = vst.msk [vmem:[#allocation2 + $0xc8] sm:$0xff] %vm1749_vm9, %v1704_v13  ;;  %v3737_v13 = vld [vmem:[%s3808_s2] ss:$0 sm:$0xff] }
 0x210   : > { %1759 = vst.msk [vmem:[#allocation2 + $0x48] sm:$0xff] %vm1749_vm9, %v1672_v3  ;;  %1715 = vrot.lane.b32.xlu1 %v2517_v43, %s2696_s6 }
 0x211   : > { %1683 = vrot.lane.b32.xlu0 %v2501_v2, %s2696_s6 }
 0x212   : > { %v1128_v42 = vpop.permute.xlu1 %1127 }
 0x213   : > { %v1096_v53 = vpop.permute.xlu0 %1095  ;;  %1197 = vst.msk [vmem:[#allocation2 + $0xd8] sm:$0xff] %vm1169_vm6, %v1128_v42 }
 0x214   : > { %1181 = vst.msk [vmem:[#allocation2 + $0x58] sm:$0xff] %vm1169_vm6, %v1096_v53 }
 0x216   : > { %v1320_v25 = vpop.permute.xlu1 %1319  ;;  %v1807_v24 = vld [vmem:[#allocation2 + $0xc8] sm:$0xff] }
 0x217   : > { %v1288_v52 = vpop.permute.xlu0 %1287  ;;  %v1791_v45 = vld [vmem:[#allocation2 + $0x48] sm:$0xff]  ;;  %1390 = vst.msk [vmem:[#allocation2 + $0xd0] sm:$0xff] %vm1363_vm7, %v1320_v25  ;;  %2639 = vmatmul.mubr.msk.f32.gmra.mrb[8].mxu1 %vm1826_vm10, %v1807_v24 }
 0x218   : > { %1374 = vst.msk [vmem:[#allocation2 + $0x50] sm:$0xff] %vm1363_vm7, %v1288_v52  ;;  %2615 = vmatmul.mubr.msk.f32.gmra.mrb[8].mxu0 %vm1826_vm10, %v1791_v45 }
 0x21a   : > { %v1290_v44 = vpop.permute.xlu1 %1289 }
 0x21b   : > { %v744_v9 = vpop.permute.xlu0 %743  ;;  %1375 = vst.msk [vmem:[#allocation2 + $0x58] sm:$0xff] %vm1363_vm7, %v1290_v44 }
 0x21c   : > { %812 = vst.msk [vmem:[#allocation2 + $0xe0] sm:$0xff] %vm783_vm4, %v744_v9 }
 0x21e   : > { %v1481_v62 = vpop.permute.xlu1 %1480 }
 0x21f   : > { %v1322_v8 = vpop.permute.xlu0 %1321  ;;  %1567 = vst.msk [vmem:[#allocation2 + $0x50] sm:$0xff] %vm1556_vm8, %v1481_v62 }
 0x220   : > { %1391 = vst.msk [vmem:[#allocation2 + $0xd8] sm:$0xff] %vm1363_vm7, %v1322_v8 }
 0x222   : > { %v746_v55 = vpop.permute.xlu1 %745 }
 0x223   : > { %v1513_v61 = vpop.permute.xlu0 %1512  ;;  %813 = vst.msk [vmem:[#allocation2 + $0xe8] sm:$0xff] %vm783_vm4, %v746_v55 }
 0x224   : > { %1583 = vst.msk [vmem:[#allocation2 + $0xd0] sm:$0xff] %vm1556_vm8, %v1513_v61 }
 0x226   : > { %v937_v20 = vpop.permute.xlu1 %936 }
 0x227   : > { %v905_v39 = vpop.permute.xlu0 %904  ;;  %1005 = vst.msk [vmem:[#allocation2 + $0xe0] sm:$0xff] %vm976_vm5, %v937_v20 }
 0x228   : > { %989 = vst.msk [vmem:[#allocation2 + $0x60] sm:$0xff] %vm976_vm5, %v905_v39 }
 0x22a   : > { %v1515_v19 = vpop.permute.xlu1 %1514 }
 0x22b   : > { %v1483_v54 = vpop.permute.xlu0 %1482  ;;  %1584 = vst.msk [vmem:[#allocation2 + $0xd8] sm:$0xff] %vm1556_vm8, %v1515_v19 }
 0x22c   : > { %1568 = vst.msk [vmem:[#allocation2 + $0x58] sm:$0xff] %vm1556_vm8, %v1483_v54 }
 0x22e   : > { %v1706_v38 = vpop.permute.xlu1 %1705 }
 0x22f   : > { %v1674_v57 = vpop.permute.xlu0 %1673  ;;  %1776 = vst.msk [vmem:[#allocation2 + $0xd0] sm:$0xff] %vm1749_vm9, %v1706_v38 }
 0x230   : > { %1760 = vst.msk [vmem:[#allocation2 + $0x50] sm:$0xff] %vm1749_vm9, %v1674_v57 }
 0x232   : > { %v939_v21 = vpop.permute.xlu1 %938 }
 0x233   : > { %v907_v28 = vpop.permute.xlu0 %906  ;;  %1006 = vst.msk [vmem:[#allocation2 + $0xe8] sm:$0xff] %vm976_vm5, %v939_v21 }
 0x234   : > { %990 = vst.msk [vmem:[#allocation2 + $0x68] sm:$0xff] %vm976_vm5, %v907_v28 }
 0x236   : > { %v1130_v5 = vpop.permute.xlu1 %1129  ;;  %v1808_v32 = vld [vmem:[#allocation2 + $0xd0] sm:$0xff] }
 0x237   : > { %v1098_v47 = vpop.permute.xlu0 %1097  ;;  %v1792_v31 = vld [vmem:[#allocation2 + $0x50] sm:$0xff]  ;;  %1198 = vst.msk [vmem:[#allocation2 + $0xe0] sm:$0xff] %vm1169_vm6, %v1130_v5  ;;  %2641 = vmatprep.mubr.msk.f32.mxu1 %vm1826_vm10, %v1808_v32 }
 0x238   : > { %1182 = vst.msk [vmem:[#allocation2 + $0x60] sm:$0xff] %vm1169_vm6, %v1098_v47  ;;  %2617 = vmatprep.mubr.msk.f32.mxu0 %vm1826_vm10, %v1792_v31 }
 0x23a   : > { %v1708_v33 = vpop.permute.xlu1 %1707 }
 0x23b   : > { %v1676_v34 = vpop.permute.xlu0 %1675  ;;  %1777 = vst.msk [vmem:[#allocation2 + $0xd8] sm:$0xff] %vm1749_vm9, %v1708_v33 }
 0x23c   : > { %1761 = vst.msk [vmem:[#allocation2 + $0x58] sm:$0xff] %vm1749_vm9, %v1676_v34 }
 0x23e   : > { %v1132_v35 = vpop.permute.xlu1 %1131 }
 0x23f   : > { %v1100_v36 = vpop.permute.xlu0 %1099  ;;  %1199 = vst.msk [vmem:[#allocation2 + $0xe8] sm:$0xff] %vm1169_vm6, %v1132_v35 }
 0x240   : > { %1183 = vst.msk [vmem:[#allocation2 + $0x68] sm:$0xff] %vm1169_vm6, %v1100_v36 }
 0x242   : > { %v1324_v37 = vpop.permute.xlu1 %1323  ;;  %v1809_v4 = vld [vmem:[#allocation2 + $0xd8] sm:$0xff] }
 0x243   : > { %v1292_v49 = vpop.permute.xlu0 %1291  ;;  %v1793_v17 = vld [vmem:[#allocation2 + $0x58] sm:$0xff]  ;;  %1392 = vst.msk [vmem:[#allocation2 + $0xe0] sm:$0xff] %vm1363_vm7, %v1324_v37  ;;  %2642 = vmatmul.mubr.msk.f32.gmra.mrb[10].mxu1 %vm1826_vm10, %v1809_v4 }
 0x244   : > { %1376 = vst.msk [vmem:[#allocation2 + $0x60] sm:$0xff] %vm1363_vm7, %v1292_v49  ;;  %2618 = vmatmul.mubr.msk.f32.gmra.mrb[10].mxu0 %vm1826_vm10, %v1793_v17 }
 0x246   : > { %v1294_v27 = vpop.permute.xlu1 %1293 }
 0x247   : > { %v748_v48 = vpop.permute.xlu0 %747  ;;  %1377 = vst.msk [vmem:[#allocation2 + $0x68] sm:$0xff] %vm1363_vm7, %v1294_v27 }
 0x248   : > { %814 = vst.msk [vmem:[#allocation2 + $0xf0] sm:$0xff] %vm783_vm4, %v748_v48 }
 0x24a   : > { %v1485_v26 = vpop.permute.xlu1 %1484  ;;  %v2604_v29 = vpop.f32.mrb[0].mxu0 }
 0x24b   : > { %v1326_v46 = vpop.permute.xlu0 %1325  ;;  %1569 = vst.msk [vmem:[#allocation2 + $0x60] sm:$0xff] %vm1556_vm8, %v1485_v26  ;;  %v2628_v12 = vpop.f32.mrb[0].mxu1  ;;  %v1999_v3 = vadd.f32 %v2604_v29, %v3737_v13 }
 0x24c   : > { %1393 = vst.msk [vmem:[#allocation2 + $0xe8] sm:$0xff] %vm1363_vm7, %v1326_v46  ;;  %v1993_v11 = vpop.f32.mrb[1].mxu0  ;;  %v2073_v1 = vpop.f32.mrb[1].mxu1  ;;  %v2079_v42 = vadd.f32 %v2628_v12, %v3737_v13 }
 0x24d   : > { %v1994_v52 = vadd.f32 %v3737_v13, %v1993_v11  ;;  %v2074_v45 = vadd.f32 %v3737_v13, %v2073_v1  ;;  %v2153_v39 = vmax.f32 %v1999_v3, 0.0 }
 0x24e   : > { %v750_v16 = vpop.permute.xlu1 %749  ;;  %v2169_v19 = vmax.f32 %v2079_v42, 0.0 }
 0x24f   : > { %v1517_v56 = vpop.permute.xlu0 %1516  ;;  %815 = vst.msk [vmem:[#allocation2 + $0xf8] sm:$0xff] %vm783_vm4, %v750_v16  ;;  %v2152_v28 = vmax.f32 %v1994_v52, 0.0  ;;  %v2168_v5 = vmax.f32 %v2074_v45, 0.0 }
 0x250   : > { %1585 = vst.msk [vmem:[#allocation2 + $0xe0] sm:$0xff] %vm1556_vm8, %v1517_v56 }
 0x252   : > { %v941_v10 = vpop.permute.xlu1 %940 }
 0x253   : > { %v909_v63 = vpop.permute.xlu0 %908  ;;  %1007 = vst.msk [vmem:[#allocation2 + $0xf0] sm:$0xff] %vm976_vm5, %v941_v10 }
 0x254   : > { %991 = vst.msk [vmem:[#allocation2 + $0x70] sm:$0xff] %vm976_vm5, %v909_v63 }
 0x256   : > { %v1519_v23 = vpop.permute.xlu1 %1518 }
 0x257   : > { %v1487_v41 = vpop.permute.xlu0 %1486  ;;  %1586 = vst.msk [vmem:[#allocation2 + $0xe8] sm:$0xff] %vm1556_vm8, %v1519_v23 }
 0x258   : > { %1570 = vst.msk [vmem:[#allocation2 + $0x68] sm:$0xff] %vm1556_vm8, %v1487_v41 }
 0x25a   : > { %v1710_v22 = vpop.permute.xlu1 %1709 }
 0x25b   : > { %v1678_v40 = vpop.permute.xlu0 %1677  ;;  %1778 = vst.msk [vmem:[#allocation2 + $0xe0] sm:$0xff] %vm1749_vm9, %v1710_v22 }
 0x25c   : > { %1762 = vst.msk [vmem:[#allocation2 + $0x60] sm:$0xff] %vm1749_vm9, %v1678_v40 }
 0x25e   : > { %v943_v60 = vpop.permute.xlu1 %942 }
 0x25f   : > { %v911_v58 = vpop.permute.xlu0 %910  ;;  %1008 = vst.msk [vmem:[#allocation2 + $0xf8] sm:$0xff] %vm976_vm5, %v943_v60 }
 0x260   : > { %992 = vst.msk [vmem:[#allocation2 + $0x78] sm:$0xff] %vm976_vm5, %v911_v58 }
 0x262   : > { %v1134_v7 = vpop.permute.xlu1 %1133  ;;  %v1810_v30 = vld [vmem:[#allocation2 + $0xe0] sm:$0xff] }
 0x263   : > { %v1102_v51 = vpop.permute.xlu0 %1101  ;;  %v1794_v59 = vld [vmem:[#allocation2 + $0x60] sm:$0xff]  ;;  %1200 = vst.msk [vmem:[#allocation2 + $0xf0] sm:$0xff] %vm1169_vm6, %v1134_v7  ;;  %2644 = vmatprep.mubr.msk.f32.mxu1 %vm1826_vm10, %v1810_v30 }
 0x264   : > { %1184 = vst.msk [vmem:[#allocation2 + $0x70] sm:$0xff] %vm1169_vm6, %v1102_v51  ;;  %2620 = vmatprep.mubr.msk.f32.mxu0 %vm1826_vm10, %v1794_v59 }
 0x266   : > { %v1712_v15 = vpop.permute.xlu1 %1711 }
 0x267   : > { %v1680_v0 = vpop.permute.xlu0 %1679  ;;  %1779 = vst.msk [vmem:[#allocation2 + $0xe8] sm:$0xff] %vm1749_vm9, %v1712_v15 }
 0x268   : > { %1763 = vst.msk [vmem:[#allocation2 + $0x68] sm:$0xff] %vm1749_vm9, %v1680_v0 }
 0x26a   : > { %v1136_v6 = vpop.permute.xlu1 %1135 }
 0x26b   : > { %v1104_v50 = vpop.permute.xlu0 %1103  ;;  %1201 = vst.msk [vmem:[#allocation2 + $0xf8] sm:$0xff] %vm1169_vm6, %v1136_v6 }
 0x26c   : > { %1185 = vst.msk [vmem:[#allocation2 + $0x78] sm:$0xff] %vm1169_vm6, %v1104_v50 }
 0x26e   : > { %v1328_v14 = vpop.permute.xlu1 %1327  ;;  %v1811_v2 = vld [vmem:[#allocation2 + $0xe8] sm:$0xff] }
 0x26f   : > { %v1296_v18 = vpop.permute.xlu0 %1295  ;;  %v1795_v43 = vld [vmem:[#allocation2 + $0x68] sm:$0xff]  ;;  %1394 = vst.msk [vmem:[#allocation2 + $0xf0] sm:$0xff] %vm1363_vm7, %v1328_v14  ;;  %2645 = vmatmul.mubr.msk.f32.gmra.mrb[12].mxu1 %vm1826_vm10, %v1811_v2 }
 0x270   : > { %1378 = vst.msk [vmem:[#allocation2 + $0x70] sm:$0xff] %vm1363_vm7, %v1296_v18  ;;  %2621 = vmatmul.mubr.msk.f32.gmra.mrb[12].mxu0 %vm1826_vm10, %v1795_v43 }
 0x272   : > { %v1330_v53 = vpop.permute.xlu1 %1329  ;;  %v2607_v24 = vpop.f32.mrb[2].mxu0 }
 0x273   : > { %v1298_v25 = vpop.permute.xlu0 %1297  ;;  %1395 = vst.msk [vmem:[#allocation2 + $0xf8] sm:$0xff] %vm1363_vm7, %v1330_v53  ;;  %v2631_v44 = vpop.f32.mrb[2].mxu1  ;;  %v2009_v9 = vadd.f32 %v2607_v24, %v3737_v13 }
 0x274   : > { %1379 = vst.msk [vmem:[#allocation2 + $0x78] sm:$0xff] %vm1363_vm7, %v1298_v25  ;;  %v2089_v62 = vadd.f32 %v2631_v44, %v3737_v13  ;;  %v2003_v8 = vpop.f32.mrb[3].mxu0  ;;  %v2083_v55 = vpop.f32.mrb[3].mxu1 }
 0x275   : > { %v2004_v61 = vadd.f32 %v3737_v13, %v2003_v8  ;;  %v2084_v20 = vadd.f32 %v3737_v13, %v2083_v55  ;;  %v2155_v54 = vmax.f32 %v2009_v9, 0.0 }
 0x276   : > { %v2171_v38 = vmax.f32 %v2089_v62, 0.0  ;;  %v1521_v57 = vpop.permute.xlu1 %1520 }
 0x277   : > { %v1489_v21 = vpop.permute.xlu0 %1488  ;;  %v2154_v47 = vmax.f32 %v2004_v61, 0.0  ;;  %v2170_v31 = vmax.f32 %v2084_v20, 0.0  ;;  %1587 = vst.msk [vmem:[#allocation2 + $0xf0] sm:$0xff] %vm1556_vm8, %v1521_v57  ;;  %v2185_v32 = vmax.f32 %v2153_v39, %v2155_v54 }
 0x278   : > { %1571 = vst.msk [vmem:[#allocation2 + $0x70] sm:$0xff] %vm1556_vm8, %v1489_v21  ;;  %v2193_v33 = vmax.f32 %v2169_v19, %v2171_v38 }
 0x279   : > { %v2184_v34 = vmax.f32 %v2152_v28, %v2154_v47  ;;  %v2192_v35 = vmax.f32 %v2168_v5, %v2170_v31  ;;  %2201 = vst [vmem:[#allocation3 + $0x8] sm:$0xff] %v2185_v32 }
 0x27a   : > { %2209 = vst [vmem:[#allocation3 + $0x48] sm:$0xff] %v2193_v33  ;;  %v1523_v36 = vpop.permute.xlu1 %1522 }
 0x27b   : > { %v1491_v37 = vpop.permute.xlu0 %1490  ;;  %2200 = vst [vmem:[#allocation3] sm:$0xff] %v2184_v34  ;;  %2208 = vst [vmem:[#allocation3 + $0x40] sm:$0xff] %v2192_v35 }
 0x27c   : > { %1588 = vst.msk [vmem:[#allocation2 + $0xf8] sm:$0xff] %vm1556_vm8, %v1523_v36  ;;  %1572 = vst.msk [vmem:[#allocation2 + $0x78] sm:$0xff] %vm1556_vm8, %v1491_v37 }
 0x27e   : > { %v1714_v49 = vpop.permute.xlu1 %1713 }
 0x27f   : > { %v1682_v17 = vpop.permute.xlu0 %1681  ;;  %1780 = vst.msk [vmem:[#allocation2 + $0xf0] sm:$0xff] %vm1749_vm9, %v1714_v49 }
 0x280   : > { %1764 = vst.msk [vmem:[#allocation2 + $0x70] sm:$0xff] %vm1749_vm9, %v1682_v17 }
 0x282   : > { %v2216_v4 = vld [vmem:[#allocation3] ss:$2 sm:$0xff]  ;;  %v2232_v27 = vld [vmem:[#allocation3 + $0x1] ss:$2 sm:$0xff]  ;;  %v1716_v26 = vpop.permute.xlu1 %1715 }
 0x283   : > { %v2224_v48 = vld [vmem:[#allocation3 + $0x40] ss:$2 sm:$0xff]  ;;  %v1684_v46 = vpop.permute.xlu0 %1683  ;;  %v2247_v29 = vmax.f32 %v2216_v4, %v2232_v27  ;;  %v2240_v12 = vld [vmem:[#allocation3 + $0x41] ss:$2 sm:$0xff]  ;;  %1781 = vst.msk [vmem:[#allocation2 + $0xf8] sm:$0xff] %vm1749_vm9, %v1716_v26 }
 0x284   : > { %1765 = vst.msk [vmem:[#allocation2 + $0x78] sm:$0xff] %vm1749_vm9, %v1684_v46  ;;  %v2251_v11 = vmax.f32 %v2224_v48, %v2240_v12 }
 0x285   : > { %2255 = vst [vmem:[%s3763_s16] sm:$0xff] %v2247_v29 }
 0x286   : > { %2259 = vst [vmem:[%s3763_s16 + $0x20] sm:$0xff] %v2251_v11  ;;  %v1812_v16 = vld [vmem:[#allocation2 + $0xf0] sm:$0xff] }
 0x287   : > { %v1796_v1 = vld [vmem:[#allocation2 + $0x70] sm:$0xff]  ;;  %2647 = vmatprep.mubr.msk.f32.mxu1 %vm1826_vm10, %v1812_v16 }
 0x288   : > { %2623 = vmatprep.mubr.msk.f32.mxu0 %vm1826_vm10, %v1796_v1 }
 0x28a   : > { %v1813_v10 = vld [vmem:[#allocation2 + $0xf8] sm:$0xff] }
 0x28b   : > { %v1797_v56 = vld [vmem:[#allocation2 + $0x78] sm:$0xff]  ;;  %2648 = vmatmul.mubr.msk.f32.gmra.mrb[14].mxu1 %vm1826_vm10, %v1813_v10 }
 0x28c   : > { %2624 = vmatmul.mubr.msk.f32.gmra.mrb[14].mxu0 %vm1826_vm10, %v1797_v56 }
 0x29a   : > { %v2610_v63 = vpop.f32.mrb[4].mxu0 }
 0x29b   : > { %v2634_v23 = vpop.f32.mrb[4].mxu1  ;;  %v2013_v41 = vpop.f32.mrb[5].mxu0  ;;  %v2019_v40 = vadd.f32 %v2610_v63, %v3737_v13 }
 0x29c   : > { %v2093_v22 = vpop.f32.mrb[5].mxu1  ;;  %v2099_v60 = vadd.f32 %v2634_v23, %v3737_v13  ;;  %v2014_v58 = vadd.f32 %v3737_v13, %v2013_v41 }
 0x29d   : > { %v2094_v7 = vadd.f32 %v3737_v13, %v2093_v22  ;;  %v2157_v18 = vmax.f32 %v2019_v40, 0.0 }
 0x29e   : > { %v2173_v43 = vmax.f32 %v2099_v60, 0.0  ;;  %v2156_v42 = vmax.f32 %v2014_v58, 0.0 }
 0x29f   : > { %v2172_v53 = vmax.f32 %v2094_v7, 0.0 }
 0x2c2   : > { %v2637_v59 = vpop.f32.mrb[6].mxu1 }
 0x2c3   : > { %v2613_v51 = vpop.f32.mrb[6].mxu0  ;;  %v2109_v15 = vadd.f32 %v2637_v59, %v3737_v13  ;;  %v2103_v6 = vpop.f32.mrb[7].mxu1 }
 0x2c4   : > { %v2029_v30 = vadd.f32 %v2613_v51, %v3737_v13  ;;  %v2023_v0 = vpop.f32.mrb[7].mxu0  ;;  %v2104_v14 = vadd.f32 %v3737_v13, %v2103_v6 }
 0x2c5   : > { %v2024_v50 = vadd.f32 %v3737_v13, %v2023_v0  ;;  %v2175_v3 = vmax.f32 %v2109_v15, 0.0 }
 0x2c6   : > { %v2159_v2 = vmax.f32 %v2029_v30, 0.0  ;;  %v2174_v52 = vmax.f32 %v2104_v14, 0.0 }
 0x2c7   : > { %v2158_v25 = vmax.f32 %v2024_v50, 0.0  ;;  %v2195_v24 = vmax.f32 %v2173_v43, %v2175_v3 }
 0x2c8   : > { %v2187_v45 = vmax.f32 %v2157_v18, %v2159_v2  ;;  %v2194_v9 = vmax.f32 %v2172_v53, %v2174_v52 }
 0x2c9   : > { %v2186_v44 = vmax.f32 %v2156_v42, %v2158_v25  ;;  %2211 = vst [vmem:[#allocation3 + $0x58] sm:$0xff] %v2195_v24 }
 0x2ca   : > { %2203 = vst [vmem:[#allocation3 + $0x18] sm:$0xff] %v2187_v45  ;;  %2210 = vst [vmem:[#allocation3 + $0x50] sm:$0xff] %v2194_v9 }
 0x2cb   : > { %2202 = vst [vmem:[#allocation3 + $0x10] sm:$0xff] %v2186_v44 }
 0x2d1   : > { %v2226_v55 = vld [vmem:[#allocation3 + $0x50] ss:$2 sm:$0xff]  ;;  %v2242_v20 = vld [vmem:[#allocation3 + $0x51] ss:$2 sm:$0xff] }
 0x2d2   : > { %v2218_v62 = vld [vmem:[#allocation3 + $0x10] ss:$2 sm:$0xff]  ;;  %v2234_v8 = vld [vmem:[#allocation3 + $0x11] ss:$2 sm:$0xff]  ;;  %v2252_v39 = vmax.f32 %v2226_v55, %v2242_v20 }
 0x2d3   : > { %v2248_v61 = vmax.f32 %v2218_v62, %v2234_v8 }
 0x2d4   : > { %2260 = vst [vmem:[%s3763_s16 + $0x28] sm:$0xff] %v2252_v39 }
 0x2d5   : > { %2256 = vst [vmem:[%s3763_s16 + $0x8] sm:$0xff] %v2248_v61 }
 0x2ea   : > { %v2640_v54 = vpop.f32.mrb[8].mxu1 }
 0x2eb   : > { %v2616_v19 = vpop.f32.mrb[8].mxu0  ;;  %v2113_v57 = vpop.f32.mrb[9].mxu1  ;;  %v2119_v28 = vadd.f32 %v2640_v54, %v3737_v13 }
 0x2ec   : > { %v2033_v38 = vpop.f32.mrb[9].mxu0  ;;  %v2039_v21 = vadd.f32 %v2616_v19, %v3737_v13  ;;  %v2114_v47 = vadd.f32 %v3737_v13, %v2113_v57 }
 0x2ed   : > { %v2034_v5 = vadd.f32 %v3737_v13, %v2033_v38  ;;  %v2177_v4 = vmax.f32 %v2119_v28, 0.0 }
 0x2ee   : > { %v2161_v17 = vmax.f32 %v2039_v21, 0.0  ;;  %v2176_v46 = vmax.f32 %v2114_v47, 0.0 }
 0x2ef   : > { %v2160_v26 = vmax.f32 %v2034_v5, 0.0 }
 0x316   : > { %v2643_v32 = vpop.f32.mrb[10].mxu1 }
 0x317   : > { %v2619_v31 = vpop.f32.mrb[10].mxu0  ;;  %v2129_v34 = vadd.f32 %v2643_v32, %v3737_v13  ;;  %v2123_v36 = vpop.f32.mrb[11].mxu1 }
 0x318   : > { %v2049_v33 = vadd.f32 %v2619_v31, %v3737_v13  ;;  %v2043_v35 = vpop.f32.mrb[11].mxu0  ;;  %v2124_v49 = vadd.f32 %v3737_v13, %v2123_v36 }
 0x319   : > { %v2044_v37 = vadd.f32 %v3737_v13, %v2043_v35  ;;  %v2179_v48 = vmax.f32 %v2129_v34, 0.0 }
 0x31a   : > { %v2163_v27 = vmax.f32 %v2049_v33, 0.0  ;;  %v2178_v12 = vmax.f32 %v2124_v49, 0.0 }
 0x31b   : > { %v2162_v29 = vmax.f32 %v2044_v37, 0.0  ;;  %v2197_v1 = vmax.f32 %v2177_v4, %v2179_v48 }
 0x31c   : > { %v2189_v11 = vmax.f32 %v2161_v17, %v2163_v27  ;;  %v2196_v56 = vmax.f32 %v2176_v46, %v2178_v12 }
 0x31d   : > { %v2188_v16 = vmax.f32 %v2160_v26, %v2162_v29  ;;  %2213 = vst [vmem:[#allocation3 + $0x68] sm:$0xff] %v2197_v1 }
 0x31e   : > { %2205 = vst [vmem:[#allocation3 + $0x28] sm:$0xff] %v2189_v11  ;;  %2212 = vst [vmem:[#allocation3 + $0x60] sm:$0xff] %v2196_v56 }
 0x31f   : > { %2204 = vst [vmem:[#allocation3 + $0x20] sm:$0xff] %v2188_v16 }
 0x325   : > { %v2228_v23 = vld [vmem:[#allocation3 + $0x60] ss:$2 sm:$0xff]  ;;  %v2244_v22 = vld [vmem:[#allocation3 + $0x61] ss:$2 sm:$0xff] }
 0x326   : > { %v2220_v10 = vld [vmem:[#allocation3 + $0x20] ss:$2 sm:$0xff]  ;;  %v2236_v63 = vld [vmem:[#allocation3 + $0x21] ss:$2 sm:$0xff]  ;;  %v2253_v40 = vmax.f32 %v2228_v23, %v2244_v22 }
 0x327   : > { %v2249_v41 = vmax.f32 %v2220_v10, %v2236_v63 }
 0x328   : > { %2261 = vst [vmem:[%s3763_s16 + $0x30] sm:$0xff] %v2253_v40 }
 0x329   : > { %2257 = vst [vmem:[%s3763_s16 + $0x10] sm:$0xff] %v2249_v41 }
 0x342   : > { %v2646_v58 = vpop.f32.mrb[12].mxu1 }
 0x343   : > { %v2622_v60 = vpop.f32.mrb[12].mxu0  ;;  %v2133_v51 = vpop.f32.mrb[13].mxu1  ;;  %v2139_v30 = vadd.f32 %v2646_v58, %v3737_v13 }
 0x344   : > { %v2053_v7 = vpop.f32.mrb[13].mxu0  ;;  %v2059_v59 = vadd.f32 %v2622_v60, %v3737_v13  ;;  %v2134_v0 = vadd.f32 %v3737_v13, %v2133_v51 }
 0x345   : > { %v2054_v15 = vadd.f32 %v3737_v13, %v2053_v7  ;;  %v2181_v25 = vmax.f32 %v2139_v30, 0.0 }
 0x346   : > { %v2165_v53 = vmax.f32 %v2059_v59, 0.0  ;;  %v2180_v44 = vmax.f32 %v2134_v0, 0.0 }
 0x347   : > { %v2164_v24 = vmax.f32 %v2054_v15, 0.0 }
 0x35e   : > { %v2649_v50 = vpop.f32.mrb[14].mxu1 }
 0x35f   : > { %v2625_v6 = vpop.f32.mrb[14].mxu0  ;;  %v2149_v18 = vadd.f32 %v2649_v50, %v3737_v13  ;;  %v2143_v2 = vpop.f32.mrb[15].mxu1 }
 0x360   : > { %v2069_v14 = vadd.f32 %v2625_v6, %v3737_v13  ;;  %v2063_v43 = vpop.f32.mrb[15].mxu0  ;;  %v2144_v42 = vadd.f32 %v3737_v13, %v2143_v2 }
 0x361   : > { %v2064_v3 = vadd.f32 %v3737_v13, %v2063_v43  ;;  %v2183_v45 = vmax.f32 %v2149_v18, 0.0 }
 0x362   : > { %v2167_v52 = vmax.f32 %v2069_v14, 0.0  ;;  %v2182_v62 = vmax.f32 %v2144_v42, 0.0 }
 0x363   : > { %v2166_v9 = vmax.f32 %v2064_v3, 0.0  ;;  %v2199_v55 = vmax.f32 %v2181_v25, %v2183_v45 }
 0x364   : > { %v2191_v8 = vmax.f32 %v2165_v53, %v2167_v52  ;;  %v2198_v20 = vmax.f32 %v2180_v44, %v2182_v62 }
 0x365   : > { %v2190_v61 = vmax.f32 %v2164_v24, %v2166_v9  ;;  %2215 = vst [vmem:[#allocation3 + $0x78] sm:$0xff] %v2199_v55 }
 0x366   : > { %2207 = vst [vmem:[#allocation3 + $0x38] sm:$0xff] %v2191_v8  ;;  %2214 = vst [vmem:[#allocation3 + $0x70] sm:$0xff] %v2198_v20 }
 0x367   : > { %2206 = vst [vmem:[#allocation3 + $0x30] sm:$0xff] %v2190_v61 }
 0x36d   : > { %v2230_v19 = vld [vmem:[#allocation3 + $0x70] ss:$2 sm:$0xff]  ;;  %v2246_v38 = vld [vmem:[#allocation3 + $0x71] ss:$2 sm:$0xff] }
 0x36e   : > { %v2222_v39 = vld [vmem:[#allocation3 + $0x30] ss:$2 sm:$0xff]  ;;  %v2238_v13 = vld [vmem:[#allocation3 + $0x31] ss:$2 sm:$0xff]  ;;  %v2254_v57 = vmax.f32 %v2230_v19, %v2246_v38 }
 0x36f   : > { %v2250_v54 = vmax.f32 %v2222_v39, %v2238_v13 }
 0x370   : > { %2262 = vst [vmem:[%s3763_s16 + $0x38] sm:$0xff] %v2254_v57 }
 0x371   : > { %2258 = vst [vmem:[%s3763_s16 + $0x18] sm:$0xff] %v2250_v54 }
 0x372 PF: > { %s13_s12 = sadd.s32 1, %s2687_s12  }
 0x373   : > { %p10_p4 = scmp.ge.s32.totalorder %s13_s12, 4  }
 0x375   :  { %12 = sbr.rel (!%p10_p4) target bundleno = 1 (0x1), region = 79 }

// kernel: conv_block_forward.2
= control target key start
LH: loop header
LB: loop body
LE: loop exit
PB: predicated region body
PF: predicated region fallthrough
CT: control target
= control target key end

     0   :  { %s2801_s12 = smov 0   ;;  %s2803_s13 = smov 0   ;;  %s3842_s0 = inlined_call_operand.vmem [shape: f32[2,18,18,4], index: 0, kind: input, shape index: {}]   ;;  %s3843_s1 = inlined_call_operand.vmem [shape: f32[36,128], index: 1, kind: input, shape index: {}]   ;;  %s3844_s2 = inlined_call_operand.vmem [shape: f32[2,8,128], index: 2, kind: output, shape index: {0}]   ;;  %s3845_s3 = inlined_call_operand.vmem [shape: f32[2,8,128], index: 3, kind: output, shape index: {1}]  }
   0x1   :  { %s2805_s14 = smov 0  }
   0x2 LB: > { %s26_s15 = sadd.s32 1, %s2767_s13  ;;  %p2375_p0 = scmp.ge.s32.totalorder %s2771_s14, 1  ;;  %s2771_s14 = sphi %s2805_s14, %s14_s14   ;;  %s2767_s13 = sphi %s2803_s13, %s3847_s13   ;;  %s2763_s12 = sphi %s2801_s12, %s3846_s12  }
   0x3   : > { %p28_p1 = scmp.ge.s32.totalorder %s26_s15, 2  ;;  %p156_p2 = scmp.lt.s32.totalorder %s2771_s14, 3 }
   0x5   : > { %s3849_s15 = smov (%p28_p1, %s26_s15), 0  ;;  %p157_p3 = pnand %p2375_p0, %p156_p2 }
   0x6   : > { %p185_p4 = scmp.lt.s32.totalorder (!%p157_p3), %s2763_s12, 1  ;;  %s2773_s20 = smov (!%p157_p3), 4   ;;  %vm237_vm0 = vcmask (!%p157_p3), 31744   ;;  %vm430_vm1 = vcmask (!%p157_p3), 64544   ;;  %vm623_vm2 = vcmask (!%p157_p3), 97344   ;;  %vm1950_vm3 = vcmask (!%p157_p3), 1043456  }
   0x7   : > { %160 = sbr.rel (%p157_p3) target bundleno = 871 (0x367), region = 28  ;;  %s2774_s21 = smov (!%p157_p3), 8   ;;  %vm817_vm4 = vcmask (!%p157_p3), 130144   ;;  %vm1010_vm5 = vcmask (!%p157_p3), 162944   ;;  %vm1203_vm6 = vcmask (!%p157_p3), 195744   ;;  %vm1397_vm7 = vcmask (!%p157_p3), 228544  }
   0x8   : > { %s2775_s22 = smov (!%p157_p3), 12   ;;  %s2776_s23 = smov (!%p157_p3), 16   ;;  %vm1590_vm8 = vcmask (!%p157_p3), 261344   ;;  %vm1783_vm9 = vcmask (!%p157_p3), 294144   ;;  %vm1853_vm10 = vcmask (!%p157_p3), 293888  }
   0x9   : > { %s2777_s24 = smov (!%p157_p3), 20   ;;  %s2778_s29 = smov (!%p157_p3), 24  }
   0xa   : > { %s2779_s7 = smov (!%p157_p3), 28   ;;  %s2780_s8 = smov (!%p157_p3), 32  }
   0xe   : > { %s3851_s12 = smov (!%p185_p4, %s2763_s12), 1 }
   0xf   : > { %s2715_s16 = smul.u32 432, %s3851_s12  ;;  %s2377_s11 = sshll.u32 %s3851_s12, 3 }
  0x10   : > { %s194_s18 = scalar_lea.vmem %s3844_s2, %s2377_s11 }
  0x11   : > { %s2825_s19 = scalar_lea.vmem %s3842_s0, %s2715_s16 }
  0x12   : > { %v270_v0 = vld [vmem:[%s2825_s19 + $0x1] sm:$0xff]  ;;  %v2829_v1 = vld [vmem:[%s2825_s19 + $0x19] sm:$0xff]  ;;  %v271_v2 = vld [vmem:[%s2825_s19 + $0x9] sm:$0xff] }
  0x13   : > { %334 = vrot.lane.b32.xlu0 %v270_v0, %s2773_s20  ;;  %338 = vrot.lane.b32.xlu1 %v2829_v1, %s2773_s20  ;;  %v2836_v3 = vld [vmem:[%s2825_s19 + $0x21] sm:$0xff]  ;;  %v2842_v4 = vld [vmem:[%s2825_s19 + $0x31] sm:$0xff] }
  0x14   : > { %v2845_v5 = vld [vmem:[%s2825_s19 + $0x39] sm:$0xff]  ;;  %v2852_v6 = vld [vmem:[%s2825_s19 + $0x49] sm:$0xff]  ;;  %v2855_v7 = vld [vmem:[%s2825_s19 + $0x51] sm:$0xff] }
  0x15   : > { %v2862_v8 = vld [vmem:[%s2825_s19 + $0x61] sm:$0xff]  ;;  %v2865_v9 = vld [vmem:[%s2825_s19 + $0x69] sm:$0xff]  ;;  %v2872_v10 = vld [vmem:[%s2825_s19 + $0x79] sm:$0xff] }
  0x16   : > { %v2875_v11 = vld [vmem:[%s2825_s19 + $0x81] sm:$0xff]  ;;  %v2883_v13 = vld [vmem:[%s2825_s19 + $0x18] sm:$0xff]  ;;  %v2900_v18 = vld [vmem:[%s2825_s19 + $0xa9] sm:$0xff] }
  0x17   : > { %336 = vrot.lane.b32.xlu0 %v271_v2, %s2773_s20  ;;  %340 = vrot.lane.b32.xlu1 %v2836_v3, %s2773_s20  ;;  %v205_v12 = vld [vmem:[%s2825_s19] sm:$0xff]  ;;  %v2886_v14 = vld [vmem:[%s2825_s19 + $0x91] sm:$0xff]  ;;  %240 = vst.msk [vmem:[#allocation2 + $0x10] sm:$0xff] %vm237_vm0, %v2883_v13 }
  0x18   : > { %v2889_v15 = vld [vmem:[%s2825_s19 + $0x99] sm:$0xff]  ;;  %238 = vst.msk [vmem:[#allocation2] sm:$0xff] %vm237_vm0, %v205_v12  ;;  %v206_v16 = vld [vmem:[%s2825_s19 + $0x8] sm:$0xff]  ;;  %v2905_v19 = vld [vmem:[%s2825_s19 + $0x30] sm:$0xff] }
  0x19   : > { %239 = vst.msk [vmem:[#allocation2 + $0x8] sm:$0xff] %vm237_vm0, %v206_v16  ;;  %v2897_v17 = vld [vmem:[%s2825_s19 + $0x20] sm:$0xff]  ;;  %v2908_v20 = vld [vmem:[%s2825_s19 + $0x38] sm:$0xff]  ;;  %242 = vst.msk [vmem:[#allocation2 + $0x20] sm:$0xff] %vm237_vm0, %v2905_v19 }
  0x1a   : > { %241 = vst.msk [vmem:[#allocation2 + $0x18] sm:$0xff] %vm237_vm0, %v2897_v17  ;;  %v2915_v21 = vld [vmem:[%s2825_s19 + $0xb1] sm:$0xff]  ;;  %243 = vst.msk [vmem:[#allocation2 + $0x28] sm:$0xff] %vm237_vm0, %v2908_v20  ;;  %v2922_v22 = vld [vmem:[%s2825_s19 + $0x48] sm:$0xff] }
  0x1b   : > { %342 = vrot.lane.b32.xlu0 %v2842_v4, %s2773_s20  ;;  %344 = vrot.lane.b32.xlu1 %v2845_v5, %s2773_s20  ;;  %244 = vst.msk [vmem:[#allocation2 + $0x30] sm:$0xff] %vm237_vm0, %v2922_v22  ;;  %v2927_v23 = vld [vmem:[%s2825_s19 + $0x50] sm:$0xff]  ;;  %v2930_v24 = vld [vmem:[%s2825_s19 + $0x60] sm:$0xff] }
  0x1c   : > { %v2933_v25 = vld [vmem:[%s2825_s19 + $0x68] sm:$0xff]  ;;  %245 = vst.msk [vmem:[#allocation2 + $0x38] sm:$0xff] %vm237_vm0, %v2927_v23  ;;  %246 = vst.msk [vmem:[#allocation2 + $0x40] sm:$0xff] %vm237_vm0, %v2930_v24  ;;  %v2942_v26 = vld [vmem:[%s2825_s19 + $0x78] sm:$0xff] }
  0x1d   : > { %247 = vst.msk [vmem:[#allocation2 + $0x48] sm:$0xff] %vm237_vm0, %v2933_v25  ;;  %v2945_v27 = vld [vmem:[%s2825_s19 + $0x80] sm:$0xff]  ;;  %v2948_v28 = vld [vmem:[%s2825_s19 + $0x90] sm:$0xff]  ;;  %248 = vst.msk [vmem:[#allocation2 + $0x50] sm:$0xff] %vm237_vm0, %v2942_v26 }
  0x1e   : > { %v286_v29 = vld [vmem:[%s2825_s19 + $0xc1] sm:$0xff]  ;;  %v287_v30 = vld [vmem:[%s2825_s19 + $0xc9] sm:$0xff]  ;;  %249 = vst.msk [vmem:[#allocation2 + $0x58] sm:$0xff] %vm237_vm0, %v2945_v27  ;;  %250 = vst.msk [vmem:[#allocation2 + $0x60] sm:$0xff] %vm237_vm0, %v2948_v28 }
  0x1f   : > { %346 = vrot.lane.b32.xlu0 %v2852_v6, %s2773_s20  ;;  %348 = vrot.lane.b32.xlu1 %v2855_v7, %s2773_s20  ;;  %v2959_v31 = vld [vmem:[%s2825_s19 + $0x98] sm:$0xff]  ;;  %v2962_v32 = vld [vmem:[%s2825_s19 + $0xa8] sm:$0xff] }
  0x20   : > { %v2965_v33 = vld [vmem:[%s2825_s19 + $0xb0] sm:$0xff]  ;;  %251 = vst.msk [vmem:[#allocation2 + $0x68] sm:$0xff] %vm237_vm0, %v2959_v31  ;;  %252 = vst.msk [vmem:[#allocation2 + $0x70] sm:$0xff] %vm237_vm0, %v2962_v32  ;;  %v2978_v34 = vld [vmem:[%s2825_s19 + $0xc0] sm:$0xff] }
  0x21   : > { %253 = vst.msk [vmem:[#allocation2 + $0x78] sm:$0xff] %vm237_vm0, %v2965_v33  ;;  %v2981_v35 = vld [vmem:[%s2825_s19 + $0xc8] sm:$0xff]  ;;  %254 = vst.msk [vmem:[#allocation2 + $0x80] sm:$0xff] %vm237_vm0, %v2978_v34  ;;  %v2988_v36 = vld [vmem:[%s2825_s19 + $0xd8] sm:$0xff] }
  0x22   : > { %255 = vst.msk [vmem:[#allocation2 + $0x88] sm:$0xff] %vm237_vm0, %v2981_v35  ;;  %v2991_v37 = vld [vmem:[%s2825_s19 + $0xe0] sm:$0xff]  ;;  %v2994_v38 = vld [vmem:[%s2825_s19 + $0xf0] sm:$0xff]  ;;  %256 = vst.msk [vmem:[#allocation2 + $0x90] sm:$0xff] %vm237_vm0, %v2988_v36 }
  0x23   : > { %350 = vrot.lane.b32.xlu0 %v2862_v8, %s2773_s20  ;;  %352 = vrot.lane.b32.xlu1 %v2865_v9, %s2773_s20  ;;  %257 = vst.msk [vmem:[#allocation2 + $0x98] sm:$0xff] %vm237_vm0, %v2991_v37  ;;  %258 = vst.msk [vmem:[#allocation2 + $0xa0] sm:$0xff] %vm237_vm0, %v2994_v38  ;;  %v3003_v39 = vld [vmem:[%s2825_s19 + $0xf8] sm:$0xff]  ;;  %v3006_v40 = vld [vmem:[%s2825_s19 + $0x108] sm:$0xff] }
  0x24   : > { %v3009_v41 = vld [vmem:[%s2825_s19 + $0x110] sm:$0xff]  ;;  %259 = vst.msk [vmem:[#allocation2 + $0xa8] sm:$0xff] %vm237_vm0, %v3003_v39  ;;  %260 = vst.msk [vmem:[#allocation2 + $0xb0] sm:$0xff] %vm237_vm0, %v3006_v40  ;;  %v288_v42 = vld [vmem:[%s2825_s19 + $0xd9] sm:$0xff] }
  0x25   : > { %261 = vst.msk [vmem:[#allocation2 + $0xb8] sm:$0xff] %vm237_vm0, %v3009_v41  ;;  %v289_v43 = vld [vmem:[%s2825_s19 + $0xe1] sm:$0xff]  ;;  %v290_v46 = vld [vmem:[%s2825_s19 + $0xf1] sm:$0xff]  ;;  %v291_v47 = vld [vmem:[%s2825_s19 + $0xf9] sm:$0xff] }
  0x26   : > { %v3022_v44 = vld [vmem:[%s2825_s19 + $0x120] sm:$0xff]  ;;  %v3027_v45 = vld [vmem:[%s2825_s19 + $0x128] sm:$0xff]  ;;  %v231_v48 = vld [vmem:[%s2825_s19 + $0x138] sm:$0xff] }
  0x27   : > { %354 = vrot.lane.b32.xlu0 %v2872_v10, %s2773_s20  ;;  %356 = vrot.lane.b32.xlu1 %v2875_v11, %s2773_s20  ;;  %262 = vst.msk [vmem:[#allocation2 + $0xc0] sm:$0xff] %vm237_vm0, %v3022_v44  ;;  %263 = vst.msk [vmem:[#allocation2 + $0xc8] sm:$0xff] %vm237_vm0, %v3027_v45  ;;  %v232_v49 = vld [vmem:[%s2825_s19 + $0x140] sm:$0xff]  ;;  %v292_v50 = vld [vmem:[%s2825_s19 + $0x109] sm:$0xff] }
  0x28   : > { %264 = vst.msk [vmem:[#allocation2 + $0xd0] sm:$0xff] %vm237_vm0, %v231_v48  ;;  %265 = vst.msk [vmem:[#allocation2 + $0xd8] sm:$0xff] %vm237_vm0, %v232_v49  ;;  %v293_v51 = vld [vmem:[%s2825_s19 + $0x111] sm:$0xff]  ;;  %v294_v54 = vld [vmem:[%s2825_s19 + $0x121] sm:$0xff] }
  0x29   : > { %v233_v52 = vld [vmem:[%s2825_s19 + $0x150] sm:$0xff]  ;;  %v234_v53 = vld [vmem:[%s2825_s19 + $0x158] sm:$0xff]  ;;  %v235_v56 = vld [vmem:[%s2825_s19 + $0x168] sm:$0xff] }
  0x2a   : > { %266 = vst.msk [vmem:[#allocation2 + $0xe0] sm:$0xff] %vm237_vm0, %v233_v52  ;;  %267 = vst.msk [vmem:[#allocation2 + $0xe8] sm:$0xff] %vm237_vm0, %v234_v53  ;;  %v295_v55 = vld [vmem:[%s2825_s19 + $0x129] sm:$0xff]  ;;  %v296_v58 = vld [vmem:[%s2825_s19 + $0x139] sm:$0xff] }
  0x2b   : > { %358 = vrot.lane.b32.xlu0 %v2886_v14, %s2773_s20  ;;  %360 = vrot.lane.b32.xlu1 %v2889_v15, %s2773_s20  ;;  %268 = vst.msk [vmem:[#allocation2 + $0xf0] sm:$0xff] %vm237_vm0, %v235_v56  ;;  %v236_v57 = vld [vmem:[%s2825_s19 + $0x170] sm:$0xff]  ;;  %v297_v59 = vld [vmem:[%s2825_s19 + $0x141] sm:$0xff] }
  0x2c   : > { %269 = vst.msk [vmem:[#allocation2 + $0xf8] sm:$0xff] %vm237_vm0, %v236_v57  ;;  %v298_v60 = vld [vmem:[%s2825_s19 + $0x151] sm:$0xff]  ;;  %v299_v61 = vld [vmem:[%s2825_s19 + $0x159] sm:$0xff]  ;;  %v300_v62 = vld [vmem:[%s2825_s19 + $0x169] sm:$0xff] }
  0x2d   : > { %v301_v63 = vld [vmem:[%s2825_s19 + $0x171] sm:$0xff]  ;;  %v463_v0 = vld [vmem:[%s2825_s19 + $0x2] sm:$0xff]  ;;  %v3074_v12 = vld [vmem:[%s2825_s19 + $0x1a] sm:$0xff] }
  0x2e   : > { %v464_v2 = vld [vmem:[%s2825_s19 + $0xa] sm:$0xff]  ;;  %v3077_v16 = vld [vmem:[%s2825_s19 + $0x22] sm:$0xff]  ;;  %v3114_v48 = vld [vmem:[%s2825_s19 + $0x7a] sm:$0xff] }
  0x2f   : > { %362 = vrot.lane.b32.xlu0 %v2900_v18, %s2773_s20  ;;  %364 = vrot.lane.b32.xlu1 %v2915_v21, %s2773_s20  ;;  %v3117_v49 = vld [vmem:[%s2825_s19 + $0x82] sm:$0xff]  ;;  %v3134_v52 = vld [vmem:[%s2825_s19 + $0xaa] sm:$0xff] }
  0x30   : > { %v3137_v53 = vld [vmem:[%s2825_s19 + $0xb2] sm:$0xff]  ;;  %v481_v56 = vld [vmem:[%s2825_s19 + $0xda] sm:$0xff]  ;;  %v482_v57 = vld [vmem:[%s2825_s19 + $0xe2] sm:$0xff] }
  0x33   : > { %366 = vrot.lane.b32.xlu0 %v286_v29, %s2773_s20  ;;  %368 = vrot.lane.b32.xlu1 %v287_v30, %s2773_s20  ;;  %v3084_v29 = vld [vmem:[%s2825_s19 + $0x32] sm:$0xff]  ;;  %v3087_v30 = vld [vmem:[%s2825_s19 + $0x3a] sm:$0xff] }
  0x37   : > { %370 = vrot.lane.b32.xlu0 %v288_v42, %s2773_s20  ;;  %372 = vrot.lane.b32.xlu1 %v289_v43, %s2773_s20  ;;  %v3094_v42 = vld [vmem:[%s2825_s19 + $0x4a] sm:$0xff]  ;;  %v3097_v43 = vld [vmem:[%s2825_s19 + $0x52] sm:$0xff] }
  0x3b   : > { %374 = vrot.lane.b32.xlu0 %v290_v46, %s2773_s20  ;;  %376 = vrot.lane.b32.xlu1 %v291_v47, %s2773_s20  ;;  %v3104_v46 = vld [vmem:[%s2825_s19 + $0x62] sm:$0xff]  ;;  %v3107_v47 = vld [vmem:[%s2825_s19 + $0x6a] sm:$0xff] }
  0x3f   : > { %378 = vrot.lane.b32.xlu0 %v292_v50, %s2773_s20  ;;  %380 = vrot.lane.b32.xlu1 %v293_v51, %s2773_s20  ;;  %v3124_v50 = vld [vmem:[%s2825_s19 + $0x92] sm:$0xff]  ;;  %v3127_v51 = vld [vmem:[%s2825_s19 + $0x9a] sm:$0xff] }
  0x43   : > { %382 = vrot.lane.b32.xlu0 %v294_v54, %s2773_s20  ;;  %384 = vrot.lane.b32.xlu1 %v295_v55, %s2773_s20  ;;  %v3144_v54 = vld [vmem:[%s2825_s19 + $0xc2] sm:$0xff]  ;;  %v3147_v55 = vld [vmem:[%s2825_s19 + $0xca] sm:$0xff] }
  0x47   : > { %386 = vrot.lane.b32.xlu0 %v296_v58, %s2773_s20  ;;  %388 = vrot.lane.b32.xlu1 %v297_v59, %s2773_s20  ;;  %v483_v58 = vld [vmem:[%s2825_s19 + $0xf2] sm:$0xff]  ;;  %v484_v59 = vld [vmem:[%s2825_s19 + $0xfa] sm:$0xff] }
  0x4b   : > { %390 = vrot.lane.b32.xlu0 %v298_v60, %s2773_s20  ;;  %392 = vrot.lane.b32.xlu1 %v299_v61, %s2773_s20  ;;  %v485_v60 = vld [vmem:[%s2825_s19 + $0x10a] sm:$0xff]  ;;  %v486_v61 = vld [vmem:[%s2825_s19 + $0x112] sm:$0xff] }
  0x4f   : > { %394 = vrot.lane.b32.xlu0 %v300_v62, %s2773_s20  ;;  %396 = vrot.lane.b32.xlu1 %v301_v63, %s2773_s20  ;;  %v487_v62 = vld [vmem:[%s2825_s19 + $0x122] sm:$0xff]  ;;  %v488_v63 = vld [vmem:[%s2825_s19 + $0x12a] sm:$0xff] }
  0x53   : > { %527 = vrot.lane.b32.xlu0 %v463_v0, %s2774_s21  ;;  %529 = vrot.lane.b32.xlu1 %v464_v2, %s2774_s21  ;;  %v489_v0 = vld [vmem:[%s2825_s19 + $0x13a] sm:$0xff]  ;;  %v490_v2 = vld [vmem:[%s2825_s19 + $0x142] sm:$0xff] }
  0x57   : > { %531 = vrot.lane.b32.xlu0 %v3074_v12, %s2774_s21  ;;  %533 = vrot.lane.b32.xlu1 %v3077_v16, %s2774_s21 }
  0x5b   : > { %535 = vrot.lane.b32.xlu0 %v3084_v29, %s2774_s21  ;;  %537 = vrot.lane.b32.xlu1 %v3087_v30, %s2774_s21 }
  0x5f   : > { %539 = vrot.lane.b32.xlu0 %v3094_v42, %s2774_s21  ;;  %541 = vrot.lane.b32.xlu1 %v3097_v43, %s2774_s21 }
  0x63   : > { %543 = vrot.lane.b32.xlu0 %v3104_v46, %s2774_s21  ;;  %545 = vrot.lane.b32.xlu1 %v3107_v47, %s2774_s21 }
  0x67   : > { %547 = vrot.lane.b32.xlu0 %v3114_v48, %s2774_s21  ;;  %549 = vrot.lane.b32.xlu1 %v3117_v49, %s2774_s21 }
  0x6b   : > { %551 = vrot.lane.b32.xlu0 %v3124_v50, %s2774_s21  ;;  %553 = vrot.lane.b32.xlu1 %v3127_v51, %s2774_s21 }
  0x6f   : > { %555 = vrot.lane.b32.xlu0 %v3134_v52, %s2774_s21  ;;  %557 = vrot.lane.b32.xlu1 %v3137_v53, %s2774_s21 }
  0x73   : > { %559 = vrot.lane.b32.xlu0 %v3144_v54, %s2774_s21  ;;  %561 = vrot.lane.b32.xlu1 %v3147_v55, %s2774_s21 }
  0x77   : > { %563 = vrot.lane.b32.xlu0 %v481_v56, %s2774_s21  ;;  %565 = vrot.lane.b32.xlu1 %v482_v57, %s2774_s21 }
  0x7b   : > { %567 = vrot.lane.b32.xlu0 %v483_v58, %s2774_s21  ;;  %569 = vrot.lane.b32.xlu1 %v484_v59, %s2774_s21  ;;  %v491_v58 = vld [vmem:[%s2825_s19 + $0x152] sm:$0xff]  ;;  %v492_v59 = vld [vmem:[%s2825_s19 + $0x15a] sm:$0xff] }
  0x7f   : > { %571 = vrot.lane.b32.xlu0 %v485_v60, %s2774_s21  ;;  %573 = vrot.lane.b32.xlu1 %v486_v61, %s2774_s21 }
  0x83   : > { %575 = vrot.lane.b32.xlu0 %v487_v62, %s2774_s21  ;;  %577 = vrot.lane.b32.xlu1 %v488_v63, %s2774_s21  ;;  %v493_v62 = vld [vmem:[%s2825_s19 + $0x16a] sm:$0xff]  ;;  %v494_v63 = vld [vmem:[%s2825_s19 + $0x172] sm:$0xff] }
  0x85   : > { %v335_v56 = vpop.permute.xlu0 %334  ;;  %v339_v57 = vpop.permute.xlu1 %338 }
  0x86   : > { %431 = vst.msk [vmem:[#allocation2] sm:$0xff] %vm430_vm1, %v335_v56  ;;  %433 = vst.msk [vmem:[#allocation2 + $0x10] sm:$0xff] %vm430_vm1, %v339_v57 }
  0x87   : > { %579 = vrot.lane.b32.xlu0 %v489_v0, %s2774_s21  ;;  %581 = vrot.lane.b32.xlu1 %v490_v2, %s2774_s21 }
  0x89   : > { %v337_v60 = vpop.permute.xlu0 %336  ;;  %v341_v61 = vpop.permute.xlu1 %340 }
  0x8a   : > { %432 = vst.msk [vmem:[#allocation2 + $0x8] sm:$0xff] %vm430_vm1, %v337_v60  ;;  %434 = vst.msk [vmem:[#allocation2 + $0x18] sm:$0xff] %vm430_vm1, %v341_v61 }
  0x8b   : > { %583 = vrot.lane.b32.xlu0 %v491_v58, %s2774_s21  ;;  %585 = vrot.lane.b32.xlu1 %v492_v59, %s2774_s21 }
  0x8d   : > { %v343_v56 = vpop.permute.xlu0 %342  ;;  %v345_v57 = vpop.permute.xlu1 %344 }
  0x8e   : > { %435 = vst.msk [vmem:[#allocation2 + $0x20] sm:$0xff] %vm430_vm1, %v343_v56  ;;  %436 = vst.msk [vmem:[#allocation2 + $0x28] sm:$0xff] %vm430_vm1, %v345_v57 }
  0x8f   : > { %587 = vrot.lane.b32.xlu0 %v493_v62, %s2774_s21  ;;  %589 = vrot.lane.b32.xlu1 %v494_v63, %s2774_s21  ;;  %s198_s21 = scalar_lea.vmem %s3845_s3, %s2377_s11 }
  0x91   : > { %v347_v0 = vpop.permute.xlu0 %346  ;;  %v349_v2 = vpop.permute.xlu1 %348 }
  0x92   : > { %437 = vst.msk [vmem:[#allocation2 + $0x30] sm:$0xff] %vm430_vm1, %v347_v0  ;;  %438 = vst.msk [vmem:[#allocation2 + $0x38] sm:$0xff] %vm430_vm1, %v349_v2 }
  0x93   : > { %721 = vrot.lane.b32.xlu0 %v2883_v13, %s2775_s22  ;;  %723 = vrot.lane.b32.xlu1 %v2897_v17, %s2775_s22 }
  0x95   : > { %v351_v58 = vpop.permute.xlu0 %350  ;;  %v353_v59 = vpop.permute.xlu1 %352 }
  0x96   : > { %439 = vst.msk [vmem:[#allocation2 + $0x40] sm:$0xff] %vm430_vm1, %v351_v58  ;;  %440 = vst.msk [vmem:[#allocation2 + $0x48] sm:$0xff] %vm430_vm1, %v353_v59 }
  0x97   : > { %725 = vrot.lane.b32.xlu0 %v2905_v19, %s2775_s22  ;;  %727 = vrot.lane.b32.xlu1 %v2908_v20, %s2775_s22 }
  0x99   : > { %v355_v60 = vpop.permute.xlu0 %354  ;;  %v357_v61 = vpop.permute.xlu1 %356 }
  0x9a   : > { %441 = vst.msk [vmem:[#allocation2 + $0x50] sm:$0xff] %vm430_vm1, %v355_v60  ;;  %442 = vst.msk [vmem:[#allocation2 + $0x58] sm:$0xff] %vm430_vm1, %v357_v61 }
  0x9b   : > { %729 = vrot.lane.b32.xlu0 %v2922_v22, %s2775_s22  ;;  %731 = vrot.lane.b32.xlu1 %v2927_v23, %s2775_s22 }
  0x9d   : > { %v359_v13 = vpop.permute.xlu0 %358  ;;  %v361_v17 = vpop.permute.xlu1 %360 }
  0x9e   : > { %443 = vst.msk [vmem:[#allocation2 + $0x60] sm:$0xff] %vm430_vm1, %v359_v13  ;;  %444 = vst.msk [vmem:[#allocation2 + $0x68] sm:$0xff] %vm430_vm1, %v361_v17 }
  0x9f   : > { %733 = vrot.lane.b32.xlu0 %v2930_v24, %s2775_s22  ;;  %735 = vrot.lane.b32.xlu1 %v2933_v25, %s2775_s22 }
  0xa1   : > { %v363_v62 = vpop.permute.xlu0 %362  ;;  %v365_v63 = vpop.permute.xlu1 %364 }
  0xa2   : > { %445 = vst.msk [vmem:[#allocation2 + $0x70] sm:$0xff] %vm430_vm1, %v363_v62  ;;  %446 = vst.msk [vmem:[#allocation2 + $0x78] sm:$0xff] %vm430_vm1, %v365_v63 }
  0xa3   : > { %737 = vrot.lane.b32.xlu0 %v2942_v26, %s2775_s22  ;;  %739 = vrot.lane.b32.xlu1 %v2945_v27, %s2775_s22 }
  0xa5   : > { %v367_v56 = vpop.permute.xlu0 %366  ;;  %v369_v57 = vpop.permute.xlu1 %368 }
  0xa6   : > { %447 = vst.msk [vmem:[#allocation2 + $0x80] sm:$0xff] %vm430_vm1, %v367_v56  ;;  %448 = vst.msk [vmem:[#allocation2 + $0x88] sm:$0xff] %vm430_vm1, %v369_v57  ;;  %v1850_v57 = vld [vmem:[%s3843_s1 + $0x10] sm:$0xff] }
  0xa7   : > { %741 = vrot.lane.b32.xlu0 %v2948_v28, %s2775_s22  ;;  %743 = vrot.lane.b32.xlu1 %v2959_v31, %s2775_s22 }
  0xa9   : > { %v371_v0 = vpop.permute.xlu0 %370  ;;  %v373_v2 = vpop.permute.xlu1 %372 }
  0xaa   : > { %449 = vst.msk [vmem:[#allocation2 + $0x90] sm:$0xff] %vm430_vm1, %v371_v0  ;;  %450 = vst.msk [vmem:[#allocation2 + $0x98] sm:$0xff] %vm430_vm1, %v373_v2  ;;  %v1851_v0 = vld [vmem:[%s3843_s1 + $0x18] sm:$0xff] }
  0xab   : > { %745 = vrot.lane.b32.xlu0 %v2962_v32, %s2775_s22  ;;  %747 = vrot.lane.b32.xlu1 %v2965_v33, %s2775_s22 }
  0xad   : > { %v375_v58 = vpop.permute.xlu0 %374  ;;  %v377_v59 = vpop.permute.xlu1 %376 }
  0xae   : > { %451 = vst.msk [vmem:[#allocation2 + $0xa0] sm:$0xff] %vm430_vm1, %v375_v58  ;;  %452 = vst.msk [vmem:[#allocation2 + $0xa8] sm:$0xff] %vm430_vm1, %v377_v59 }
  0xaf   : > { %749 = vrot.lane.b32.xlu0 %v2978_v34, %s2775_s22  ;;  %751 = vrot.lane.b32.xlu1 %v2981_v35, %s2775_s22 }
  0xb1   : > { %v379_v60 = vpop.permute.xlu0 %378  ;;  %v381_v61 = vpop.permute.xlu1 %380 }
  0xb2   : > { %453 = vst.msk [vmem:[#allocation2 + $0xb0] sm:$0xff] %vm430_vm1, %v379_v60  ;;  %454 = vst.msk [vmem:[#allocation2 + $0xb8] sm:$0xff] %vm430_vm1, %v381_v61 }
  0xb3   : > { %914 = vrot.lane.b32.xlu0 %v2829_v1, %s2776_s23  ;;  %916 = vrot.lane.b32.xlu1 %v2836_v3, %s2776_s23  ;;  %v1848_v1 = vld [vmem:[%s3843_s1] sm:$0xff]  ;;  %v1849_v3 = vld [vmem:[%s3843_s1 + $0x8] sm:$0xff] }
  0xb4   : > { %v2701_v56 = vpack.c.bf16 %v1849_v3, %v1848_v1 }
  0xb5   : > { %v383_v13 = vpop.permute.xlu0 %382  ;;  %v385_v17 = vpop.permute.xlu1 %384 }
  0xb6   : > { %455 = vst.msk [vmem:[#allocation2 + $0xc0] sm:$0xff] %vm430_vm1, %v383_v13  ;;  %456 = vst.msk [vmem:[#allocation2 + $0xc8] sm:$0xff] %vm430_vm1, %v385_v17  ;;  %2702 = vmatprep.subr.bf16.mxu0 %v2701_v56  ;;  %2709 = vmatprep.subr.bf16.mxu1 %v2701_v56 }
  0xb7   : > { %1107 = vrot.lane.b32.xlu0 %v3074_v12, %s2777_s24  ;;  %1109 = vrot.lane.b32.xlu1 %v3077_v16, %s2777_s24 }
  0xb8   : > { %2704 = vmatpush3.bf16.msra.mxu0 %v2701_v56  ;;  %2712 = vmatpush3.bf16.msra.mxu1 %v2701_v56 }
  0xb9   : > { %v387_v62 = vpop.permute.xlu0 %386  ;;  %v389_v63 = vpop.permute.xlu1 %388 }
  0xba   : > { %457 = vst.msk [vmem:[#allocation2 + $0xd0] sm:$0xff] %vm430_vm1, %v387_v62  ;;  %458 = vst.msk [vmem:[#allocation2 + $0xd8] sm:$0xff] %vm430_vm1, %v389_v63 }
  0xbb   : > { %1301 = vrot.lane.b32.xlu0 %v2905_v19, %s2778_s29  ;;  %1303 = vrot.lane.b32.xlu1 %v2908_v20, %s2778_s29  ;;  %v2705_v19 = vpack.c.bf16 %v1851_v0, %v1850_v57 }
  0xbd   : > { %v391_v12 = vpop.permute.xlu0 %390  ;;  %v393_v16 = vpop.permute.xlu1 %392  ;;  %2706 = vmatprep.subr.bf16.mxu0 %v2705_v19  ;;  %2710 = vmatprep.subr.bf16.mxu1 %v2705_v19 }
  0xbe   : > { %459 = vst.msk [vmem:[#allocation2 + $0xe0] sm:$0xff] %vm430_vm1, %v391_v12  ;;  %460 = vst.msk [vmem:[#allocation2 + $0xe8] sm:$0xff] %vm430_vm1, %v393_v16  ;;  %2708 = vmatpush3.bf16.msra.mxu0 %v2705_v19  ;;  %2713 = vmatpush3.bf16.msra.mxu1 %v2705_v19 }
  0xbf   : > { %1494 = vrot.lane.b32.xlu0 %v2842_v4, %s2779_s7  ;;  %918 = vrot.lane.b32.xlu1 %v2842_v4, %s2776_s23  ;;  %v1852_v4 = vld [vmem:[%s3843_s1 + $0x20] sm:$0xf] }
  0xc0   : > { %2651 = vmatprep.subr.msk.mxu0 %vm1950_vm3, %v1852_v4  ;;  %2711 = vmatprep.subr.msk.mxu1 %vm1950_vm3, %v1852_v4 }
  0xc1   : > { %v395_v20 = vpop.permute.xlu0 %394  ;;  %v397_v2 = vpop.permute.xlu1 %396 }
  0xc2   : > { %461 = vst.msk [vmem:[#allocation2 + $0xf0] sm:$0xff] %vm430_vm1, %v395_v20  ;;  %462 = vst.msk [vmem:[#allocation2 + $0xf8] sm:$0xff] %vm430_vm1, %v397_v2  ;;  %2652 = vmatpush3.msk.msra.mxu0 %vm1950_vm3, %v1852_v4  ;;  %2714 = vmatpush3.msk.msra.mxu1 %vm1950_vm3, %v1852_v4 }
  0xc3   : > { %1496 = vrot.lane.b32.xlu0 %v2845_v5, %s2779_s7  ;;  %1687 = vrot.lane.b32.xlu1 %v3084_v29, %s2780_s8 }
  0xc5   : > { %v528_v58 = vpop.permute.xlu0 %527  ;;  %v530_v59 = vpop.permute.xlu1 %529 }
  0xc6   : > { %624 = vst.msk [vmem:[#allocation2] sm:$0xff] %vm623_vm2, %v528_v58  ;;  %625 = vst.msk [vmem:[#allocation2 + $0x8] sm:$0xff] %vm623_vm2, %v530_v59 }
  0xc7   : > { %920 = vrot.lane.b32.xlu0 %v2845_v5, %s2776_s23  ;;  %1111 = vrot.lane.b32.xlu1 %v3084_v29, %s2777_s24 }
  0xc9   : > { %v532_v60 = vpop.permute.xlu0 %531  ;;  %v534_v61 = vpop.permute.xlu1 %533 }
  0xca   : > { %626 = vst.msk [vmem:[#allocation2 + $0x10] sm:$0xff] %vm623_vm2, %v532_v60  ;;  %627 = vst.msk [vmem:[#allocation2 + $0x18] sm:$0xff] %vm623_vm2, %v534_v61 }
  0xcb   : > { %1689 = vrot.lane.b32.xlu0 %v3087_v30, %s2780_s8  ;;  %1113 = vrot.lane.b32.xlu1 %v3087_v30, %s2777_s24 }
  0xcd   : > { %v536_v13 = vpop.permute.xlu0 %535  ;;  %v538_v17 = vpop.permute.xlu1 %537 }
  0xce   : > { %628 = vst.msk [vmem:[#allocation2 + $0x20] sm:$0xff] %vm623_vm2, %v536_v13  ;;  %629 = vst.msk [vmem:[#allocation2 + $0x28] sm:$0xff] %vm623_vm2, %v538_v17 }
  0xcf   : > { %1305 = vrot.lane.b32.xlu0 %v2922_v22, %s2778_s29  ;;  %1307 = vrot.lane.b32.xlu1 %v2927_v23, %s2778_s29 }
  0xd1   : > { %v540_v5 = vpop.permute.xlu0 %539  ;;  %v542_v29 = vpop.permute.xlu1 %541 }
  0xd2   : > { %630 = vst.msk [vmem:[#allocation2 + $0x30] sm:$0xff] %vm623_vm2, %v540_v5  ;;  %631 = vst.msk [vmem:[#allocation2 + $0x38] sm:$0xff] %vm623_vm2, %v542_v29 }
  0xd3   : > { %1498 = vrot.lane.b32.xlu0 %v2852_v6, %s2779_s7  ;;  %922 = vrot.lane.b32.xlu1 %v2852_v6, %s2776_s23 }
  0xd5   : > { %v544_v30 = vpop.permute.xlu0 %543  ;;  %v546_v62 = vpop.permute.xlu1 %545 }
  0xd6   : > { %632 = vst.msk [vmem:[#allocation2 + $0x40] sm:$0xff] %vm623_vm2, %v544_v30  ;;  %633 = vst.msk [vmem:[#allocation2 + $0x48] sm:$0xff] %vm623_vm2, %v546_v62 }
  0xd7   : > { %1500 = vrot.lane.b32.xlu0 %v2855_v7, %s2779_s7  ;;  %1691 = vrot.lane.b32.xlu1 %v3094_v42, %s2780_s8 }
  0xd9   : > { %v548_v22 = vpop.permute.xlu0 %547  ;;  %v550_v23 = vpop.permute.xlu1 %549 }
  0xda   : > { %634 = vst.msk [vmem:[#allocation2 + $0x50] sm:$0xff] %vm623_vm2, %v548_v22  ;;  %635 = vst.msk [vmem:[#allocation2 + $0x58] sm:$0xff] %vm623_vm2, %v550_v23 }
  0xdb   : > { %924 = vrot.lane.b32.xlu0 %v2855_v7, %s2776_s23  ;;  %1115 = vrot.lane.b32.xlu1 %v3094_v42, %s2777_s24 }
  0xdd   : > { %v552_v6 = vpop.permute.xlu0 %551  ;;  %v554_v63 = vpop.permute.xlu1 %553 }
  0xde   : > { %636 = vst.msk [vmem:[#allocation2 + $0x60] sm:$0xff] %vm623_vm2, %v552_v6  ;;  %637 = vst.msk [vmem:[#allocation2 + $0x68] sm:$0xff] %vm623_vm2, %v554_v63 }
  0xdf   : > { %1693 = vrot.lane.b32.xlu0 %v3097_v43, %s2780_s8  ;;  %1117 = vrot.lane.b32.xlu1 %v3097_v43, %s2777_s24 }
  0xe1   : > { %v556_v1 = vpop.permute.xlu0 %555  ;;  %v558_v3 = vpop.permute.xlu1 %557 }
  0xe2   : > { %638 = vst.msk [vmem:[#allocation2 + $0x70] sm:$0xff] %vm623_vm2, %v556_v1  ;;  %639 = vst.msk [vmem:[#allocation2 + $0x78] sm:$0xff] %vm623_vm2, %v558_v3 }
  0xe3   : > { %1309 = vrot.lane.b32.xlu0 %v2930_v24, %s2778_s29  ;;  %1311 = vrot.lane.b32.xlu1 %v2933_v25, %s2778_s29 }
  0xe5   : > { %v560_v7 = vpop.permute.xlu0 %559  ;;  %v562_v42 = vpop.permute.xlu1 %561 }
  0xe6   : > { %640 = vst.msk [vmem:[#allocation2 + $0x80] sm:$0xff] %vm623_vm2, %v560_v7  ;;  %641 = vst.msk [vmem:[#allocation2 + $0x88] sm:$0xff] %vm623_vm2, %v562_v42 }
  0xe7   : > { %1502 = vrot.lane.b32.xlu0 %v2862_v8, %s2779_s7  ;;  %926 = vrot.lane.b32.xlu1 %v2862_v8, %s2776_s23 }
  0xe9   : > { %v564_v43 = vpop.permute.xlu0 %563  ;;  %v566_v56 = vpop.permute.xlu1 %565 }
  0xea   : > { %642 = vst.msk [vmem:[#allocation2 + $0x90] sm:$0xff] %vm623_vm2, %v564_v43  ;;  %643 = vst.msk [vmem:[#allocation2 + $0x98] sm:$0xff] %vm623_vm2, %v566_v56  ;;  %v2553_v56 = vld [vmem:[%s2825_s19 + $0xda] sm:$0xff] }
  0xeb   : > { %1504 = vrot.lane.b32.xlu0 %v2865_v9, %s2779_s7  ;;  %1695 = vrot.lane.b32.xlu1 %v3104_v46, %s2780_s8 }
  0xed   : > { %v568_v24 = vpop.permute.xlu0 %567  ;;  %v570_v25 = vpop.permute.xlu1 %569 }
  0xee   : > { %644 = vst.msk [vmem:[#allocation2 + $0xa0] sm:$0xff] %vm623_vm2, %v568_v24  ;;  %645 = vst.msk [vmem:[#allocation2 + $0xa8] sm:$0xff] %vm623_vm2, %v570_v25 }
  0xef   : > { %928 = vrot.lane.b32.xlu0 %v2865_v9, %s2776_s23  ;;  %1119 = vrot.lane.b32.xlu1 %v3104_v46, %s2777_s24 }
  0xf1   : > { %v572_v8 = vpop.permute.xlu0 %571  ;;  %v574_v12 = vpop.permute.xlu1 %573 }
  0xf2   : > { %646 = vst.msk [vmem:[#allocation2 + $0xb0] sm:$0xff] %vm623_vm2, %v572_v8  ;;  %647 = vst.msk [vmem:[#allocation2 + $0xb8] sm:$0xff] %vm623_vm2, %v574_v12 }
  0xf3   : > { %1697 = vrot.lane.b32.xlu0 %v3107_v47, %s2780_s8  ;;  %1121 = vrot.lane.b32.xlu1 %v3107_v47, %s2777_s24 }
  0xf5   : > { %v576_v16 = vpop.permute.xlu0 %575  ;;  %v578_v57 = vpop.permute.xlu1 %577 }
  0xf6   : > { %648 = vst.msk [vmem:[#allocation2 + $0xc0] sm:$0xff] %vm623_vm2, %v576_v16  ;;  %649 = vst.msk [vmem:[#allocation2 + $0xc8] sm:$0xff] %vm623_vm2, %v578_v57  ;;  %v2554_v16 = vld [vmem:[%s2825_s19 + $0xe2] sm:$0xff] }
  0xf7   : > { %1313 = vrot.lane.b32.xlu0 %v2942_v26, %s2778_s29  ;;  %1315 = vrot.lane.b32.xlu1 %v2945_v27, %s2778_s29 }
  0xf9   : > { %v580_v9 = vpop.permute.xlu0 %579  ;;  %v582_v46 = vpop.permute.xlu1 %581 }
  0xfa   : > { %650 = vst.msk [vmem:[#allocation2 + $0xd0] sm:$0xff] %vm623_vm2, %v580_v9  ;;  %651 = vst.msk [vmem:[#allocation2 + $0xd8] sm:$0xff] %vm623_vm2, %v582_v46 }
  0xfb   : > { %1506 = vrot.lane.b32.xlu0 %v2872_v10, %s2779_s7  ;;  %930 = vrot.lane.b32.xlu1 %v2872_v10, %s2776_s23 }
  0xfd   : > { %v584_v47 = vpop.permute.xlu0 %583  ;;  %v586_v0 = vpop.permute.xlu1 %585 }
  0xfe   : > { %652 = vst.msk [vmem:[#allocation2 + $0xe0] sm:$0xff] %vm623_vm2, %v584_v47  ;;  %653 = vst.msk [vmem:[#allocation2 + $0xe8] sm:$0xff] %vm623_vm2, %v586_v0 }
  0xff   : > { %1508 = vrot.lane.b32.xlu0 %v2875_v11, %s2779_s7  ;;  %1699 = vrot.lane.b32.xlu1 %v3114_v48, %s2780_s8 }
 0x101   : > { %v588_v26 = vpop.permute.xlu0 %587  ;;  %v590_v27 = vpop.permute.xlu1 %589 }
 0x102   : > { %654 = vst.msk [vmem:[#allocation2 + $0xf0] sm:$0xff] %vm623_vm2, %v588_v26  ;;  %655 = vst.msk [vmem:[#allocation2 + $0xf8] sm:$0xff] %vm623_vm2, %v590_v27  ;;  %v2523_v26 = vld [vmem:[%s2825_s19 + $0xf1] sm:$0xff] }
 0x103   : > { %932 = vrot.lane.b32.xlu0 %v2875_v11, %s2776_s23  ;;  %1123 = vrot.lane.b32.xlu1 %v3114_v48, %s2777_s24 }
 0x105   : > { %v722_v10 = vpop.permute.xlu0 %721  ;;  %v724_v19 = vpop.permute.xlu1 %723 }
 0x106   : > { %818 = vst.msk [vmem:[#allocation2] sm:$0xff] %vm817_vm4, %v722_v10  ;;  %819 = vst.msk [vmem:[#allocation2 + $0x8] sm:$0xff] %vm817_vm4, %v724_v19 }
 0x107   : > { %1701 = vrot.lane.b32.xlu0 %v3117_v49, %s2780_s8  ;;  %1125 = vrot.lane.b32.xlu1 %v3117_v49, %s2777_s24 }
 0x109   : > { %v726_v20 = vpop.permute.xlu0 %725  ;;  %v728_v2 = vpop.permute.xlu1 %727 }
 0x10a   : > { %820 = vst.msk [vmem:[#allocation2 + $0x10] sm:$0xff] %vm817_vm4, %v726_v20  ;;  %821 = vst.msk [vmem:[#allocation2 + $0x18] sm:$0xff] %vm817_vm4, %v728_v2 }
 0x10b   : > { %1317 = vrot.lane.b32.xlu0 %v2948_v28, %s2778_s29  ;;  %1319 = vrot.lane.b32.xlu1 %v2959_v31, %s2778_s29 }
 0x10d   : > { %v730_v11 = vpop.permute.xlu0 %729  ;;  %v732_v48 = vpop.permute.xlu1 %731 }
 0x10e   : > { %822 = vst.msk [vmem:[#allocation2 + $0x20] sm:$0xff] %vm817_vm4, %v730_v11  ;;  %823 = vst.msk [vmem:[#allocation2 + $0x28] sm:$0xff] %vm817_vm4, %v732_v48  ;;  %v2555_v11 = vld [vmem:[%s2825_s19 + $0xf2] sm:$0xff] }
 0x10f   : > { %1510 = vrot.lane.b32.xlu0 %v2886_v14, %s2779_s7  ;;  %934 = vrot.lane.b32.xlu1 %v2886_v14, %s2776_s23 }
 0x111   : > { %v734_v49 = vpop.permute.xlu0 %733  ;;  %v736_v4 = vpop.permute.xlu1 %735 }
 0x112   : > { %824 = vst.msk [vmem:[#allocation2 + $0x30] sm:$0xff] %vm817_vm4, %v734_v49  ;;  %825 = vst.msk [vmem:[#allocation2 + $0x38] sm:$0xff] %vm817_vm4, %v736_v4 }
 0x113   : > { %1512 = vrot.lane.b32.xlu0 %v2889_v15, %s2779_s7  ;;  %1703 = vrot.lane.b32.xlu1 %v3124_v50, %s2780_s8 }
 0x115   : > { %v738_v28 = vpop.permute.xlu0 %737  ;;  %v740_v31 = vpop.permute.xlu1 %739 }
 0x116   : > { %826 = vst.msk [vmem:[#allocation2 + $0x40] sm:$0xff] %vm817_vm4, %v738_v28  ;;  %827 = vst.msk [vmem:[#allocation2 + $0x48] sm:$0xff] %vm817_vm4, %v740_v31 }
 0x117   : > { %936 = vrot.lane.b32.xlu0 %v2889_v15, %s2776_s23  ;;  %1127 = vrot.lane.b32.xlu1 %v3124_v50, %s2777_s24 }
 0x119   : > { %v742_v14 = vpop.permute.xlu0 %741  ;;  %v744_v58 = vpop.permute.xlu1 %743 }
 0x11a   : > { %828 = vst.msk [vmem:[#allocation2 + $0x50] sm:$0xff] %vm817_vm4, %v742_v14  ;;  %829 = vst.msk [vmem:[#allocation2 + $0x58] sm:$0xff] %vm817_vm4, %v744_v58 }
 0x11b   : > { %1705 = vrot.lane.b32.xlu0 %v3127_v51, %s2780_s8  ;;  %1129 = vrot.lane.b32.xlu1 %v3127_v51, %s2777_s24 }
 0x11d   : > { %v746_v59 = vpop.permute.xlu0 %745  ;;  %v748_v60 = vpop.permute.xlu1 %747 }
 0x11e   : > { %830 = vst.msk [vmem:[#allocation2 + $0x60] sm:$0xff] %vm817_vm4, %v746_v59  ;;  %831 = vst.msk [vmem:[#allocation2 + $0x68] sm:$0xff] %vm817_vm4, %v748_v60 }
 0x11f   : > { %1321 = vrot.lane.b32.xlu0 %v2962_v32, %s2778_s29  ;;  %1323 = vrot.lane.b32.xlu1 %v2965_v33, %s2778_s29 }
 0x121   : > { %v750_v15 = vpop.permute.xlu0 %749  ;;  %v752_v50 = vpop.permute.xlu1 %751 }
 0x122   : > { %832 = vst.msk [vmem:[#allocation2 + $0x70] sm:$0xff] %vm817_vm4, %v750_v15  ;;  %833 = vst.msk [vmem:[#allocation2 + $0x78] sm:$0xff] %vm817_vm4, %v752_v50  ;;  %v2525_v15 = vld [vmem:[%s2825_s19 + $0x109] sm:$0xff] }
 0x123   : > { %1514 = vrot.lane.b32.xlu0 %v2900_v18, %s2779_s7  ;;  %938 = vrot.lane.b32.xlu1 %v2900_v18, %s2776_s23 }
 0x125   : > { %v915_v51 = vpop.permute.xlu0 %914  ;;  %v917_v61 = vpop.permute.xlu1 %916 }
 0x126   : > { %1011 = vst.msk [vmem:[#allocation2] sm:$0xff] %vm1010_vm5, %v915_v51  ;;  %1012 = vst.msk [vmem:[#allocation2 + $0x8] sm:$0xff] %vm1010_vm5, %v917_v61 }
 0x127   : > { %1516 = vrot.lane.b32.xlu0 %v2915_v21, %s2779_s7  ;;  %1707 = vrot.lane.b32.xlu1 %v3134_v52, %s2780_s8 }
 0x129   : > { %v1108_v32 = vpop.permute.xlu0 %1107  ;;  %v1110_v33 = vpop.permute.xlu1 %1109 }
 0x12a   : > { %1204 = vst.msk [vmem:[#allocation2] sm:$0xff] %vm1203_vm6, %v1108_v32  ;;  %1205 = vst.msk [vmem:[#allocation2 + $0x8] sm:$0xff] %vm1203_vm6, %v1110_v33 }
 0x12b   : > { %940 = vrot.lane.b32.xlu0 %v2915_v21, %s2776_s23  ;;  %1131 = vrot.lane.b32.xlu1 %v3134_v52, %s2777_s24  ;;  %v2519_v52 = vld [vmem:[%s2825_s19 + $0xc1] sm:$0xff] }
 0x12d   : > { %v1302_v18 = vpop.permute.xlu0 %1301  ;;  %v1304_v13 = vpop.permute.xlu1 %1303 }
 0x12e   : > { %1398 = vst.msk [vmem:[#allocation2] sm:$0xff] %vm1397_vm7, %v1302_v18  ;;  %1399 = vst.msk [vmem:[#allocation2 + $0x8] sm:$0xff] %vm1397_vm7, %v1304_v13  ;;  %v2557_v18 = vld [vmem:[%s2825_s19 + $0x10a] sm:$0xff] }
 0x12f   : > { %1709 = vrot.lane.b32.xlu0 %v3137_v53, %s2780_s8  ;;  %1133 = vrot.lane.b32.xlu1 %v3137_v53, %s2777_s24  ;;  %v2520_v53 = vld [vmem:[%s2825_s19 + $0xc9] sm:$0xff] }
 0x131   : > { %v1495_v21 = vpop.permute.xlu0 %1494  ;;  %v919_v17 = vpop.permute.xlu1 %918 }
 0x132   : > { %1591 = vst.msk [vmem:[#allocation2] sm:$0xff] %vm1590_vm8, %v1495_v21 }
 0x133   : > { %1013 = vst.msk [vmem:[#allocation2 + $0x10] sm:$0xff] %vm1010_vm5, %v919_v17  ;;  %1325 = vrot.lane.b32.xlu0 %v2978_v34, %s2778_s29  ;;  %1327 = vrot.lane.b32.xlu1 %v2981_v35, %s2778_s29 }
 0x135   : > { %v1497_v5 = vpop.permute.xlu0 %1496  ;;  %v1688_v29 = vpop.permute.xlu1 %1687 }
 0x136   : > { %1592 = vst.msk [vmem:[#allocation2 + $0x8] sm:$0xff] %vm1590_vm8, %v1497_v5  ;;  %v2558_v5 = vld [vmem:[%s2825_s19 + $0x112] sm:$0xff] }
 0x137   : > { %1784 = vst.msk [vmem:[#allocation2] sm:$0xff] %vm1783_vm9, %v1688_v29  ;;  %1518 = vrot.lane.b32.xlu0 %v2519_v52, %s2779_s7  ;;  %942 = vrot.lane.b32.xlu1 %v2519_v52, %s2776_s23 }
 0x139   : > { %v921_v30 = vpop.permute.xlu0 %920  ;;  %v1112_v62 = vpop.permute.xlu1 %1111 }
 0x13a   : > { %1014 = vst.msk [vmem:[#allocation2 + $0x18] sm:$0xff] %vm1010_vm5, %v921_v30 }
 0x13b   : > { %1206 = vst.msk [vmem:[#allocation2 + $0x10] sm:$0xff] %vm1203_vm6, %v1112_v62  ;;  %1520 = vrot.lane.b32.xlu0 %v2520_v53, %s2779_s7  ;;  %1711 = vrot.lane.b32.xlu1 %v3144_v54, %s2780_s8 }
 0x13d   : > { %v1690_v34 = vpop.permute.xlu0 %1689  ;;  %v1114_v35 = vpop.permute.xlu1 %1113 }
 0x13e   : > { %v1816_v22 = vld [vmem:[#allocation2] sm:$0xff]  ;;  %1785 = vst.msk [vmem:[#allocation2 + $0x8] sm:$0xff] %vm1783_vm9, %v1690_v34 }
 0x13f   : > { %1207 = vst.msk [vmem:[#allocation2 + $0x18] sm:$0xff] %vm1203_vm6, %v1114_v35  ;;  %2653 = vmatprep.mubr.msk.f32.mxu0 %vm1853_vm10, %v1816_v22  ;;  %944 = vrot.lane.b32.xlu0 %v2520_v53, %s2776_s23  ;;  %v2527_v35 = vld [vmem:[%s2825_s19 + $0x121] sm:$0xff] }
 0x140   : > { %1135 = vrot.lane.b32.xlu1 %v3144_v54, %s2777_s24  ;;  %v2521_v54 = vld [vmem:[%s2825_s19 + $0xd9] sm:$0xff] }
 0x141   : > { %v1306_v23 = vpop.permute.xlu0 %1305  ;;  %v1308_v6 = vpop.permute.xlu1 %1307 }
 0x142   : > { %1400 = vst.msk [vmem:[#allocation2 + $0x10] sm:$0xff] %vm1397_vm7, %v1306_v23  ;;  %1401 = vst.msk [vmem:[#allocation2 + $0x18] sm:$0xff] %vm1397_vm7, %v1308_v6 }
 0x143   : > { %1713 = vrot.lane.b32.xlu0 %v3147_v55, %s2780_s8 }
 0x144   : > { %1137 = vrot.lane.b32.xlu1 %v3147_v55, %s2777_s24 }
 0x145   : > { %v1499_v63 = vpop.permute.xlu0 %1498  ;;  %v923_v1 = vpop.permute.xlu1 %922  ;;  %v1817_v3 = vld [vmem:[#allocation2 + $0x8] sm:$0xff] }
 0x146   : > { %1593 = vst.msk [vmem:[#allocation2 + $0x10] sm:$0xff] %vm1590_vm8, %v1499_v63  ;;  %2654 = vmatmul.mubr.msk.f32.vlgmr.msra.gmra.mrb[0].mxu0 %vm1853_vm10, %v1817_v3  ;;  %v2559_v3 = vld [vmem:[%s2825_s19 + $0x122] sm:$0xff] }
 0x147   : > { %1015 = vst.msk [vmem:[#allocation2 + $0x20] sm:$0xff] %vm1010_vm5, %v923_v1  ;;  %1329 = vrot.lane.b32.xlu0 %v2988_v36, %s2778_s29 }
 0x148   : > { %753 = vrot.lane.b32.xlu1 %v2988_v36, %s2775_s22  ;;  %v2522_v36 = vld [vmem:[%s2825_s19 + $0xe1] sm:$0xff] }
 0x149   : > { %v1501_v7 = vpop.permute.xlu0 %1500  ;;  %v1692_v55 = vpop.permute.xlu1 %1691 }
 0x14a   : > { %1594 = vst.msk [vmem:[#allocation2 + $0x18] sm:$0xff] %vm1590_vm8, %v1501_v7 }
 0x14b   : > { %1786 = vst.msk [vmem:[#allocation2 + $0x10] sm:$0xff] %vm1783_vm9, %v1692_v55  ;;  %1331 = vrot.lane.b32.xlu0 %v2991_v37, %s2778_s29 }
 0x14c   : > { %1522 = vrot.lane.b32.xlu1 %v2521_v54, %s2779_s7 }
 0x14d   : > { %v925_v42 = vpop.permute.xlu0 %924  ;;  %v1116_v43 = vpop.permute.xlu1 %1115 }
 0x14e   : > { %1016 = vst.msk [vmem:[#allocation2 + $0x28] sm:$0xff] %vm1010_vm5, %v925_v42 }
 0x14f   : > { %1208 = vst.msk [vmem:[#allocation2 + $0x20] sm:$0xff] %vm1203_vm6, %v1116_v43  ;;  %755 = vrot.lane.b32.xlu0 %v2991_v37, %s2775_s22 }
 0x150   : > { %946 = vrot.lane.b32.xlu1 %v2521_v54, %s2776_s23 }
 0x151   : > { %v1694_v24 = vpop.permute.xlu0 %1693  ;;  %v1118_v25 = vpop.permute.xlu1 %1117 }
 0x152   : > { %v1818_v8 = vld [vmem:[#allocation2 + $0x10] sm:$0xff]  ;;  %1787 = vst.msk [vmem:[#allocation2 + $0x18] sm:$0xff] %vm1783_vm9, %v1694_v24  ;;  %v2497_v24 = vld [vmem:[%s2825_s19 + $0x138] sm:$0xff] }
 0x153   : > { %1209 = vst.msk [vmem:[#allocation2 + $0x28] sm:$0xff] %vm1203_vm6, %v1118_v25  ;;  %2656 = vmatprep.mubr.msk.f32.mxu0 %vm1853_vm10, %v1818_v8  ;;  %1524 = vrot.lane.b32.xlu0 %v2522_v36, %s2779_s7 }
 0x154   : > { %1715 = vrot.lane.b32.xlu1 %v2553_v56, %s2780_s8 }
 0x155   : > { %v1310_v12 = vpop.permute.xlu0 %1309  ;;  %v1312_v37 = vpop.permute.xlu1 %1311 }
 0x156   : > { %1402 = vst.msk [vmem:[#allocation2 + $0x20] sm:$0xff] %vm1397_vm7, %v1310_v12  ;;  %1403 = vst.msk [vmem:[#allocation2 + $0x28] sm:$0xff] %vm1397_vm7, %v1312_v37  ;;  %v2498_v12 = vld [vmem:[%s2825_s19 + $0x140] sm:$0xff] }
 0x157   : > { %948 = vrot.lane.b32.xlu0 %v2522_v36, %s2776_s23  ;;  %v2529_v37 = vld [vmem:[%s2825_s19 + $0x139] sm:$0xff] }
 0x158   : > { %1139 = vrot.lane.b32.xlu1 %v2553_v56, %s2777_s24 }
 0x159   : > { %v1503_v57 = vpop.permute.xlu0 %1502  ;;  %v927_v9 = vpop.permute.xlu1 %926  ;;  %v1819_v46 = vld [vmem:[#allocation2 + $0x18] sm:$0xff] }
 0x15a   : > { %1595 = vst.msk [vmem:[#allocation2 + $0x20] sm:$0xff] %vm1590_vm8, %v1503_v57  ;;  %2657 = vmatmul.mubr.msk.f32.gmra.mrb[2].mxu0 %vm1853_vm10, %v1819_v46 }
 0x15b   : > { %1017 = vst.msk [vmem:[#allocation2 + $0x30] sm:$0xff] %vm1010_vm5, %v927_v9  ;;  %1717 = vrot.lane.b32.xlu0 %v2554_v16, %s2780_s8 }
 0x15c   : > { %1141 = vrot.lane.b32.xlu1 %v2554_v16, %s2777_s24 }
 0x15d   : > { %v1505_v47 = vpop.permute.xlu0 %1504  ;;  %v1696_v0 = vpop.permute.xlu1 %1695 }
 0x15e   : > { %1596 = vst.msk [vmem:[#allocation2 + $0x28] sm:$0xff] %vm1590_vm8, %v1505_v47 }
 0x15f   : > { %1788 = vst.msk [vmem:[#allocation2 + $0x20] sm:$0xff] %vm1783_vm9, %v1696_v0  ;;  %1333 = vrot.lane.b32.xlu0 %v2994_v38, %s2778_s29  ;;  %v2530_v0 = vld [vmem:[%s2825_s19 + $0x141] sm:$0xff] }
 0x160   : > { %757 = vrot.lane.b32.xlu1 %v2994_v38, %s2775_s22  ;;  %v2524_v38 = vld [vmem:[%s2825_s19 + $0xf9] sm:$0xff] }
 0x161   : > { %v929_v27 = vpop.permute.xlu0 %928  ;;  %v1120_v10 = vpop.permute.xlu1 %1119 }
 0x162   : > { %1018 = vst.msk [vmem:[#allocation2 + $0x38] sm:$0xff] %vm1010_vm5, %v929_v27 }
 0x163   : > { %1210 = vst.msk [vmem:[#allocation2 + $0x30] sm:$0xff] %vm1203_vm6, %v1120_v10  ;;  %1335 = vrot.lane.b32.xlu0 %v3003_v39, %s2778_s29 }
 0x164   : > { %1526 = vrot.lane.b32.xlu1 %v2523_v26, %s2779_s7 }
 0x165   : > { %v1698_v19 = vpop.permute.xlu0 %1697  ;;  %v1122_v20 = vpop.permute.xlu1 %1121 }
 0x166   : > { %v1820_v2 = vld [vmem:[#allocation2 + $0x20] sm:$0xff]  ;;  %1789 = vst.msk [vmem:[#allocation2 + $0x28] sm:$0xff] %vm1783_vm9, %v1698_v19 }
 0x167   : > { %1211 = vst.msk [vmem:[#allocation2 + $0x38] sm:$0xff] %vm1203_vm6, %v1122_v20  ;;  %2659 = vmatprep.mubr.msk.f32.mxu0 %vm1853_vm10, %v1820_v2  ;;  %759 = vrot.lane.b32.xlu0 %v3003_v39, %s2775_s22  ;;  %v2556_v39 = vld [vmem:[%s2825_s19 + $0xfa] sm:$0xff] }
 0x168   : > { %950 = vrot.lane.b32.xlu1 %v2523_v26, %s2776_s23  ;;  %v2561_v26 = vld [vmem:[%s2825_s19 + $0x13a] sm:$0xff] }
 0x169   : > { %v1314_v48 = vpop.permute.xlu0 %1313  ;;  %v1316_v49 = vpop.permute.xlu1 %1315 }
 0x16a   : > { %1404 = vst.msk [vmem:[#allocation2 + $0x30] sm:$0xff] %vm1397_vm7, %v1314_v48  ;;  %1405 = vst.msk [vmem:[#allocation2 + $0x38] sm:$0xff] %vm1397_vm7, %v1316_v49  ;;  %v2499_v49 = vld [vmem:[%s2825_s19 + $0x150] sm:$0xff] }
 0x16b   : > { %1528 = vrot.lane.b32.xlu0 %v2524_v38, %s2779_s7 }
 0x16c   : > { %1719 = vrot.lane.b32.xlu1 %v2555_v11, %s2780_s8 }
 0x16d   : > { %v1507_v4 = vpop.permute.xlu0 %1506  ;;  %v931_v28 = vpop.permute.xlu1 %930  ;;  %v1821_v31 = vld [vmem:[#allocation2 + $0x28] sm:$0xff] }
 0x16e   : > { %1597 = vst.msk [vmem:[#allocation2 + $0x30] sm:$0xff] %vm1590_vm8, %v1507_v4  ;;  %2660 = vmatmul.mubr.msk.f32.gmra.mrb[4].mxu0 %vm1853_vm10, %v1821_v31 }
 0x16f   : > { %1019 = vst.msk [vmem:[#allocation2 + $0x40] sm:$0xff] %vm1010_vm5, %v931_v28  ;;  %952 = vrot.lane.b32.xlu0 %v2524_v38, %s2776_s23  ;;  %v2562_v38 = vld [vmem:[%s2825_s19 + $0x142] sm:$0xff] }
 0x170   : > { %1143 = vrot.lane.b32.xlu1 %v2555_v11, %s2777_s24 }
 0x171   : > { %v1509_v14 = vpop.permute.xlu0 %1508  ;;  %v1700_v58 = vpop.permute.xlu1 %1699 }
 0x172   : > { %1598 = vst.msk [vmem:[#allocation2 + $0x38] sm:$0xff] %vm1590_vm8, %v1509_v14  ;;  %v2531_v14 = vld [vmem:[%s2825_s19 + $0x151] sm:$0xff] }
 0x173   : > { %1790 = vst.msk [vmem:[#allocation2 + $0x30] sm:$0xff] %vm1783_vm9, %v1700_v58  ;;  %1721 = vrot.lane.b32.xlu0 %v2556_v39, %s2780_s8 }
 0x174   : > { %1145 = vrot.lane.b32.xlu1 %v2556_v39, %s2777_s24  ;;  %v2500_v39 = vld [vmem:[%s2825_s19 + $0x158] sm:$0xff] }
 0x175   : > { %v933_v59 = vpop.permute.xlu0 %932  ;;  %v1124_v60 = vpop.permute.xlu1 %1123 }
 0x176   : > { %1020 = vst.msk [vmem:[#allocation2 + $0x48] sm:$0xff] %vm1010_vm5, %v933_v59 }
 0x177   : > { %1212 = vst.msk [vmem:[#allocation2 + $0x40] sm:$0xff] %vm1203_vm6, %v1124_v60  ;;  %1337 = vrot.lane.b32.xlu0 %v3006_v40, %s2778_s29 }
 0x178   : > { %761 = vrot.lane.b32.xlu1 %v3006_v40, %s2775_s22  ;;  %v2526_v40 = vld [vmem:[%s2825_s19 + $0x111] sm:$0xff] }
 0x179   : > { %v1702_v50 = vpop.permute.xlu0 %1701  ;;  %v1126_v51 = vpop.permute.xlu1 %1125 }
 0x17a   : > { %v1822_v61 = vld [vmem:[#allocation2 + $0x30] sm:$0xff]  ;;  %1791 = vst.msk [vmem:[#allocation2 + $0x38] sm:$0xff] %vm1783_vm9, %v1702_v50  ;;  %v2532_v50 = vld [vmem:[%s2825_s19 + $0x159] sm:$0xff] }
 0x17b   : > { %1213 = vst.msk [vmem:[#allocation2 + $0x48] sm:$0xff] %vm1203_vm6, %v1126_v51  ;;  %2662 = vmatprep.mubr.msk.f32.mxu0 %vm1853_vm10, %v1822_v61  ;;  %1339 = vrot.lane.b32.xlu0 %v3009_v41, %s2778_s29  ;;  %v2563_v51 = vld [vmem:[%s2825_s19 + $0x152] sm:$0xff] }
 0x17c   : > { %1530 = vrot.lane.b32.xlu1 %v2525_v15, %s2779_s7 }
 0x17d   : > { %v1318_v32 = vpop.permute.xlu0 %1317  ;;  %v1320_v33 = vpop.permute.xlu1 %1319 }
 0x17e   : > { %1406 = vst.msk [vmem:[#allocation2 + $0x40] sm:$0xff] %vm1397_vm7, %v1318_v32  ;;  %1407 = vst.msk [vmem:[#allocation2 + $0x48] sm:$0xff] %vm1397_vm7, %v1320_v33 }
 0x17f   : > { %763 = vrot.lane.b32.xlu0 %v3009_v41, %s2775_s22 }
 0x180   : > { %954 = vrot.lane.b32.xlu1 %v2525_v15, %s2776_s23 }
 0x181   : > { %v1511_v13 = vpop.permute.xlu0 %1510  ;;  %v935_v21 = vpop.permute.xlu1 %934  ;;  %v1823_v17 = vld [vmem:[#allocation2 + $0x38] sm:$0xff] }
 0x182   : > { %1599 = vst.msk [vmem:[#allocation2 + $0x40] sm:$0xff] %vm1590_vm8, %v1511_v13  ;;  %2663 = vmatmul.mubr.msk.f32.gmra.mrb[6].mxu0 %vm1853_vm10, %v1823_v17  ;;  %v2564_v13 = vld [vmem:[%s2825_s19 + $0x15a] sm:$0xff] }
 0x183   : > { %1021 = vst.msk [vmem:[#allocation2 + $0x50] sm:$0xff] %vm1010_vm5, %v935_v21  ;;  %1532 = vrot.lane.b32.xlu0 %v2526_v40, %s2779_s7 }
 0x184   : > { %1723 = vrot.lane.b32.xlu1 %v2557_v18, %s2780_s8 }
 0x185   : > { %v1513_v52 = vpop.permute.xlu0 %1512  ;;  %v1704_v41 = vpop.permute.xlu1 %1703 }
 0x186   : > { %1600 = vst.msk [vmem:[#allocation2 + $0x48] sm:$0xff] %vm1590_vm8, %v1513_v52  ;;  %v2501_v52 = vld [vmem:[%s2825_s19 + $0x168] sm:$0xff] }
 0x187   : > { %1792 = vst.msk [vmem:[#allocation2 + $0x40] sm:$0xff] %vm1783_vm9, %v1704_v41  ;;  %956 = vrot.lane.b32.xlu0 %v2526_v40, %s2776_s23 }
 0x188   : > { %1147 = vrot.lane.b32.xlu1 %v2557_v18, %s2777_s24 }
 0x189   : > { %v937_v29 = vpop.permute.xlu0 %936  ;;  %v1128_v53 = vpop.permute.xlu1 %1127 }
 0x18a   : > { %1022 = vst.msk [vmem:[#allocation2 + $0x58] sm:$0xff] %vm1010_vm5, %v937_v29 }
 0x18b   : > { %1214 = vst.msk [vmem:[#allocation2 + $0x50] sm:$0xff] %vm1203_vm6, %v1128_v53  ;;  %1725 = vrot.lane.b32.xlu0 %v2558_v5, %s2780_s8  ;;  %v2502_v53 = vld [vmem:[%s2825_s19 + $0x170] sm:$0xff] }
 0x18c   : > { %1149 = vrot.lane.b32.xlu1 %v2558_v5, %s2777_s24 }
 0x18d   : > { %v1706_v30 = vpop.permute.xlu0 %1705  ;;  %v1130_v62 = vpop.permute.xlu1 %1129 }
 0x18e   : > { %v1824_v34 = vld [vmem:[#allocation2 + $0x40] sm:$0xff]  ;;  %1793 = vst.msk [vmem:[#allocation2 + $0x48] sm:$0xff] %vm1783_vm9, %v1706_v30  ;;  %v2533_v30 = vld [vmem:[%s2825_s19 + $0x169] sm:$0xff] }
 0x18f   : > { %1215 = vst.msk [vmem:[#allocation2 + $0x58] sm:$0xff] %vm1203_vm6, %v1130_v62  ;;  %2665 = vmatprep.mubr.msk.f32.mxu0 %vm1853_vm10, %v1824_v34  ;;  %1341 = vrot.lane.b32.xlu0 %v3022_v44, %s2778_s29 }
 0x190   : > { %765 = vrot.lane.b32.xlu1 %v3022_v44, %s2775_s22  ;;  %v2528_v44 = vld [vmem:[%s2825_s19 + $0x129] sm:$0xff] }
 0x191   : > { %v1322_v22 = vpop.permute.xlu0 %1321  ;;  %v1324_v23 = vpop.permute.xlu1 %1323 }
 0x192   : > { %1408 = vst.msk [vmem:[#allocation2 + $0x50] sm:$0xff] %vm1397_vm7, %v1322_v22  ;;  %1409 = vst.msk [vmem:[#allocation2 + $0x58] sm:$0xff] %vm1397_vm7, %v1324_v23  ;;  %v2534_v23 = vld [vmem:[%s2825_s19 + $0x171] sm:$0xff] }
 0x193   : > { %1343 = vrot.lane.b32.xlu0 %v3027_v45, %s2778_s29 }
 0x194   : > { %1534 = vrot.lane.b32.xlu1 %v2527_v35, %s2779_s7 }
 0x195   : > { %v1515_v6 = vpop.permute.xlu0 %1514  ;;  %v939_v63 = vpop.permute.xlu1 %938  ;;  %v1825_v1 = vld [vmem:[#allocation2 + $0x48] sm:$0xff] }
 0x196   : > { %1601 = vst.msk [vmem:[#allocation2 + $0x50] sm:$0xff] %vm1590_vm8, %v1515_v6  ;;  %2666 = vmatmul.mubr.msk.f32.gmra.mrb[8].mxu0 %vm1853_vm10, %v1825_v1  ;;  %v2565_v6 = vld [vmem:[%s2825_s19 + $0x16a] sm:$0xff] }
 0x197   : > { %1023 = vst.msk [vmem:[#allocation2 + $0x60] sm:$0xff] %vm1010_vm5, %v939_v63  ;;  %767 = vrot.lane.b32.xlu0 %v3027_v45, %s2775_s22  ;;  %v2560_v45 = vld [vmem:[%s2825_s19 + $0x12a] sm:$0xff] }
 0x198   : > { %958 = vrot.lane.b32.xlu1 %v2527_v35, %s2776_s23 }
 0x199   : > { %v1517_v54 = vpop.permute.xlu0 %1516  ;;  %v1708_v7 = vpop.permute.xlu1 %1707 }
 0x19a   : > { %1602 = vst.msk [vmem:[#allocation2 + $0x58] sm:$0xff] %vm1590_vm8, %v1517_v54 }
 0x19b   : > { %1794 = vst.msk [vmem:[#allocation2 + $0x50] sm:$0xff] %vm1783_vm9, %v1708_v7  ;;  %1536 = vrot.lane.b32.xlu0 %v2528_v44, %s2779_s7  ;;  %v2566_v7 = vld [vmem:[%s2825_s19 + $0x172] sm:$0xff] }
 0x19c   : > { %1727 = vrot.lane.b32.xlu1 %v2559_v3, %s2780_s8 }
 0x19d   : > { %v941_v55 = vpop.permute.xlu0 %940  ;;  %v1132_v42 = vpop.permute.xlu1 %1131 }
 0x19e   : > { %1024 = vst.msk [vmem:[#allocation2 + $0x68] sm:$0xff] %vm1010_vm5, %v941_v55 }
 0x19f   : > { %1216 = vst.msk [vmem:[#allocation2 + $0x60] sm:$0xff] %vm1203_vm6, %v1132_v42  ;;  %960 = vrot.lane.b32.xlu0 %v2528_v44, %s2776_s23 }
 0x1a0   : > { %1151 = vrot.lane.b32.xlu1 %v2559_v3, %s2777_s24 }
 0x1a1   : > { %v1710_v43 = vpop.permute.xlu0 %1709  ;;  %v1134_v36 = vpop.permute.xlu1 %1133 }
 0x1a2   : > { %v1826_v56 = vld [vmem:[#allocation2 + $0x50] sm:$0xff]  ;;  %1795 = vst.msk [vmem:[#allocation2 + $0x58] sm:$0xff] %vm1783_vm9, %v1710_v43 }
 0x1a3   : > { %1217 = vst.msk [vmem:[#allocation2 + $0x68] sm:$0xff] %vm1203_vm6, %v1134_v36  ;;  %2668 = vmatprep.mubr.msk.f32.mxu0 %vm1853_vm10, %v1826_v56  ;;  %1729 = vrot.lane.b32.xlu0 %v2560_v45, %s2780_s8 }
 0x1a4   : > { %1153 = vrot.lane.b32.xlu1 %v2560_v45, %s2777_s24  ;;  %v2503_v45 = vld [vmem:[%s2825_s19 + $0x180] sm:$0xff] }
 0x1a5   : > { %v1326_v25 = vpop.permute.xlu0 %1325  ;;  %v1328_v8 = vpop.permute.xlu1 %1327 }
 0x1a6   : > { %1410 = vst.msk [vmem:[#allocation2 + $0x60] sm:$0xff] %vm1397_vm7, %v1326_v25  ;;  %1411 = vst.msk [vmem:[#allocation2 + $0x68] sm:$0xff] %vm1397_vm7, %v1328_v8  ;;  %v2535_v25 = vld [vmem:[%s2825_s19 + $0x181] sm:$0xff] }
 0x1a7   : > { %1345 = vrot.lane.b32.xlu0 %v2497_v24, %s2778_s29 }
 0x1a8   : > { %769 = vrot.lane.b32.xlu1 %v2497_v24, %s2775_s22  ;;  %v2504_v24 = vld [vmem:[%s2825_s19 + $0x188] sm:$0xff] }
 0x1a9   : > { %v1519_v16 = vpop.permute.xlu0 %1518  ;;  %v943_v57 = vpop.permute.xlu1 %942  ;;  %v1827_v9 = vld [vmem:[#allocation2 + $0x58] sm:$0xff] }
 0x1aa   : > { %1603 = vst.msk [vmem:[#allocation2 + $0x60] sm:$0xff] %vm1590_vm8, %v1519_v16  ;;  %2669 = vmatmul.mubr.msk.f32.gmra.mrb[10].mxu0 %vm1853_vm10, %v1827_v9  ;;  %v2567_v9 = vld [vmem:[%s2825_s19 + $0x182] sm:$0xff] }
 0x1ab   : > { %1025 = vst.msk [vmem:[#allocation2 + $0x70] sm:$0xff] %vm1010_vm5, %v943_v57  ;;  %1347 = vrot.lane.b32.xlu0 %v2498_v12, %s2778_s29  ;;  %v2536_v57 = vld [vmem:[%s2825_s19 + $0x189] sm:$0xff] }
 0x1ac   : > { %1538 = vrot.lane.b32.xlu1 %v2529_v37, %s2779_s7 }
 0x1ad   : > { %v1521_v46 = vpop.permute.xlu0 %1520  ;;  %v1712_v47 = vpop.permute.xlu1 %1711 }
 0x1ae   : > { %1604 = vst.msk [vmem:[#allocation2 + $0x68] sm:$0xff] %vm1590_vm8, %v1521_v46 }
 0x1af   : > { %1796 = vst.msk [vmem:[#allocation2 + $0x60] sm:$0xff] %vm1783_vm9, %v1712_v47  ;;  %771 = vrot.lane.b32.xlu0 %v2498_v12, %s2775_s22 }
 0x1b0   : > { %962 = vrot.lane.b32.xlu1 %v2529_v37, %s2776_s23 }
 0x1b1   : > { %v945_v27 = vpop.permute.xlu0 %944 }
 0x1b2   : > { %v1136_v10 = vpop.permute.xlu1 %1135  ;;  %1026 = vst.msk [vmem:[#allocation2 + $0x78] sm:$0xff] %vm1010_vm5, %v945_v27 }
 0x1b3   : > { %1218 = vst.msk [vmem:[#allocation2 + $0x70] sm:$0xff] %vm1203_vm6, %v1136_v10  ;;  %1540 = vrot.lane.b32.xlu0 %v2530_v0, %s2779_s7  ;;  %v2568_v10 = vld [vmem:[%s2825_s19 + $0x18a] sm:$0xff] }
 0x1b4   : > { %1731 = vrot.lane.b32.xlu1 %v2561_v26, %s2780_s8 }
 0x1b5   : > { %v1714_v19 = vpop.permute.xlu0 %1713 }
 0x1b6   : > { %v1138_v20 = vpop.permute.xlu1 %1137  ;;  %v1828_v2 = vld [vmem:[#allocation2 + $0x60] sm:$0xff]  ;;  %1797 = vst.msk [vmem:[#allocation2 + $0x68] sm:$0xff] %vm1783_vm9, %v1714_v19 }
 0x1b7   : > { %1219 = vst.msk [vmem:[#allocation2 + $0x78] sm:$0xff] %vm1203_vm6, %v1138_v20  ;;  %2671 = vmatprep.mubr.msk.f32.mxu0 %vm1853_vm10, %v1828_v2  ;;  %964 = vrot.lane.b32.xlu0 %v2530_v0, %s2776_s23  ;;  %v2505_v2 = vld [vmem:[%s2825_s19 + $0x198] sm:$0xff] }
 0x1b8   : > { %1155 = vrot.lane.b32.xlu1 %v2561_v26, %s2777_s24 }
 0x1b9   : > { %v1330_v11 = vpop.permute.xlu0 %1329 }
 0x1ba   : > { %v754_v48 = vpop.permute.xlu1 %753  ;;  %1412 = vst.msk [vmem:[#allocation2 + $0x70] sm:$0xff] %vm1397_vm7, %v1330_v11 }
 0x1bb   : > { %834 = vst.msk [vmem:[#allocation2 + $0x80] sm:$0xff] %vm817_vm4, %v754_v48  ;;  %1733 = vrot.lane.b32.xlu0 %v2562_v38, %s2780_s8 }
 0x1bc   : > { %1157 = vrot.lane.b32.xlu1 %v2562_v38, %s2777_s24  ;;  %v2506_v38 = vld [vmem:[%s2825_s19 + $0x1a0] sm:$0xff] }
 0x1bd   : > { %v1332_v4 = vpop.permute.xlu0 %1331  ;;  %v1829_v31 = vld [vmem:[#allocation2 + $0x68] sm:$0xff] }
 0x1be   : > { %v1523_v28 = vpop.permute.xlu1 %1522  ;;  %1413 = vst.msk [vmem:[#allocation2 + $0x78] sm:$0xff] %vm1397_vm7, %v1332_v4  ;;  %2672 = vmatmul.mubr.msk.f32.gmra.mrb[12].mxu0 %vm1853_vm10, %v1829_v31  ;;  %v2537_v4 = vld [vmem:[%s2825_s19 + $0x199] sm:$0xff] }
 0x1bf   : > { %1605 = vst.msk [vmem:[#allocation2 + $0x70] sm:$0xff] %vm1590_vm8, %v1523_v28  ;;  %1349 = vrot.lane.b32.xlu0 %v2499_v49, %s2778_s29  ;;  %v2538_v28 = vld [vmem:[%s2825_s19 + $0x1a1] sm:$0xff] }
 0x1c0   : > { %773 = vrot.lane.b32.xlu1 %v2499_v49, %s2775_s22 }
 0x1c1   : > { %v756_v58 = vpop.permute.xlu0 %755 }
 0x1c2   : > { %v947_v59 = vpop.permute.xlu1 %946  ;;  %835 = vst.msk [vmem:[#allocation2 + $0x88] sm:$0xff] %vm817_vm4, %v756_v58  ;;  %v2570_v58 = vld [vmem:[%s2825_s19 + $0x1a2] sm:$0xff] }
 0x1c3   : > { %1027 = vst.msk [vmem:[#allocation2 + $0x80] sm:$0xff] %vm1010_vm5, %v947_v59  ;;  %1351 = vrot.lane.b32.xlu0 %v2500_v39, %s2778_s29 }
 0x1c4   : > { %1542 = vrot.lane.b32.xlu1 %v2531_v14, %s2779_s7 }
 0x1c5   : > { %v1525_v60 = vpop.permute.xlu0 %1524 }
 0x1c6   : > { %v1716_v15 = vpop.permute.xlu1 %1715  ;;  %1606 = vst.msk [vmem:[#allocation2 + $0x78] sm:$0xff] %vm1590_vm8, %v1525_v60 }
 0x1c7   : > { %1798 = vst.msk [vmem:[#allocation2 + $0x70] sm:$0xff] %vm1783_vm9, %v1716_v15  ;;  %775 = vrot.lane.b32.xlu0 %v2500_v39, %s2775_s22 }
 0x1c8   : > { %966 = vrot.lane.b32.xlu1 %v2531_v14, %s2776_s23  ;;  %v2569_v14 = vld [vmem:[%s2825_s19 + $0x19a] sm:$0xff] }
 0x1c9   : > { %v949_v61 = vpop.permute.xlu0 %948 }
 0x1ca   : > { %v1140_v32 = vpop.permute.xlu1 %1139  ;;  %1028 = vst.msk [vmem:[#allocation2 + $0x88] sm:$0xff] %vm1010_vm5, %v949_v61 }
 0x1cb   : > { %1220 = vst.msk [vmem:[#allocation2 + $0x80] sm:$0xff] %vm1203_vm6, %v1140_v32  ;;  %1544 = vrot.lane.b32.xlu0 %v2532_v50, %s2779_s7 }
 0x1cc   : > { %1735 = vrot.lane.b32.xlu1 %v2563_v51, %s2780_s8 }
 0x1cd   : > { %v1718_v33 = vpop.permute.xlu0 %1717 }
 0x1ce   : > { %v1142_v40 = vpop.permute.xlu1 %1141  ;;  %v1830_v18 = vld [vmem:[#allocation2 + $0x70] sm:$0xff]  ;;  %1799 = vst.msk [vmem:[#allocation2 + $0x78] sm:$0xff] %vm1783_vm9, %v1718_v33 }
 0x1cf   : > { %1221 = vst.msk [vmem:[#allocation2 + $0x88] sm:$0xff] %vm1203_vm6, %v1142_v40  ;;  %2674 = vmatprep.mubr.msk.f32.mxu0 %vm1853_vm10, %v1830_v18  ;;  %968 = vrot.lane.b32.xlu0 %v2532_v50, %s2776_s23 }
 0x1d0   : > { %1159 = vrot.lane.b32.xlu1 %v2563_v51, %s2777_s24 }
 0x1d1   : > { %v1334_v21 = vpop.permute.xlu0 %1333 }
 0x1d2   : > { %v758_v17 = vpop.permute.xlu1 %757  ;;  %1414 = vst.msk [vmem:[#allocation2 + $0x80] sm:$0xff] %vm1397_vm7, %v1334_v21 }
 0x1d3   : > { %836 = vst.msk [vmem:[#allocation2 + $0x90] sm:$0xff] %vm817_vm4, %v758_v17  ;;  %1737 = vrot.lane.b32.xlu0 %v2564_v13, %s2780_s8 }
 0x1d4   : > { %1161 = vrot.lane.b32.xlu1 %v2564_v13, %s2777_s24 }
 0x1d5   : > { %v1336_v41 = vpop.permute.xlu0 %1335  ;;  %v1831_v29 = vld [vmem:[#allocation2 + $0x78] sm:$0xff] }
 0x1d6   : > { %v1527_v5 = vpop.permute.xlu1 %1526  ;;  %1415 = vst.msk [vmem:[#allocation2 + $0x88] sm:$0xff] %vm1397_vm7, %v1336_v41  ;;  %2675 = vmatmul.mubr.msk.f32.gmra.mrb[14].mxu0 %vm1853_vm10, %v1831_v29 }
 0x1d7   : > { %1607 = vst.msk [vmem:[#allocation2 + $0x80] sm:$0xff] %vm1590_vm8, %v1527_v5  ;;  %1353 = vrot.lane.b32.xlu0 %v2501_v52, %s2778_s29 }
 0x1d8   : > { %777 = vrot.lane.b32.xlu1 %v2501_v52, %s2775_s22 }
 0x1d9   : > { %v760_v62 = vpop.permute.xlu0 %759 }
 0x1da   : > { %v951_v34 = vpop.permute.xlu1 %950  ;;  %837 = vst.msk [vmem:[#allocation2 + $0x98] sm:$0xff] %vm817_vm4, %v760_v62 }
 0x1db   : > { %1029 = vst.msk [vmem:[#allocation2 + $0x90] sm:$0xff] %vm1010_vm5, %v951_v34  ;;  %1355 = vrot.lane.b32.xlu0 %v2502_v53, %s2778_s29 }
 0x1dc   : > { %1546 = vrot.lane.b32.xlu1 %v2533_v30, %s2779_s7 }
 0x1dd   : > { %v1529_v35 = vpop.permute.xlu0 %1528 }
 0x1de   : > { %v1720_v22 = vpop.permute.xlu1 %1719  ;;  %1608 = vst.msk [vmem:[#allocation2 + $0x88] sm:$0xff] %vm1590_vm8, %v1529_v35 }
 0x1df   : > { %1800 = vst.msk [vmem:[#allocation2 + $0x80] sm:$0xff] %vm1783_vm9, %v1720_v22  ;;  %779 = vrot.lane.b32.xlu0 %v2502_v53, %s2775_s22 }
 0x1e0   : > { %970 = vrot.lane.b32.xlu1 %v2533_v30, %s2776_s23 }
 0x1e1   : > { %v953_v63 = vpop.permute.xlu0 %952 }
 0x1e2   : > { %v1144_v1 = vpop.permute.xlu1 %1143  ;;  %1030 = vst.msk [vmem:[#allocation2 + $0x98] sm:$0xff] %vm1010_vm5, %v953_v63 }
 0x1e3   : > { %1222 = vst.msk [vmem:[#allocation2 + $0x90] sm:$0xff] %vm1203_vm6, %v1144_v1  ;;  %1548 = vrot.lane.b32.xlu0 %v2534_v23, %s2779_s7 }
 0x1e4   : > { %1739 = vrot.lane.b32.xlu1 %v2565_v6, %s2780_s8 }
 0x1e5   : > { %v1722_v44 = vpop.permute.xlu0 %1721 }
 0x1e6   : > { %v1146_v3 = vpop.permute.xlu1 %1145  ;;  %v1832_v54 = vld [vmem:[#allocation2 + $0x80] sm:$0xff]  ;;  %1801 = vst.msk [vmem:[#allocation2 + $0x88] sm:$0xff] %vm1783_vm9, %v1722_v44 }
 0x1e7   : > { %1223 = vst.msk [vmem:[#allocation2 + $0x98] sm:$0xff] %vm1203_vm6, %v1146_v3  ;;  %2677 = vmatprep.mubr.msk.f32.mxu1 %vm1853_vm10, %v1832_v54  ;;  %972 = vrot.lane.b32.xlu0 %v2534_v23, %s2776_s23 }
 0x1e8   : > { %1163 = vrot.lane.b32.xlu1 %v2565_v6, %s2777_s24 }
 0x1e9   : > { %v1338_v55 = vpop.permute.xlu0 %1337 }
 0x1ea   : > { %v762_v42 = vpop.permute.xlu1 %761  ;;  %1416 = vst.msk [vmem:[#allocation2 + $0x90] sm:$0xff] %vm1397_vm7, %v1338_v55 }
 0x1eb   : > { %838 = vst.msk [vmem:[#allocation2 + $0xa0] sm:$0xff] %vm817_vm4, %v762_v42  ;;  %1741 = vrot.lane.b32.xlu0 %v2566_v7, %s2780_s8 }
 0x1ec   : > { %1165 = vrot.lane.b32.xlu1 %v2566_v7, %s2777_s24 }
 0x1ed   : > { %v1340_v43 = vpop.permute.xlu0 %1339  ;;  %v1833_v56 = vld [vmem:[#allocation2 + $0x88] sm:$0xff] }
 0x1ee   : > { %v1531_v36 = vpop.permute.xlu1 %1530  ;;  %1417 = vst.msk [vmem:[#allocation2 + $0x98] sm:$0xff] %vm1397_vm7, %v1340_v43  ;;  %2678 = vmatmul.mubr.msk.f32.vlgmr.msra.gmra.mrb[0].mxu1 %vm1853_vm10, %v1833_v56 }
 0x1ef   : > { %1609 = vst.msk [vmem:[#allocation2 + $0x90] sm:$0xff] %vm1590_vm8, %v1531_v36  ;;  %1357 = vrot.lane.b32.xlu0 %v2503_v45, %s2778_s29 }
 0x1f0   : > { %781 = vrot.lane.b32.xlu1 %v2503_v45, %s2775_s22 }
 0x1f1   : > { %v764_v8 = vpop.permute.xlu0 %763 }
 0x1f2   : > { %v955_v12 = vpop.permute.xlu1 %954  ;;  %839 = vst.msk [vmem:[#allocation2 + $0xa8] sm:$0xff] %vm817_vm4, %v764_v8 }
 0x1f3   : > { %1031 = vst.msk [vmem:[#allocation2 + $0xa0] sm:$0xff] %vm1010_vm5, %v955_v12  ;;  %1359 = vrot.lane.b32.xlu0 %v2504_v24, %s2778_s29 }
 0x1f4   : > { %1550 = vrot.lane.b32.xlu1 %v2535_v25, %s2779_s7 }
 0x1f5   : > { %v1533_v37 = vpop.permute.xlu0 %1532 }
 0x1f6   : > { %v1724_v16 = vpop.permute.xlu1 %1723  ;;  %1610 = vst.msk [vmem:[#allocation2 + $0x98] sm:$0xff] %vm1590_vm8, %v1533_v37 }
 0x1f7   : > { %1802 = vst.msk [vmem:[#allocation2 + $0x90] sm:$0xff] %vm1783_vm9, %v1724_v16  ;;  %783 = vrot.lane.b32.xlu0 %v2504_v24, %s2775_s22 }
 0x1f8   : > { %974 = vrot.lane.b32.xlu1 %v2535_v25, %s2776_s23 }
 0x1f9   : > { %v957_v46 = vpop.permute.xlu0 %956 }
 0x1fa   : > { %v1148_v47 = vpop.permute.xlu1 %1147  ;;  %1032 = vst.msk [vmem:[#allocation2 + $0xa8] sm:$0xff] %vm1010_vm5, %v957_v46 }
 0x1fb   : > { %1224 = vst.msk [vmem:[#allocation2 + $0xa0] sm:$0xff] %vm1203_vm6, %v1148_v47  ;;  %1552 = vrot.lane.b32.xlu0 %v2536_v57, %s2779_s7 }
 0x1fc   : > { %1743 = vrot.lane.b32.xlu1 %v2567_v9, %s2780_s8 }
 0x1fd   : > { %v1726_v0 = vpop.permute.xlu0 %1725 }
 0x1fe   : > { %v1150_v26 = vpop.permute.xlu1 %1149  ;;  %v1834_v27 = vld [vmem:[#allocation2 + $0x90] sm:$0xff]  ;;  %1803 = vst.msk [vmem:[#allocation2 + $0x98] sm:$0xff] %vm1783_vm9, %v1726_v0 }
 0x1ff   : > { %1225 = vst.msk [vmem:[#allocation2 + $0xa8] sm:$0xff] %vm1203_vm6, %v1150_v26  ;;  %2680 = vmatprep.mubr.msk.f32.mxu1 %vm1853_vm10, %v1834_v27  ;;  %976 = vrot.lane.b32.xlu0 %v2536_v57, %s2776_s23 }
 0x200   : > { %1167 = vrot.lane.b32.xlu1 %v2567_v9, %s2777_s24 }
 0x201   : > { %v1342_v19 = vpop.permute.xlu0 %1341 }
 0x202   : > { %v766_v20 = vpop.permute.xlu1 %765  ;;  %1418 = vst.msk [vmem:[#allocation2 + $0xa0] sm:$0xff] %vm1397_vm7, %v1342_v19 }
 0x203   : > { %840 = vst.msk [vmem:[#allocation2 + $0xb0] sm:$0xff] %vm817_vm4, %v766_v20  ;;  %1745 = vrot.lane.b32.xlu0 %v2568_v10, %s2780_s8 }
 0x204   : > { %1169 = vrot.lane.b32.xlu1 %v2568_v10, %s2777_s24 }
 0x205   : > { %v1344_v11 = vpop.permute.xlu0 %1343  ;;  %v1835_v49 = vld [vmem:[#allocation2 + $0x98] sm:$0xff] }
 0x206   : > { %v1535_v48 = vpop.permute.xlu1 %1534  ;;  %1419 = vst.msk [vmem:[#allocation2 + $0xa8] sm:$0xff] %vm1397_vm7, %v1344_v11  ;;  %2681 = vmatmul.mubr.msk.f32.gmra.mrb[2].mxu1 %vm1853_vm10, %v1835_v49 }
 0x207   : > { %1611 = vst.msk [vmem:[#allocation2 + $0xa0] sm:$0xff] %vm1590_vm8, %v1535_v48  ;;  %1361 = vrot.lane.b32.xlu0 %v2505_v2, %s2778_s29 }
 0x208   : > { %1363 = vrot.lane.b32.xlu1 %v2506_v38, %s2778_s29 }
 0x209   : > { %v768_v31 = vpop.permute.xlu0 %767 }
 0x20a   : > { %v959_v39 = vpop.permute.xlu1 %958  ;;  %841 = vst.msk [vmem:[#allocation2 + $0xb8] sm:$0xff] %vm817_vm4, %v768_v31 }
 0x20b   : > { %1033 = vst.msk [vmem:[#allocation2 + $0xb0] sm:$0xff] %vm1010_vm5, %v959_v39  ;;  %1554 = vrot.lane.b32.xlu0 %v2537_v4, %s2779_s7 }
 0x20c   : > { %1556 = vrot.lane.b32.xlu1 %v2538_v28, %s2779_s7 }
 0x20d   : > { %v1537_v59 = vpop.permute.xlu0 %1536 }
 0x20e   : > { %v1728_v60 = vpop.permute.xlu1 %1727  ;;  %1612 = vst.msk [vmem:[#allocation2 + $0xa8] sm:$0xff] %vm1590_vm8, %v1537_v59 }
 0x20f   : > { %1804 = vst.msk [vmem:[#allocation2 + $0xa0] sm:$0xff] %vm1783_vm9, %v1728_v60  ;;  %1747 = vrot.lane.b32.xlu0 %v2569_v14, %s2780_s8 }
 0x210   : > { %1749 = vrot.lane.b32.xlu1 %v2570_v58, %s2780_s8 }
 0x211   : > { %v961_v15 = vpop.permute.xlu0 %960 }
 0x212   : > { %v1152_v50 = vpop.permute.xlu1 %1151  ;;  %1034 = vst.msk [vmem:[#allocation2 + $0xb8] sm:$0xff] %vm1010_vm5, %v961_v15 }
 0x213   : > { %1226 = vst.msk [vmem:[#allocation2 + $0xb0] sm:$0xff] %vm1203_vm6, %v1152_v50 }
 0x215   : > { %v1730_v51 = vpop.permute.xlu0 %1729 }
 0x216   : > { %v1154_v61 = vpop.permute.xlu1 %1153  ;;  %v1836_v32 = vld [vmem:[#allocation2 + $0xa0] sm:$0xff]  ;;  %1805 = vst.msk [vmem:[#allocation2 + $0xa8] sm:$0xff] %vm1783_vm9, %v1730_v51 }
 0x217   : > { %1227 = vst.msk [vmem:[#allocation2 + $0xb8] sm:$0xff] %vm1203_vm6, %v1154_v61  ;;  %2683 = vmatprep.mubr.msk.f32.mxu1 %vm1853_vm10, %v1836_v32 }
 0x219   : > { %v1346_v33 = vpop.permute.xlu0 %1345  ;;  %v2655_v40 = vpop.f32.mrb[0].mxu0 }
 0x21a   : > { %1420 = vst.msk [vmem:[#allocation2 + $0xb0] sm:$0xff] %vm1397_vm7, %v1346_v33  ;;  %v2215_v18 = vmul.f32 %v2655_v40, %v2655_v40  ;;  %v770_v13 = vpop.permute.xlu1 %769  ;;  %v2020_v21 = vpop.f32.mrb[1].mxu0 }
 0x21b   : > { %842 = vst.msk [vmem:[#allocation2 + $0xc0] sm:$0xff] %vm817_vm4, %v770_v13  ;;  %v2180_v17 = vadd.f32 %v2655_v40, %v2020_v21  ;;  %v2214_v52 = vmul.f32 %v2020_v21, %v2020_v21 }
 0x21d   : > { %v2246_v41 = vadd.f32 %v2215_v18, %v2214_v52  ;;  %v1348_v5 = vpop.permute.xlu0 %1347  ;;  %v1837_v29 = vld [vmem:[#allocation2 + $0xa8] sm:$0xff] }
 0x21e   : > { %1421 = vst.msk [vmem:[#allocation2 + $0xb8] sm:$0xff] %vm1397_vm7, %v1348_v5  ;;  %v1539_v53 = vpop.permute.xlu1 %1538  ;;  %2684 = vmatmul.mubr.msk.f32.gmra.mrb[4].mxu1 %vm1853_vm10, %v1837_v29 }
 0x21f   : > { %1613 = vst.msk [vmem:[#allocation2 + $0xb0] sm:$0xff] %vm1590_vm8, %v1539_v53 }
 0x221   : > { %v772_v30 = vpop.permute.xlu0 %771 }
 0x222   : > { %843 = vst.msk [vmem:[#allocation2 + $0xc8] sm:$0xff] %vm817_vm4, %v772_v30  ;;  %v963_v62 = vpop.permute.xlu1 %962 }
 0x223   : > { %1035 = vst.msk [vmem:[#allocation2 + $0xc0] sm:$0xff] %vm1010_vm5, %v963_v62 }
 0x225   : > { %v1541_v34 = vpop.permute.xlu0 %1540 }
 0x226   : > { %1614 = vst.msk [vmem:[#allocation2 + $0xb8] sm:$0xff] %vm1590_vm8, %v1541_v34  ;;  %v1732_v35 = vpop.permute.xlu1 %1731 }
 0x227   : > { %1806 = vst.msk [vmem:[#allocation2 + $0xb0] sm:$0xff] %vm1783_vm9, %v1732_v35 }
 0x229   : > { %v965_v22 = vpop.permute.xlu0 %964 }
 0x22a   : > { %1036 = vst.msk [vmem:[#allocation2 + $0xc8] sm:$0xff] %vm1010_vm5, %v965_v22  ;;  %v1156_v23 = vpop.permute.xlu1 %1155 }
 0x22b   : > { %1228 = vst.msk [vmem:[#allocation2 + $0xc0] sm:$0xff] %vm1203_vm6, %v1156_v23 }
 0x22d   : > { %v1734_v6 = vpop.permute.xlu0 %1733  ;;  %v2658_v63 = vpop.f32.mrb[2].mxu0 }
 0x22e   : > { %1807 = vst.msk [vmem:[#allocation2 + $0xb8] sm:$0xff] %vm1783_vm9, %v1734_v6  ;;  %v1158_v1 = vpop.permute.xlu1 %1157  ;;  %v2030_v44 = vpop.f32.mrb[3].mxu0  ;;  %v1838_v3 = vld [vmem:[#allocation2 + $0xb0] sm:$0xff]  ;;  %v2217_v55 = vmul.f32 %v2658_v63, %v2658_v63 }
 0x22f   : > { %1229 = vst.msk [vmem:[#allocation2 + $0xc8] sm:$0xff] %vm1203_vm6, %v1158_v1  ;;  %v2181_v54 = vadd.f32 %v2180_v17, %v2030_v44  ;;  %v2216_v7 = vmul.f32 %v2030_v44, %v2030_v44  ;;  %2686 = vmatprep.mubr.msk.f32.mxu1 %vm1853_vm10, %v1838_v3 }
 0x231   : > { %v2247_v42 = vadd.f32 %v2246_v41, %v2216_v7  ;;  %v1350_v45 = vpop.permute.xlu0 %1349  ;;  %v2182_v43 = vadd.f32 %v2658_v63, %v2181_v54 }
 0x232   : > { %1422 = vst.msk [vmem:[#allocation2 + $0xc0] sm:$0xff] %vm1397_vm7, %v1350_v45  ;;  %v774_v36 = vpop.permute.xlu1 %773 }
 0x233   : > { %844 = vst.msk [vmem:[#allocation2 + $0xd0] sm:$0xff] %vm817_vm4, %v774_v36  ;;  %v2248_v56 = vadd.f32 %v2247_v42, %v2217_v55 }
 0x235   : > { %v1352_v24 = vpop.permute.xlu0 %1351  ;;  %v1839_v25 = vld [vmem:[#allocation2 + $0xb8] sm:$0xff] }
 0x236   : > { %1423 = vst.msk [vmem:[#allocation2 + $0xc8] sm:$0xff] %vm1397_vm7, %v1352_v24  ;;  %v1543_v8 = vpop.permute.xlu1 %1542  ;;  %2687 = vmatmul.mubr.msk.f32.gmra.mrb[6].mxu1 %vm1853_vm10, %v1839_v25 }
 0x237   : > { %1615 = vst.msk [vmem:[#allocation2 + $0xc0] sm:$0xff] %vm1590_vm8, %v1543_v8 }
 0x239   : > { %v776_v12 = vpop.permute.xlu0 %775 }
 0x23a   : > { %845 = vst.msk [vmem:[#allocation2 + $0xd8] sm:$0xff] %vm817_vm4, %v776_v12  ;;  %v967_v37 = vpop.permute.xlu1 %966 }
 0x23b   : > { %1037 = vst.msk [vmem:[#allocation2 + $0xd0] sm:$0xff] %vm1010_vm5, %v967_v37 }
 0x23d   : > { %v1545_v16 = vpop.permute.xlu0 %1544 }
 0x23e   : > { %1616 = vst.msk [vmem:[#allocation2 + $0xc8] sm:$0xff] %vm1590_vm8, %v1545_v16  ;;  %v1736_v57 = vpop.permute.xlu1 %1735 }
 0x23f   : > { %1808 = vst.msk [vmem:[#allocation2 + $0xc0] sm:$0xff] %vm1783_vm9, %v1736_v57 }
 0x241   : > { %v969_v9 = vpop.permute.xlu0 %968  ;;  %v2661_v46 = vpop.f32.mrb[4].mxu0 }
 0x242   : > { %1038 = vst.msk [vmem:[#allocation2 + $0xd8] sm:$0xff] %vm1010_vm5, %v969_v9  ;;  %v1160_v47 = vpop.permute.xlu1 %1159  ;;  %v2040_v0 = vpop.f32.mrb[5].mxu0  ;;  %v2219_v10 = vmul.f32 %v2661_v46, %v2661_v46 }
 0x243   : > { %1230 = vst.msk [vmem:[#allocation2 + $0xd0] sm:$0xff] %vm1203_vm6, %v1160_v47  ;;  %v2183_v26 = vadd.f32 %v2182_v43, %v2040_v0  ;;  %v2218_v27 = vmul.f32 %v2040_v0, %v2040_v0 }
 0x245   : > { %v2249_v19 = vadd.f32 %v2248_v56, %v2218_v27  ;;  %v1738_v20 = vpop.permute.xlu0 %1737  ;;  %v2184_v2 = vadd.f32 %v2661_v46, %v2183_v26 }
 0x246   : > { %1809 = vst.msk [vmem:[#allocation2 + $0xc8] sm:$0xff] %vm1783_vm9, %v1738_v20  ;;  %v1162_v38 = vpop.permute.xlu1 %1161  ;;  %v1840_v11 = vld [vmem:[#allocation2 + $0xc0] sm:$0xff] }
 0x247   : > { %1231 = vst.msk [vmem:[#allocation2 + $0xd8] sm:$0xff] %vm1203_vm6, %v1162_v38  ;;  %2689 = vmatprep.mubr.msk.f32.mxu1 %vm1853_vm10, %v1840_v11  ;;  %v2250_v48 = vadd.f32 %v2249_v19, %v2219_v10 }
 0x249   : > { %v1354_v49 = vpop.permute.xlu0 %1353 }
 0x24a   : > { %1424 = vst.msk [vmem:[#allocation2 + $0xd0] sm:$0xff] %vm1397_vm7, %v1354_v49  ;;  %v778_v4 = vpop.permute.xlu1 %777 }
 0x24b   : > { %846 = vst.msk [vmem:[#allocation2 + $0xe0] sm:$0xff] %vm817_vm4, %v778_v4 }
 0x24d   : > { %v1356_v28 = vpop.permute.xlu0 %1355  ;;  %v1841_v31 = vld [vmem:[#allocation2 + $0xc8] sm:$0xff] }
 0x24e   : > { %1425 = vst.msk [vmem:[#allocation2 + $0xd8] sm:$0xff] %vm1397_vm7, %v1356_v28  ;;  %v1547_v39 = vpop.permute.xlu1 %1546  ;;  %2690 = vmatmul.mubr.msk.f32.gmra.mrb[8].mxu1 %vm1853_vm10, %v1841_v31 }
 0x24f   : > { %1617 = vst.msk [vmem:[#allocation2 + $0xd0] sm:$0xff] %vm1590_vm8, %v1547_v39 }
 0x251   : > { %v780_v14 = vpop.permute.xlu0 %779 }
 0x252   : > { %847 = vst.msk [vmem:[#allocation2 + $0xe8] sm:$0xff] %vm817_vm4, %v780_v14  ;;  %v971_v58 = vpop.permute.xlu1 %970 }
 0x253   : > { %1039 = vst.msk [vmem:[#allocation2 + $0xe0] sm:$0xff] %vm1010_vm5, %v971_v58 }
 0x255   : > { %v1549_v59 = vpop.permute.xlu0 %1548  ;;  %v2664_v60 = vpop.f32.mrb[6].mxu0 }
 0x256   : > { %1618 = vst.msk [vmem:[#allocation2 + $0xd8] sm:$0xff] %vm1590_vm8, %v1549_v59  ;;  %v1740_v15 = vpop.permute.xlu1 %1739  ;;  %v2050_v50 = vpop.f32.mrb[7].mxu0  ;;  %v2221_v32 = vmul.f32 %v2664_v60, %v2664_v60 }
 0x257   : > { %1810 = vst.msk [vmem:[#allocation2 + $0xd0] sm:$0xff] %vm1783_vm9, %v1740_v15  ;;  %v2185_v51 = vadd.f32 %v2184_v2, %v2050_v50  ;;  %v2220_v61 = vmul.f32 %v2050_v50, %v2050_v50 }
 0x259   : > { %v2251_v33 = vadd.f32 %v2250_v48, %v2220_v61  ;;  %v973_v40 = vpop.permute.xlu0 %972  ;;  %v2186_v18 = vadd.f32 %v2664_v60, %v2185_v51 }
 0x25a   : > { %1040 = vst.msk [vmem:[#allocation2 + $0xe8] sm:$0xff] %vm1010_vm5, %v973_v40  ;;  %v1164_v13 = vpop.permute.xlu1 %1163 }
 0x25b   : > { %1232 = vst.msk [vmem:[#allocation2 + $0xe0] sm:$0xff] %vm1203_vm6, %v1164_v13  ;;  %v2252_v21 = vadd.f32 %v2251_v33, %v2221_v32 }
 0x25d   : > { %v1742_v17 = vpop.permute.xlu0 %1741 }
 0x25e   : > { %1811 = vst.msk [vmem:[#allocation2 + $0xd8] sm:$0xff] %vm1783_vm9, %v1742_v17  ;;  %v1166_v52 = vpop.permute.xlu1 %1165  ;;  %v1842_v41 = vld [vmem:[#allocation2 + $0xd0] sm:$0xff] }
 0x25f   : > { %1233 = vst.msk [vmem:[#allocation2 + $0xe8] sm:$0xff] %vm1203_vm6, %v1166_v52  ;;  %2692 = vmatprep.mubr.msk.f32.mxu1 %vm1853_vm10, %v1842_v41 }
 0x261   : > { %v1358_v5 = vpop.permute.xlu0 %1357 }
 0x262   : > { %1426 = vst.msk [vmem:[#allocation2 + $0xe0] sm:$0xff] %vm1397_vm7, %v1358_v5  ;;  %v782_v29 = vpop.permute.xlu1 %781 }
 0x263   : > { %848 = vst.msk [vmem:[#allocation2 + $0xf0] sm:$0xff] %vm817_vm4, %v782_v29 }
 0x265   : > { %v1360_v53 = vpop.permute.xlu0 %1359  ;;  %v1843_v30 = vld [vmem:[#allocation2 + $0xd8] sm:$0xff] }
 0x266   : > { %1427 = vst.msk [vmem:[#allocation2 + $0xe8] sm:$0xff] %vm1397_vm7, %v1360_v53  ;;  %v1551_v62 = vpop.permute.xlu1 %1550  ;;  %2693 = vmatmul.mubr.msk.f32.gmra.mrb[10].mxu1 %vm1853_vm10, %v1843_v30 }
 0x267   : > { %1619 = vst.msk [vmem:[#allocation2 + $0xe0] sm:$0xff] %vm1590_vm8, %v1551_v62 }
 0x269   : > { %v784_v34 = vpop.permute.xlu0 %783  ;;  %v2667_v35 = vpop.f32.mrb[8].mxu0 }
 0x26a   : > { %849 = vst.msk [vmem:[#allocation2 + $0xf8] sm:$0xff] %vm817_vm4, %v784_v34  ;;  %v975_v22 = vpop.permute.xlu1 %974  ;;  %v2060_v23 = vpop.f32.mrb[9].mxu0  ;;  %v2223_v1 = vmul.f32 %v2667_v35, %v2667_v35 }
 0x26b   : > { %1041 = vst.msk [vmem:[#allocation2 + $0xf0] sm:$0xff] %vm1010_vm5, %v975_v22  ;;  %v2187_v6 = vadd.f32 %v2186_v18, %v2060_v23  ;;  %v2222_v63 = vmul.f32 %v2060_v23, %v2060_v23 }
 0x26d   : > { %v2253_v44 = vadd.f32 %v2252_v21, %v2222_v63  ;;  %v1553_v3 = vpop.permute.xlu0 %1552  ;;  %v2188_v54 = vadd.f32 %v2667_v35, %v2187_v6 }
 0x26e   : > { %1620 = vst.msk [vmem:[#allocation2 + $0xe8] sm:$0xff] %vm1590_vm8, %v1553_v3  ;;  %v1744_v7 = vpop.permute.xlu1 %1743 }
 0x26f   : > { %1812 = vst.msk [vmem:[#allocation2 + $0xe0] sm:$0xff] %vm1783_vm9, %v1744_v7  ;;  %v2254_v55 = vadd.f32 %v2253_v44, %v2223_v1 }
 0x271   : > { %v977_v42 = vpop.permute.xlu0 %976 }
 0x272   : > { %1042 = vst.msk [vmem:[#allocation2 + $0xf8] sm:$0xff] %vm1010_vm5, %v977_v42  ;;  %v1168_v45 = vpop.permute.xlu1 %1167 }
 0x273   : > { %1234 = vst.msk [vmem:[#allocation2 + $0xf0] sm:$0xff] %vm1203_vm6, %v1168_v45 }
 0x275   : > { %v1746_v43 = vpop.permute.xlu0 %1745 }
 0x276   : > { %1813 = vst.msk [vmem:[#allocation2 + $0xe8] sm:$0xff] %vm1783_vm9, %v1746_v43  ;;  %v1170_v36 = vpop.permute.xlu1 %1169  ;;  %v1844_v56 = vld [vmem:[#allocation2 + $0xe0] sm:$0xff] }
 0x277   : > { %1235 = vst.msk [vmem:[#allocation2 + $0xf8] sm:$0xff] %vm1203_vm6, %v1170_v36  ;;  %2695 = vmatprep.mubr.msk.f32.mxu1 %vm1853_vm10, %v1844_v56 }
 0x279   : > { %v1362_v24 = vpop.permute.xlu0 %1361 }
 0x27a   : > { %1428 = vst.msk [vmem:[#allocation2 + $0xf0] sm:$0xff] %vm1397_vm7, %v1362_v24  ;;  %v1364_v25 = vpop.permute.xlu1 %1363 }
 0x27b   : > { %1429 = vst.msk [vmem:[#allocation2 + $0xf8] sm:$0xff] %vm1397_vm7, %v1364_v25 }
 0x27d   : > { %v1555_v8 = vpop.permute.xlu0 %1554  ;;  %v2670_v12 = vpop.f32.mrb[10].mxu0  ;;  %v1845_v37 = vld [vmem:[#allocation2 + $0xe8] sm:$0xff] }
 0x27e   : > { %1621 = vst.msk [vmem:[#allocation2 + $0xf0] sm:$0xff] %vm1590_vm8, %v1555_v8  ;;  %v1557_v16 = vpop.permute.xlu1 %1556  ;;  %v2070_v57 = vpop.f32.mrb[11].mxu0  ;;  %2696 = vmatmul.mubr.msk.f32.gmra.mrb[12].mxu1 %vm1853_vm10, %v1845_v37  ;;  %v2225_v47 = vmul.f32 %v2670_v12, %v2670_v12 }
 0x27f   : > { %1622 = vst.msk [vmem:[#allocation2 + $0xf8] sm:$0xff] %vm1590_vm8, %v1557_v16  ;;  %v2189_v9 = vadd.f32 %v2188_v54, %v2070_v57  ;;  %v2224_v46 = vmul.f32 %v2070_v57, %v2070_v57 }
 0x281   : > { %v2255_v0 = vadd.f32 %v2254_v55, %v2224_v46  ;;  %v1748_v26 = vpop.permute.xlu0 %1747  ;;  %v2190_v27 = vadd.f32 %v2670_v12, %v2189_v9 }
 0x282   : > { %1814 = vst.msk [vmem:[#allocation2 + $0xf0] sm:$0xff] %vm1783_vm9, %v1748_v26  ;;  %v1750_v10 = vpop.permute.xlu1 %1749 }
 0x283   : > { %1815 = vst.msk [vmem:[#allocation2 + $0xf8] sm:$0xff] %vm1783_vm9, %v1750_v10  ;;  %v2256_v19 = vadd.f32 %v2255_v0, %v2225_v47 }
 0x289   : > { %v1846_v20 = vld [vmem:[#allocation2 + $0xf0] sm:$0xff] }
 0x28a   : > { %2698 = vmatprep.mubr.msk.f32.mxu1 %vm1853_vm10, %v1846_v20  ;;  %v1847_v2 = vld [vmem:[#allocation2 + $0xf8] sm:$0xff] }
 0x28b   : > { %2699 = vmatmul.mubr.msk.f32.gmra.mrb[14].mxu1 %vm1853_vm10, %v1847_v2 }
 0x291   : > { %v2673_v38 = vpop.f32.mrb[12].mxu0 }
 0x292   : > { %v2080_v11 = vpop.f32.mrb[13].mxu0  ;;  %v2227_v4 = vmul.f32 %v2673_v38, %v2673_v38 }
 0x293   : > { %v2191_v48 = vadd.f32 %v2190_v27, %v2080_v11  ;;  %v2226_v49 = vmul.f32 %v2080_v11, %v2080_v11 }
 0x295   : > { %v2257_v28 = vadd.f32 %v2256_v19, %v2226_v49  ;;  %v2192_v31 = vadd.f32 %v2673_v38, %v2191_v48 }
 0x297   : > { %v2258_v39 = vadd.f32 %v2257_v28, %v2227_v4 }
 0x2a9   : > { %v2676_v14 = vpop.f32.mrb[14].mxu0 }
 0x2aa   : > { %v2090_v58 = vpop.f32.mrb[15].mxu0  ;;  %v2229_v15 = vmul.f32 %v2676_v14, %v2676_v14 }
 0x2ab   : > { %v2193_v59 = vadd.f32 %v2192_v31, %v2090_v58  ;;  %v2228_v60 = vmul.f32 %v2090_v58, %v2090_v58 }
 0x2ad   : > { %v2194_v50 = vadd.f32 %v2676_v14, %v2193_v59  ;;  %v2259_v51 = vadd.f32 %v2258_v39, %v2228_v60 }
 0x2af   : > { %v2260_v61 = vadd.f32 %v2259_v51, %v2229_v15 }
 0x2c1   : > { %v2679_v32 = vpop.f32.mrb[0].mxu1 }
 0x2c2   : > { %v2100_v33 = vpop.f32.mrb[1].mxu1  ;;  %v2231_v13 = vmul.f32 %v2679_v32, %v2679_v32 }
 0x2c3   : > { %v2195_v40 = vadd.f32 %v2194_v50, %v2100_v33  ;;  %v2230_v18 = vmul.f32 %v2100_v33, %v2100_v33 }
 0x2c5   : > { %v2261_v21 = vadd.f32 %v2260_v61, %v2230_v18  ;;  %v2196_v17 = vadd.f32 %v2679_v32, %v2195_v40 }
 0x2c7   : > { %v2262_v52 = vadd.f32 %v2261_v21, %v2231_v13 }
 0x2d9   : > { %v2682_v41 = vpop.f32.mrb[2].mxu1 }
 0x2da   : > { %v2110_v5 = vpop.f32.mrb[3].mxu1  ;;  %v2233_v30 = vmul.f32 %v2682_v41, %v2682_v41 }
 0x2db   : > { %v2197_v29 = vadd.f32 %v2196_v17, %v2110_v5  ;;  %v2232_v53 = vmul.f32 %v2110_v5, %v2110_v5 }
 0x2dd   : > { %v2263_v62 = vadd.f32 %v2262_v52, %v2232_v53  ;;  %v2198_v34 = vadd.f32 %v2682_v41, %v2197_v29 }
 0x2df   : > { %v2264_v35 = vadd.f32 %v2263_v62, %v2233_v30 }
 0x2f1   : > { %v2685_v22 = vpop.f32.mrb[4].mxu1 }
 0x2f2   : > { %v2120_v23 = vpop.f32.mrb[5].mxu1  ;;  %v2235_v1 = vmul.f32 %v2685_v22, %v2685_v22 }
 0x2f3   : > { %v2199_v6 = vadd.f32 %v2198_v34, %v2120_v23  ;;  %v2234_v63 = vmul.f32 %v2120_v23, %v2120_v23 }
 0x2f5   : > { %v2265_v44 = vadd.f32 %v2264_v35, %v2234_v63  ;;  %v2200_v3 = vadd.f32 %v2685_v22, %v2199_v6 }
 0x2f7   : > { %v2266_v54 = vadd.f32 %v2265_v44, %v2235_v1 }
 0x309   : > { %v2688_v7 = vpop.f32.mrb[6].mxu1 }
 0x30a   : > { %v2130_v55 = vpop.f32.mrb[7].mxu1  ;;  %v2237_v43 = vmul.f32 %v2688_v7, %v2688_v7 }
 0x30b   : > { %v2201_v42 = vadd.f32 %v2200_v3, %v2130_v55  ;;  %v2236_v45 = vmul.f32 %v2130_v55, %v2130_v55 }
 0x30d   : > { %v2267_v36 = vadd.f32 %v2266_v54, %v2236_v45  ;;  %v2202_v56 = vadd.f32 %v2688_v7, %v2201_v42 }
 0x30f   : > { %v2268_v24 = vadd.f32 %v2267_v36, %v2237_v43 }
 0x321   : > { %v2691_v25 = vpop.f32.mrb[8].mxu1 }
 0x322   : > { %v2140_v8 = vpop.f32.mrb[9].mxu1  ;;  %v2239_v16 = vmul.f32 %v2691_v25, %v2691_v25 }
 0x323   : > { %v2203_v12 = vadd.f32 %v2202_v56, %v2140_v8  ;;  %v2238_v37 = vmul.f32 %v2140_v8, %v2140_v8 }
 0x325   : > { %v2269_v57 = vadd.f32 %v2268_v24, %v2238_v37  ;;  %v2204_v9 = vadd.f32 %v2691_v25, %v2203_v12 }
 0x327   : > { %v2270_v46 = vadd.f32 %v2269_v57, %v2239_v16 }
 0x339   : > { %v2694_v47 = vpop.f32.mrb[10].mxu1 }
 0x33a   : > { %v2150_v0 = vpop.f32.mrb[11].mxu1  ;;  %v2241_v10 = vmul.f32 %v2694_v47, %v2694_v47 }
 0x33b   : > { %v2205_v26 = vadd.f32 %v2204_v9, %v2150_v0  ;;  %v2240_v27 = vmul.f32 %v2150_v0, %v2150_v0 }
 0x33d   : > { %v2271_v19 = vadd.f32 %v2270_v46, %v2240_v27  ;;  %v2206_v20 = vadd.f32 %v2694_v47, %v2205_v26 }
 0x33f   : > { %v2272_v2 = vadd.f32 %v2271_v19, %v2241_v10 }
 0x351   : > { %v2697_v38 = vpop.f32.mrb[12].mxu1 }
 0x352   : > { %v2160_v11 = vpop.f32.mrb[13].mxu1  ;;  %v2243_v4 = vmul.f32 %v2697_v38, %v2697_v38 }
 0x353   : > { %v2207_v48 = vadd.f32 %v2206_v20, %v2160_v11  ;;  %v2242_v49 = vmul.f32 %v2160_v11, %v2160_v11 }
 0x355   : > { %v2273_v28 = vadd.f32 %v2272_v2, %v2242_v49  ;;  %v2208_v31 = vadd.f32 %v2697_v38, %v2207_v48 }
 0x357   : > { %v2274_v39 = vadd.f32 %v2273_v28, %v2243_v4 }
 0x35e   : > { %v2700_v14 = vpop.f32.mrb[14].mxu1 }
 0x35f   : > { %v2170_v58 = vpop.f32.mrb[15].mxu1  ;;  %v2245_v15 = vmul.f32 %v2700_v14, %v2700_v14 }
 0x360   : > { %v2209_v59 = vadd.f32 %v2208_v31, %v2170_v58  ;;  %v2244_v60 = vmul.f32 %v2170_v58, %v2170_v58 }
 0x362   : > { %v2210_v50 = vadd.f32 %v2700_v14, %v2209_v59  ;;  %v2275_v51 = vadd.f32 %v2274_v39, %v2244_v60 }
 0x364   : > { %v2276_v61 = vadd.f32 %v2275_v51, %v2245_v15  ;;  %2212 = vst [vmem:[%s194_s18] sm:$0xff] %v2210_v50 }
 0x366   : > { %2278 = vst [vmem:[%s198_s21] sm:$0xff] %v2276_v61 }
 0x367 PF: > { %s14_s14 = sadd.s32 1, %s2771_s14   ;;  %s3846_s12 = smov %s2767_s13 }
 0x368   : > { %p11_p5 = scmp.ge.s32.totalorder %s14_s14, 4   ;;  %s3847_s13 = smov %s3849_s15 }
 0x36a   :  { %13 = sbr.rel (!%p11_p5) target bundleno = 2 (0x2), region = 76 }

</bundles_post_ra>
